<compile_context>
chip_gen: v7x
topology: tpu7x:2x2x1
jax: 0.10.0
libtpu: 0.0.40
codegen_flags: <defaults>
</compile_context>

<pallas_src>
import numpy as np

import jax
import jax.numpy as jnp
from jax.experimental import pallas as pl
from jax.experimental.pallas import tpu as pltpu

EPS = 1e-5  # PyTorch BatchNorm default eps


# ----------------------------- fused Pallas kernel -----------------------------

def _make_decoder_kernel(cfg):
    n = cfg["n"]
    eps = cfg["eps"]
    chans = cfg["channels"]          # out-channel count per ConvTranspose block
    inv_n = 1.0 / float(n)

    def kernel(*refs):
        *in_refs, o_ref = refs
        it = iter(in_refs)
        z_ref = next(it); y_ref = next(it)
        fcw_ref = next(it); slab_ref = next(it)

        slab = slab_ref[...]

        # ---- fc: concat(z, y) folded into one K=(dl+nl) matmul ----
        zy = jnp.concatenate([z_ref[...], y_ref[...]], axis=1)
        h = jnp.dot(zy, fcw_ref[...], preferred_element_type=jnp.float32)

        # ---- BatchNorm1d (training-mode batch stats) + affine + ReLU ----
        mean = jnp.sum(h, axis=0, keepdims=True) * inv_n
        ex2 = jnp.sum(h * h, axis=0, keepdims=True) * inv_n
        var = jnp.maximum(ex2 - mean * mean, 0.0)          # clamp (review fix)
        h = (h - mean) * jax.lax.rsqrt(var + eps)
        x = jnp.maximum(h * slab[0:1, :] + slab[1:2, :], 0.0)
        # x is already (n, C0*H0*W0) channel-major == torch .view(N, C, h, h)

        # ---- ConvTranspose2d + BatchNorm2d + ReLU blocks ----
        for bi, c in enumerate(chans):
            m_ref = next(it); pd_ref = next(it); pu_ref = next(it)

            # whole transposed conv (all taps, stride-2 scatter, out_pad) as
            # ONE matmul against the precomputed (Cin*Sin, Cout*Sout) matrix
            act = jnp.dot(x, m_ref[...], preferred_element_type=jnp.float32)

            # BN2d batch stats: one pooling matmul -> (2, C) = [mean; E[x^2]]
            s1 = jnp.sum(act, axis=0, keepdims=True)
            s2 = jnp.sum(act * act, axis=0, keepdims=True)
            st = jnp.dot(jnp.concatenate([s1, s2], axis=0), pd_ref[...],
                         preferred_element_type=jnp.float32)
            mean = st[0:1, :]
            var = jnp.maximum(st[1:2, :] - mean * mean, 0.0)  # clamp
            gamma = slab[2 + 2 * bi:3 + 2 * bi, 0:c]
            beta = slab[3 + 2 * bi:4 + 2 * bi, 0:c]
            scale = gamma * jax.lax.rsqrt(var + eps)
            shift = beta - mean * scale

            # broadcast per-channel {scale, shift} back to lanes in one matmul
            bc = jnp.dot(jnp.concatenate([scale, shift], axis=0), pu_ref[...],
                         preferred_element_type=jnp.float32)
            x = jnp.maximum(act * bc[0:1, :] + bc[1:2, :], 0.0)

        # ---- final Conv2d (one matmul) + bias + Tanh, lane-dense store ----
        mf_ref = next(it)
        out = jnp.dot(x, mf_ref[...], preferred_element_type=jnp.float32)
        bias = slab[2 + 2 * len(chans):3 + 2 * len(chans), 0:1]
        o_ref[...] = jnp.tanh(out + bias)

    return kernel


# ----------------------------- parameter init (torch layout) -----------------------------

def init_decoder_params(key, *, img_shape, num_hidden, dim_latent, num_labels,
                        kernel_size, padding):
    img_small = int(np.ceil(img_shape / 2 ** num_hidden))
    fc_out = int(dim_latent / 2 * 2 ** (num_hidden - 1) * img_small ** 2)
    fc_in = dim_latent + num_labels

    keys = iter(jax.random.split(key, 32))
    params = {}

    # Linear(bias=False): torch weight layout (fc_out, fc_in)
    params["fc_w"] = np.asarray(
        0.1 * jax.random.normal(next(keys), (fc_out, fc_in), jnp.float32))
    params["fc_gamma"] = np.asarray(
        1.0 + 0.05 * jax.random.normal(next(keys), (fc_out,), jnp.float32))
    params["fc_beta"] = np.asarray(
        0.05 * jax.random.normal(next(keys), (fc_out,), jnp.float32))

    in_ch = int(fc_out / img_small ** 2)
    out_ch = dim_latent * 2
    blocks = []
    for _ in range(num_hidden):
        # torch ConvTranspose2d weight layout: (in_ch, out_ch, kH, kW)
        w_t = np.asarray(0.1 * jax.random.normal(
            next(keys), (in_ch, out_ch, kernel_size, kernel_size), jnp.float32))
        gamma = np.asarray(
            1.0 + 0.05 * jax.random.normal(next(keys), (out_ch,), jnp.float32))
        beta = np.asarray(
            0.05 * jax.random.normal(next(keys), (out_ch,), jnp.float32))
        blocks.append(dict(w=w_t, gamma=gamma, beta=beta))
        in_ch = out_ch
        out_ch = int(out_ch / 2)
    params["blocks"] = blocks

    # Final Conv2d(in_ch, 1, k, padding=p) with bias; torch weight (1, in_ch, k, k)
    params["final_w"] = np.asarray(0.1 * jax.random.normal(
        next(keys), (1, in_ch, kernel_size, kernel_size), jnp.float32))
    params["final_bias"] = np.asarray(
        0.05 * jax.random.normal(next(keys), (1,), jnp.float32))

    meta = dict(img_small=img_small, kernel_size=kernel_size, padding=padding,
                dim_latent=dim_latent, num_labels=num_labels)
    return params, meta


# ----------------------------- host-side operand preparation -----------------------------

def prepare_decoder(params, meta, batch):
    """Precompute one (Cin*Sin, Cout*Sout) matrix per ConvTranspose block, the
    final-conv matrix, the BN2d pool/broadcast matrices, and a packed slab of
    small per-channel vectors, so the kernel is pure matmul/elementwise."""
    k = meta["kernel_size"]
    p = meta["padding"]
    hs = meta["img_small"]
    n = batch

    fc_w = params["fc_w"]                       # (fc_out, fc_in) torch layout
    fc_out = fc_w.shape[0]
    nb = len(params["blocks"])

    ops = [fc_w.T.astype(np.float32)]           # (fc_in, fc_out)

    # packed slab: fc gamma/beta, per-block gamma/beta, final bias (one DMA)
    slab_w = max([fc_out] + [int(b["gamma"].shape[0]) for b in params["blocks"]])
    slab = np.zeros((2 + 2 * nb + 1, slab_w), np.float32)
    slab[0, :fc_out] = params["fc_gamma"]
    slab[1, :fc_out] = params["fc_beta"]
    channels = []
    for bi, blk in enumerate(params["blocks"]):
        c = int(blk["gamma"].shape[0])
        slab[2 + 2 * bi, :c] = blk["gamma"]
        slab[3 + 2 * bi, :c] = blk["beta"]
        channels.append(c)
    slab[2 + 2 * nb, 0] = params["final_bias"][0]
    ops.append(slab)

    hin = hs
    for blk in params["blocks"]:
        wt = blk["w"]                           # (cin, cout, k, k)
        cin, cout = wt.shape[0], wt.shape[1]
        hout = (hin - 1) * 2 - 2 * p + k + 1    # stride=2, output_padding=1
        sin, sout = hin * hin, hout * hout

        # Full transposed-conv matrix: batch-independent, all taps merged.
        M = np.zeros((cin * sin, cout * sout), np.float32)
        for ci in range(cin):
            for co in range(cout):
                for kh in range(k):
                    for kw in range(k):
                        w = wt[ci, co, kh, kw]
                        for ih in range(hin):
                            oh = 2 * ih + kh - p
                            if not (0 <= oh < hout):
                                continue
                            for iw in range(hin):
                                ow = 2 * iw + kw - p
                                if not (0 <= ow < hout):
                                    continue
                                M[ci * sin + ih * hin + iw,
                                  co * sout + oh * hout + ow] += w

        # BN2d pooling (lanes -> channel, scaled by 1/(n*S)) and broadcast-back.
        Pd = np.zeros((cout * sout, cout), np.float32)
        Pu = np.zeros((cout, cout * sout), np.float32)
        inv_cnt = 1.0 / float(n * sout)
        for co in range(cout):
            Pd[co * sout:(co + 1) * sout, co] = inv_cnt
            Pu[co, co * sout:(co + 1) * sout] = 1.0

        ops += [M, Pd, Pu]
        hin = hout

    # Final Conv2d (stride 1, zero pad) as one matmul matrix.
    wc = params["final_w"]                      # (1, cinf, k, k)
    cinf = wc.shape[1]
    s_img = hin * hin
    Mf = np.zeros((cinf * s_img, s_img), np.float32)
    for ci in range(cinf):
        for kh in range(k):
            for kw in range(k):
                w = wc[0, ci, kh, kw]
                for oh in range(hin):
                    ih = oh + kh - p
                    if not (0 <= ih < hin):
                        continue
                    for ow in range(hin):
                        iw = ow + kw - p
                        if not (0 <= iw < hin):
                            continue
                        Mf[ci * s_img + ih * hin + iw, oh * hin + ow] += w
    ops.append(Mf)

    cfg = dict(n=n, eps=EPS, channels=tuple(channels))
    ops = [jnp.asarray(o, jnp.float32) for o in ops]
    return ops, cfg, hin


# ----------------------------- forward builder -----------------------------

def make_decoder(weight_ops, cfg, out_hw):
    kernel = _make_decoder_kernel(cfg)
    n = cfg["n"]
    s_img = out_hw * out_hw
    n_in = 2 + len(weight_ops)
    vspec = pl.BlockSpec(memory_space=pltpu.MemorySpace.VMEM)

    call = pl.pallas_call(
        kernel,
        out_shape=jax.ShapeDtypeStruct((n, s_img), jnp.float32),
        in_specs=[vspec] * n_in,
        out_specs=vspec,
    )

    def forward(z, y_target):
        out = call(z, y_target, *weight_ops)      # (N, H*W), lane-dense store
        return out.reshape(n, 1, out_hw, out_hw)  # back to NCHW

    return forward


# ----------------------------- main -----------------------------

if __name__ == "__main__":
    settings = dict(img_shape=16, num_hidden=2, dim_latent=4, num_labels=4,
                    kernel_size=3, padding=1)
    batch = 2

    root = jax.random.PRNGKey(0)
    kp, kz, ky = jax.random.split(root, 3)

    params, meta = init_decoder_params(kp, **settings)
    weight_ops, cfg, out_hw = prepare_decoder(params, meta, batch)
    decoder = make_decoder(weight_ops, cfg, out_hw)

    z = jax.random.normal(kz, (batch, settings["dim_latent"]), jnp.float32)
    y_target = jax.random.normal(ky, (batch, settings["num_labels"]), jnp.float32)

    out = decoder(z, y_target)
    out = jax.block_until_ready(out)

    assert out.shape == (batch, 1, settings["img_shape"], settings["img_shape"]), out.shape
    assert bool(jnp.all(jnp.isfinite(out)))
    assert bool(jnp.all(jnp.abs(out) <= 1.0 + 1e-6))   # tanh output range
    print("KERNEL_OK")
</pallas_src>

<mosaic_0001>
module attributes {stable_mosaic.version = 11 : i64} {
  func.func @kernel(%arg0: memref<2x4xf32, #tpu.memory_space<vmem>>, %arg1: memref<2x4xf32, #tpu.memory_space<vmem>>, %arg2: memref<8x64xf32, #tpu.memory_space<vmem>>, %arg3: memref<7x64xf32, #tpu.memory_space<vmem>>, %arg4: memref<64x512xf32, #tpu.memory_space<vmem>>, %arg5: memref<512x8xf32, #tpu.memory_space<vmem>>, %arg6: memref<8x512xf32, #tpu.memory_space<vmem>>, %arg7: memref<512x1024xf32, #tpu.memory_space<vmem>>, %arg8: memref<1024x4xf32, #tpu.memory_space<vmem>>, %arg9: memref<4x1024xf32, #tpu.memory_space<vmem>>, %arg10: memref<1024x256xf32, #tpu.memory_space<vmem>>, %arg11: memref<2x256xf32, #tpu.memory_space<vmem>>) attributes {dimension_semantics = [], scalar_prefetch = 0 : i64, scratch_operands = 0 : i64, tpu.core_type = #tpu.core_type<tc>} {
    %c0 = arith.constant 0 : index
    %c0_0 = arith.constant 0 : index
    %0 = vector.load %arg3[%c0, %c0_0] : memref<7x64xf32, #tpu.memory_space<vmem>>, vector<7x64xf32>
    %c0_1 = arith.constant 0 : index
    %c0_2 = arith.constant 0 : index
    %1 = vector.load %arg0[%c0_1, %c0_2] : memref<2x4xf32, #tpu.memory_space<vmem>>, vector<2x4xf32>
    %c0_3 = arith.constant 0 : index
    %c0_4 = arith.constant 0 : index
    %2 = vector.load %arg1[%c0_3, %c0_4] : memref<2x4xf32, #tpu.memory_space<vmem>>, vector<2x4xf32>
    %3 = tpu.concatenate %1, %2 in 1 : vector<2x4xf32>, vector<2x4xf32> -> vector<2x8xf32>
    %c0_5 = arith.constant 0 : index
    %c0_6 = arith.constant 0 : index
    %4 = vector.load %arg2[%c0_5, %c0_6] : memref<8x64xf32, #tpu.memory_space<vmem>>, vector<8x64xf32>
    %cst = arith.constant dense<0.000000e+00> : vector<2x64xf32>
    %5 = tpu.matmul %3, %4, %cst {dimension_numbers = #tpu.dot_dimension_numbers<[1], [0], [0], [1], [0, 0, 1, 1], [], []>} : vector<2x8xf32>, vector<8x64xf32>, vector<2x64xf32> -> vector<2x64xf32>
    %cst_7 = arith.constant dense<0.000000e+00> : vector<64xf32>
    %6 = vector.multi_reduction <add>, %5, %cst_7 [0] : vector<2x64xf32> to vector<64xf32>
    %7 = vector.shape_cast %6 : vector<64xf32> to vector<1x64xf32>
    %cst_8 = arith.constant 5.000000e-01 : f32
    %8 = vector.broadcast %cst_8 : f32 to vector<1x64xf32>
    %9 = arith.mulf %7, %8 : vector<1x64xf32>
    %10 = arith.mulf %5, %5 : vector<2x64xf32>
    %cst_9 = arith.constant dense<0.000000e+00> : vector<64xf32>
    %11 = vector.multi_reduction <add>, %10, %cst_9 [0] : vector<2x64xf32> to vector<64xf32>
    %12 = vector.shape_cast %11 : vector<64xf32> to vector<1x64xf32>
    %cst_10 = arith.constant 5.000000e-01 : f32
    %13 = vector.broadcast %cst_10 : f32 to vector<1x64xf32>
    %14 = arith.mulf %12, %13 : vector<1x64xf32>
    %15 = arith.mulf %9, %9 : vector<1x64xf32>
    %16 = arith.subf %14, %15 : vector<1x64xf32>
    %cst_11 = arith.constant 0.000000e+00 : f32
    %17 = vector.broadcast %cst_11 : f32 to vector<1x64xf32>
    %18 = arith.maximumf %16, %17 : vector<1x64xf32>
    %19 = vector.broadcast %9 : vector<1x64xf32> to vector<2x64xf32>
    %20 = arith.subf %5, %19 : vector<2x64xf32>
    %cst_12 = arith.constant 9.99999974E-6 : f32
    %21 = vector.broadcast %cst_12 : f32 to vector<1x64xf32>
    %22 = arith.addf %18, %21 : vector<1x64xf32>
    %23 = math.rsqrt %22 : vector<1x64xf32>
    %24 = vector.broadcast %23 : vector<1x64xf32> to vector<2x64xf32>
    %25 = arith.mulf %20, %24 : vector<2x64xf32>
    %26 = vector.extract_strided_slice %0 {offsets = [0, 0], sizes = [1, 64], strides = [1, 1]} : vector<7x64xf32> to vector<1x64xf32>
    %27 = vector.broadcast %26 : vector<1x64xf32> to vector<2x64xf32>
    %28 = arith.mulf %25, %27 : vector<2x64xf32>
    %29 = vector.extract_strided_slice %0 {offsets = [1, 0], sizes = [1, 64], strides = [1, 1]} : vector<7x64xf32> to vector<1x64xf32>
    %30 = vector.broadcast %29 : vector<1x64xf32> to vector<2x64xf32>
    %31 = arith.addf %28, %30 : vector<2x64xf32>
    %cst_13 = arith.constant 0.000000e+00 : f32
    %32 = vector.broadcast %cst_13 : f32 to vector<2x64xf32>
    %33 = arith.maximumf %31, %32 : vector<2x64xf32>
    %c0_14 = arith.constant 0 : index
    %c0_15 = arith.constant 0 : index
    %34 = vector.load %arg4[%c0_14, %c0_15] : memref<64x512xf32, #tpu.memory_space<vmem>>, vector<64x512xf32>
    %cst_16 = arith.constant dense<0.000000e+00> : vector<2x512xf32>
    %35 = tpu.matmul %33, %34, %cst_16 {dimension_numbers = #tpu.dot_dimension_numbers<[1], [0], [0], [1], [0, 0, 1, 1], [], []>} : vector<2x64xf32>, vector<64x512xf32>, vector<2x512xf32> -> vector<2x512xf32>
    %cst_17 = arith.constant dense<0.000000e+00> : vector<512xf32>
    %36 = vector.multi_reduction <add>, %35, %cst_17 [0] : vector<2x512xf32> to vector<512xf32>
    %37 = vector.shape_cast %36 : vector<512xf32> to vector<1x512xf32>
    %38 = arith.mulf %35, %35 : vector<2x512xf32>
    %cst_18 = arith.constant dense<0.000000e+00> : vector<512xf32>
    %39 = vector.multi_reduction <add>, %38, %cst_18 [0] : vector<2x512xf32> to vector<512xf32>
    %40 = vector.shape_cast %39 : vector<512xf32> to vector<1x512xf32>
    %41 = tpu.concatenate %37, %40 in 0 : vector<1x512xf32>, vector<1x512xf32> -> vector<2x512xf32>
    %c0_19 = arith.constant 0 : index
    %c0_20 = arith.constant 0 : index
    %42 = vector.load %arg5[%c0_19, %c0_20] : memref<512x8xf32, #tpu.memory_space<vmem>>, vector<512x8xf32>
    %cst_21 = arith.constant dense<0.000000e+00> : vector<2x8xf32>
    %43 = tpu.matmul %41, %42, %cst_21 {dimension_numbers = #tpu.dot_dimension_numbers<[1], [0], [0], [1], [0, 0, 1, 1], [], []>} : vector<2x512xf32>, vector<512x8xf32>, vector<2x8xf32> -> vector<2x8xf32>
    %44 = vector.extract_strided_slice %43 {offsets = [0, 0], sizes = [1, 8], strides = [1, 1]} : vector<2x8xf32> to vector<1x8xf32>
    %45 = vector.extract_strided_slice %43 {offsets = [1, 0], sizes = [1, 8], strides = [1, 1]} : vector<2x8xf32> to vector<1x8xf32>
    %46 = arith.mulf %44, %44 : vector<1x8xf32>
    %47 = arith.subf %45, %46 : vector<1x8xf32>
    %cst_22 = arith.constant 0.000000e+00 : f32
    %48 = vector.broadcast %cst_22 : f32 to vector<1x8xf32>
    %49 = arith.maximumf %47, %48 : vector<1x8xf32>
    %50 = vector.extract_strided_slice %0 {offsets = [2, 0], sizes = [1, 8], strides = [1, 1]} : vector<7x64xf32> to vector<1x8xf32>
    %51 = vector.extract_strided_slice %0 {offsets = [3, 0], sizes = [1, 8], strides = [1, 1]} : vector<7x64xf32> to vector<1x8xf32>
    %cst_23 = arith.constant 9.99999974E-6 : f32
    %52 = vector.broadcast %cst_23 : f32 to vector<1x8xf32>
    %53 = arith.addf %49, %52 : vector<1x8xf32>
    %54 = math.rsqrt %53 : vector<1x8xf32>
    %55 = arith.mulf %50, %54 : vector<1x8xf32>
    %56 = arith.mulf %44, %55 : vector<1x8xf32>
    %57 = arith.subf %51, %56 : vector<1x8xf32>
    %58 = tpu.concatenate %55, %57 in 0 : vector<1x8xf32>, vector<1x8xf32> -> vector<2x8xf32>
    %c0_24 = arith.constant 0 : index
    %c0_25 = arith.constant 0 : index
    %59 = vector.load %arg6[%c0_24, %c0_25] : memref<8x512xf32, #tpu.memory_space<vmem>>, vector<8x512xf32>
    %cst_26 = arith.constant dense<0.000000e+00> : vector<2x512xf32>
    %60 = tpu.matmul %58, %59, %cst_26 {dimension_numbers = #tpu.dot_dimension_numbers<[1], [0], [0], [1], [0, 0, 1, 1], [], []>} : vector<2x8xf32>, vector<8x512xf32>, vector<2x512xf32> -> vector<2x512xf32>
    %61 = vector.extract_strided_slice %60 {offsets = [0, 0], sizes = [1, 512], strides = [1, 1]} : vector<2x512xf32> to vector<1x512xf32>
    %62 = vector.broadcast %61 : vector<1x512xf32> to vector<2x512xf32>
    %63 = arith.mulf %35, %62 : vector<2x512xf32>
    %64 = vector.extract_strided_slice %60 {offsets = [1, 0], sizes = [1, 512], strides = [1, 1]} : vector<2x512xf32> to vector<1x512xf32>
    %65 = vector.broadcast %64 : vector<1x512xf32> to vector<2x512xf32>
    %66 = arith.addf %63, %65 : vector<2x512xf32>
    %cst_27 = arith.constant 0.000000e+00 : f32
    %67 = vector.broadcast %cst_27 : f32 to vector<2x512xf32>
    %68 = arith.maximumf %66, %67 : vector<2x512xf32>
    %c0_28 = arith.constant 0 : index
    %c0_29 = arith.constant 0 : index
    %69 = vector.load %arg7[%c0_28, %c0_29] : memref<512x1024xf32, #tpu.memory_space<vmem>>, vector<512x1024xf32>
    %cst_30 = arith.constant dense<0.000000e+00> : vector<2x1024xf32>
    %70 = tpu.matmul %68, %69, %cst_30 {dimension_numbers = #tpu.dot_dimension_numbers<[1], [0], [0], [1], [0, 0, 1, 1], [], []>} : vector<2x512xf32>, vector<512x1024xf32>, vector<2x1024xf32> -> vector<2x1024xf32>
    %cst_31 = arith.constant dense<0.000000e+00> : vector<1024xf32>
    %71 = vector.multi_reduction <add>, %70, %cst_31 [0] : vector<2x1024xf32> to vector<1024xf32>
    %72 = vector.shape_cast %71 : vector<1024xf32> to vector<1x1024xf32>
    %73 = arith.mulf %70, %70 : vector<2x1024xf32>
    %cst_32 = arith.constant dense<0.000000e+00> : vector<1024xf32>
    %74 = vector.multi_reduction <add>, %73, %cst_32 [0] : vector<2x1024xf32> to vector<1024xf32>
    %75 = vector.shape_cast %74 : vector<1024xf32> to vector<1x1024xf32>
    %76 = tpu.concatenate %72, %75 in 0 : vector<1x1024xf32>, vector<1x1024xf32> -> vector<2x1024xf32>
    %c0_33 = arith.constant 0 : index
    %c0_34 = arith.constant 0 : index
    %77 = vector.load %arg8[%c0_33, %c0_34] : memref<1024x4xf32, #tpu.memory_space<vmem>>, vector<1024x4xf32>
    %cst_35 = arith.constant dense<0.000000e+00> : vector<2x4xf32>
    %78 = tpu.matmul %76, %77, %cst_35 {dimension_numbers = #tpu.dot_dimension_numbers<[1], [0], [0], [1], [0, 0, 1, 1], [], []>} : vector<2x1024xf32>, vector<1024x4xf32>, vector<2x4xf32> -> vector<2x4xf32>
    %79 = vector.extract_strided_slice %78 {offsets = [0, 0], sizes = [1, 4], strides = [1, 1]} : vector<2x4xf32> to vector<1x4xf32>
    %80 = vector.extract_strided_slice %78 {offsets = [1, 0], sizes = [1, 4], strides = [1, 1]} : vector<2x4xf32> to vector<1x4xf32>
    %81 = arith.mulf %79, %79 : vector<1x4xf32>
    %82 = arith.subf %80, %81 : vector<1x4xf32>
    %cst_36 = arith.constant 0.000000e+00 : f32
    %83 = vector.broadcast %cst_36 : f32 to vector<1x4xf32>
    %84 = arith.maximumf %82, %83 : vector<1x4xf32>
    %85 = vector.extract_strided_slice %0 {offsets = [4, 0], sizes = [1, 4], strides = [1, 1]} : vector<7x64xf32> to vector<1x4xf32>
    %86 = vector.extract_strided_slice %0 {offsets = [5, 0], sizes = [1, 4], strides = [1, 1]} : vector<7x64xf32> to vector<1x4xf32>
    %cst_37 = arith.constant 9.99999974E-6 : f32
    %87 = vector.broadcast %cst_37 : f32 to vector<1x4xf32>
    %88 = arith.addf %84, %87 : vector<1x4xf32>
    %89 = math.rsqrt %88 : vector<1x4xf32>
    %90 = arith.mulf %85, %89 : vector<1x4xf32>
    %91 = arith.mulf %79, %90 : vector<1x4xf32>
    %92 = arith.subf %86, %91 : vector<1x4xf32>
    %93 = tpu.concatenate %90, %92 in 0 : vector<1x4xf32>, vector<1x4xf32> -> vector<2x4xf32>
    %c0_38 = arith.constant 0 : index
    %c0_39 = arith.constant 0 : index
    %94 = vector.load %arg9[%c0_38, %c0_39] : memref<4x1024xf32, #tpu.memory_space<vmem>>, vector<4x1024xf32>
    %cst_40 = arith.constant dense<0.000000e+00> : vector<2x1024xf32>
    %95 = tpu.matmul %93, %94, %cst_40 {dimension_numbers = #tpu.dot_dimension_numbers<[1], [0], [0], [1], [0, 0, 1, 1], [], []>} : vector<2x4xf32>, vector<4x1024xf32>, vector<2x1024xf32> -> vector<2x1024xf32>
    %96 = vector.extract_strided_slice %95 {offsets = [0, 0], sizes = [1, 1024], strides = [1, 1]} : vector<2x1024xf32> to vector<1x1024xf32>
    %97 = vector.broadcast %96 : vector<1x1024xf32> to vector<2x1024xf32>
    %98 = arith.mulf %70, %97 : vector<2x1024xf32>
    %99 = vector.extract_strided_slice %95 {offsets = [1, 0], sizes = [1, 1024], strides = [1, 1]} : vector<2x1024xf32> to vector<1x1024xf32>
    %100 = vector.broadcast %99 : vector<1x1024xf32> to vector<2x1024xf32>
    %101 = arith.addf %98, %100 : vector<2x1024xf32>
    %cst_41 = arith.constant 0.000000e+00 : f32
    %102 = vector.broadcast %cst_41 : f32 to vector<2x1024xf32>
    %103 = arith.maximumf %101, %102 : vector<2x1024xf32>
    %c0_42 = arith.constant 0 : index
    %c0_43 = arith.constant 0 : index
    %104 = vector.load %arg10[%c0_42, %c0_43] : memref<1024x256xf32, #tpu.memory_space<vmem>>, vector<1024x256xf32>
    %cst_44 = arith.constant dense<0.000000e+00> : vector<2x256xf32>
    %105 = tpu.matmul %103, %104, %cst_44 {dimension_numbers = #tpu.dot_dimension_numbers<[1], [0], [0], [1], [0, 0, 1, 1], [], []>} : vector<2x1024xf32>, vector<1024x256xf32>, vector<2x256xf32> -> vector<2x256xf32>
    %106 = vector.extract_strided_slice %0 {offsets = [6, 0], sizes = [1, 1], strides = [1, 1]} : vector<7x64xf32> to vector<1x1xf32>
    %107 = vector.broadcast %106 : vector<1x1xf32> to vector<2x256xf32>
    %108 = arith.addf %105, %107 : vector<2x256xf32>
    %109 = math.tanh %108 : vector<2x256xf32>
    %c0_45 = arith.constant 0 : index
    %c0_46 = arith.constant 0 : index
    %110 = vector.load %arg11[%c0_45, %c0_46] : memref<2x256xf32, #tpu.memory_space<vmem>>, vector<2x256xf32>
    tpu.vector_store %arg11[%c0_45, %c0_46], %109 {strides = array<i32>} : memref<2x256xf32, #tpu.memory_space<vmem>>, vector<2x256xf32>,
    return
  }
}

</mosaic_0001>

<bundles_post_ra>
// kernel: tpu_custom_call.1
= control target key start
LH: loop header
LB: loop body
LE: loop exit
PB: predicated region body
PF: predicated region fallthrough
CT: control target
= control target key end

     0   :  { %16 = vsyncpa [#allocation3], 0  ;;  %s6061_s0 = inlined_call_operand.hbm [shape: f32[2,4], index: 0, kind: input, shape index: {}]   ;;  %s6062_s1 = inlined_call_operand.hbm [shape: f32[2,4], index: 1, kind: input, shape index: {}]   ;;  %s6063_s2 = inlined_call_operand.hbm [shape: f32[8,64], index: 2, kind: input, shape index: {}]   ;;  %s6064_s3 = inlined_call_operand.hbm [shape: f32[7,64], index: 3, kind: input, shape index: {}]   ;;  %s6065_s4 = inlined_call_operand.hbm [shape: f32[64,512], index: 4, kind: input, shape index: {}]   ;;  %s6066_s5 = inlined_call_operand.vmem [shape: f32[512,8], index: 5, kind: input, shape index: {}]   ;;  %s6067_s6 = inlined_call_operand.hbm [shape: f32[8,512], index: 6, kind: input, shape index: {}]   ;;  %s6068_s7 = inlined_call_operand.hbm [shape: f32[512,1024], index: 7, kind: input, shape index: {}]   ;;  %s6069_s8 = inlined_call_operand.vmem [shape: f32[1024,4], index: 8, kind: input, shape index: {}]   ;;  %s6070_s9 = inlined_call_operand.hbm [shape: f32[4,1024], index: 9, kind: input, shape index: {}]   ;;  %s6071_s10 = inlined_call_operand.hbm [shape: f32[1024,256], index: 10, kind: input, shape index: {}]   ;;  %s6072_s11 = inlined_call_operand.hbm [shape: f32[2,256], index: 11, kind: output, shape index: {}]  }
   0x1   :  { %17 = vsyncpa [#allocation6], 0 }
   0x2   :  { %18 = vsyncpa [#allocation9], 0 }
   0x3   :  { %19 = vsyncpa [#allocation12], 0 }
   0x4   :  { %20 = vsyncpa [#allocation15], 0 }
   0x5   :  { %21 = vsyncpa [#allocation4], 0  ;;  %s5067_s17 = smov [#allocation5]   ;;  %s5068_s19 = smov [#allocation8]  }
   0x6   :  { %s38_s18 = sshll.u32 %s5067_s17, 4  ;;  %s58_s20 = sshll.u32 %s5068_s19, 4  ;;  %s39_s18 = int_to_ptr.vmem [resolvable:$true] %s38_s18  ;;  %s59_s20 = int_to_ptr.vmem [resolvable:$true] %s58_s20 }
   0x7   :  { %s4835_s23 = scalar_lea.hbm %s6062_s1, 32 }
   0x8   :  { %p4836_p0 = scmp.ne.s32.totalorder %s6062_s1, %s4835_s23  ;;  %p4839_p1 = scmp.lt.u32.totalorder %s4835_s23, %s6062_s1 }
   0xa   :  { %p4841_p2 = pnand %p4839_p1, %p4836_p0 }
   0xc   :  { %4844 = shalt.err (!%p4841_p2)
}
   0xd   :  { %s4845_s28 = scalar_lea.vmem %s39_s18, 32  ;;  %p4850_p4 = scmp.lt.s32.totalorder %s39_s18, %s39_s18 }
   0xe   :  { %p4846_p3 = scmp.ne.s32.totalorder %s39_s18, %s4845_s28  ;;  %p4851_p5 = scmp.lt.s32.totalorder %s4845_s28, %s4845_s28 }
  0x10   :  { %p4852_p6 = por %p4851_p5, %p4850_p4 }
  0x12   :  { %p4853_p7 = pnand %p4852_p6, %p4846_p3 }
  0x14   :  { %4856 = shalt.err (!%p4853_p7)
}
  0x15   :  { %41 = dma.hbm_to_vmem [thread:$0]  %s6062_s1, 32, %s39_s18, [#allocation6]  }
  0x16   :  { %s4857_s14 = scalar_lea.hbm %s6064_s3, 128 }
  0x17   :  { %p4858_p8 = scmp.ne.s32.totalorder %s6064_s3, %s4857_s14  ;;  %p4861_p9 = scmp.lt.u32.totalorder %s4857_s14, %s6064_s3 }
  0x19   :  { %p4863_p10 = pnand %p4861_p9, %p4858_p8 }
  0x1b   :  { %4866 = shalt.err (!%p4863_p10)
}
  0x1c   :  { %s4867_s21 = scalar_lea.vmem %s59_s20, 128  ;;  %p4872_p12 = scmp.lt.s32.totalorder %s59_s20, %s59_s20 }
  0x1d   :  { %p4868_p11 = scmp.ne.s32.totalorder %s59_s20, %s4867_s21  ;;  %p4873_p13 = scmp.lt.s32.totalorder %s4867_s21, %s4867_s21 }
  0x1f   :  { %p4874_p0 = por %p4873_p13, %p4872_p12 }
  0x21   :  { %p4875_p1 = pnand %p4874_p0, %p4868_p11 }
  0x23   :  { %4878 = shalt.err (!%p4875_p1)
}
  0x24   :  { %61 = dma.hbm_to_vmem [thread:$0]  %s6064_s3, 128, %s59_s20, [#allocation9]  }
  0x25   :  { %s5069_s22 = smov [#allocation11]   ;;  %s5070_s24 = smov [#allocation14]  }
  0x26   :  { %s82_s23 = sshll.u32 %s5069_s22, 4  ;;  %s106_s25 = sshll.u32 %s5070_s24, 4  ;;  %s83_s23 = int_to_ptr.vmem [resolvable:$true] %s82_s23  ;;  %s107_s25 = int_to_ptr.vmem [resolvable:$true] %s106_s25 }
  0x27   :  { %s4879_s28 = scalar_lea.hbm %s6067_s6, 512 }
  0x28   :  { %p4880_p2 = scmp.ne.s32.totalorder %s6067_s6, %s4879_s28  ;;  %p4883_p3 = scmp.lt.u32.totalorder %s4879_s28, %s6067_s6 }
  0x2a   :  { %p4885_p4 = pnand %p4883_p3, %p4880_p2 }
  0x2c   :  { %4888 = shalt.err (!%p4885_p4)
}
  0x2d   :  { %s4889_s3 = scalar_lea.vmem %s83_s23, 512  ;;  %p4894_p6 = scmp.lt.s32.totalorder %s83_s23, %s83_s23 }
  0x2e   :  { %p4890_p5 = scmp.ne.s32.totalorder %s83_s23, %s4889_s3  ;;  %p4895_p7 = scmp.lt.s32.totalorder %s4889_s3, %s4889_s3 }
  0x30   :  { %p4896_p8 = por %p4895_p7, %p4894_p6 }
  0x32   :  { %p4897_p9 = pnand %p4896_p8, %p4890_p5 }
  0x34   :  { %4900 = shalt.err (!%p4897_p9)
}
  0x35   :  { %85 = dma.hbm_to_vmem [thread:$0]  %s6067_s6, 512, %s83_s23, [#allocation12]  }
  0x36   :  { %s4901_s17 = scalar_lea.hbm %s6070_s9, 512 }
  0x37   :  { %p4902_p10 = scmp.ne.s32.totalorder %s6070_s9, %s4901_s17  ;;  %p4905_p11 = scmp.lt.u32.totalorder %s4901_s17, %s6070_s9 }
  0x39   :  { %p4907_p12 = pnand %p4905_p11, %p4902_p10 }
  0x3b   :  { %4910 = shalt.err (!%p4907_p12)
}
  0x3c   :  { %s4911_s22 = scalar_lea.vmem %s107_s25, 512  ;;  %p4916_p0 = scmp.lt.s32.totalorder %s107_s25, %s107_s25 }
  0x3d   :  { %p4912_p13 = scmp.ne.s32.totalorder %s107_s25, %s4911_s22  ;;  %p4917_p1 = scmp.lt.s32.totalorder %s4911_s22, %s4911_s22 }
  0x3f   :  { %p4918_p2 = por %p4917_p1, %p4916_p0 }
  0x41   :  { %p4919_p3 = pnand %p4918_p2, %p4912_p13 }
  0x43   :  { %4922 = shalt.err (!%p4919_p3)
}
  0x44   :  { %109 = dma.hbm_to_vmem [thread:$0]  %s6070_s9, 512, %s107_s25, [#allocation15]  }
  0x45   :  { %s5071_s24 = smov [#allocation2]   ;;  %s5072_s27 = smov [#allocation7]  }
  0x46   :  { %s28_s26 = sshll.u32 %s5071_s24, 4  ;;  %s48_s28 = sshll.u32 %s5072_s27, 4  ;;  %s29_s26 = int_to_ptr.vmem [resolvable:$true] %s28_s26  ;;  %s49_s28 = int_to_ptr.vmem [resolvable:$true] %s48_s28 }
  0x47   :  { %s4923_s12 = scalar_lea.hbm %s6061_s0, 32 }
  0x48   :  { %p4924_p4 = scmp.ne.s32.totalorder %s6061_s0, %s4923_s12  ;;  %p4927_p5 = scmp.lt.u32.totalorder %s4923_s12, %s6061_s0 }
  0x4a   :  { %p4929_p6 = pnand %p4927_p5, %p4924_p4 }
  0x4c   :  { %4932 = shalt.err (!%p4929_p6)
}
  0x4d   :  { %s4933_s9 = scalar_lea.vmem %s29_s26, 32  ;;  %p4938_p8 = scmp.lt.s32.totalorder %s29_s26, %s29_s26 }
  0x4e   :  { %p4934_p7 = scmp.ne.s32.totalorder %s29_s26, %s4933_s9  ;;  %p4939_p9 = scmp.lt.s32.totalorder %s4933_s9, %s4933_s9 }
  0x50   :  { %p4940_p10 = por %p4939_p9, %p4938_p8 }
  0x52   :  { %p4941_p11 = pnand %p4940_p10, %p4934_p7 }
  0x54   :  { %4944 = shalt.err (!%p4941_p11)
}
  0x55   :  { %31 = dma.hbm_to_vmem [thread:$0]  %s6061_s0, 32, %s29_s26, [#allocation3]  }
  0x56   :  { %s4945_s19 = scalar_lea.hbm %s6063_s2, 128 }
  0x57   :  { %p4946_p12 = scmp.ne.s32.totalorder %s6063_s2, %s4945_s19  ;;  %p4949_p13 = scmp.lt.u32.totalorder %s4945_s19, %s6063_s2 }
  0x59   :  { %p4951_p0 = pnand %p4949_p13, %p4946_p12 }
  0x5b   :  { %4954 = shalt.err (!%p4951_p0)
}
  0x5c   :  { %s4955_s6 = scalar_lea.vmem %s49_s28, 128  ;;  %p4960_p2 = scmp.lt.s32.totalorder %s49_s28, %s49_s28 }
  0x5d   :  { %p4956_p1 = scmp.ne.s32.totalorder %s49_s28, %s4955_s6  ;;  %p4961_p3 = scmp.lt.s32.totalorder %s4955_s6, %s4955_s6 }
  0x5f   :  { %p4962_p4 = por %p4961_p3, %p4960_p2 }
  0x61   :  { %p4963_p5 = pnand %p4962_p4, %p4956_p1 }
  0x63   :  { %4966 = shalt.err (!%p4963_p5)
}
  0x64   :  { %51 = dma.hbm_to_vmem [thread:$0]  %s6063_s2, 128, %s49_s28, [#allocation6]  }
  0x65   :  { %s5073_s24 = smov [#allocation10]   ;;  %s4967_s30 = scalar_lea.hbm %s6065_s4, 4096 }
  0x66   :  { %s67_s26 = sshll.u32 %s5073_s24, 4  ;;  %p4968_p6 = scmp.ne.s32.totalorder %s6065_s4, %s4967_s30  ;;  %s68_s26 = int_to_ptr.vmem [resolvable:$true] %s67_s26 }
  0x67   :  { %p4971_p7 = scmp.lt.u32.totalorder %s4967_s30, %s6065_s4 }
  0x69   :  { %p4973_p8 = pnand %p4971_p7, %p4968_p6 }
  0x6b   :  { %4976 = shalt.err (!%p4973_p8)
}
  0x6c   :  { %s4977_s14 = scalar_lea.vmem %s68_s26, 4096  ;;  %p4982_p10 = scmp.lt.s32.totalorder %s68_s26, %s68_s26 }
  0x6d   :  { %p4978_p9 = scmp.ne.s32.totalorder %s68_s26, %s4977_s14  ;;  %p4983_p11 = scmp.lt.s32.totalorder %s4977_s14, %s4977_s14 }
  0x6f   :  { %p4984_p12 = por %p4983_p11, %p4982_p10 }
  0x71   :  { %p4985_p13 = pnand %p4984_p12, %p4978_p9 }
  0x73   :  { %4988 = shalt.err (!%p4985_p13)
}
  0x74   :  { %s5074_s2 = smov 512   ;;  %s5075_s28 = smov 32  }
  0x75   :  { %73 = dma.hbm_to_vmem [thread:$0]  %s6065_s4, 4096, %s68_s26, [#allocation9], %s5074_s2, %s5074_s2, %s5075_s28  }
  0x76   :  { %s5076_s15 = smov [#allocation13]   ;;  %s4989_s21 = scalar_lea.hbm %s6068_s7, 65536 }
  0x77   :  { %s91_s16 = sshll.u32 %s5076_s15, 4  ;;  %p4990_p0 = scmp.ne.s32.totalorder %s6068_s7, %s4989_s21  ;;  %s92_s16 = int_to_ptr.vmem [resolvable:$true] %s91_s16 }
  0x78   :  { %p4993_p1 = scmp.lt.u32.totalorder %s4989_s21, %s6068_s7 }
  0x7a   :  { %p4995_p2 = pnand %p4993_p1, %p4990_p0 }
  0x7c   :  { %4998 = shalt.err (!%p4995_p2)
}
  0x7d   :  { %s4999_s0 = scalar_lea.vmem %s92_s16, 65536  ;;  %p5004_p4 = scmp.lt.s32.totalorder %s92_s16, %s92_s16 }
  0x7e   :  { %p5000_p3 = scmp.ne.s32.totalorder %s92_s16, %s4999_s0  ;;  %p5005_p5 = scmp.lt.s32.totalorder %s4999_s0, %s4999_s0 }
  0x80   :  { %p5006_p6 = por %p5005_p5, %p5004_p4 }
  0x82   :  { %p5007_p7 = pnand %p5006_p6, %p5000_p3 }
  0x84   :  { %5010 = shalt.err (!%p5007_p7)
}
  0x85   :  { %s5077_s4 = smov 1024   ;;  %s5078_s23 = smov 64  }
  0x86   :  { %97 = dma.hbm_to_vmem [thread:$0]  %s6068_s7, 65536, %s92_s16, [#allocation12], %s5077_s4, %s5077_s4, %s5078_s23  }
  0x87   :  { %s5079_s27 = smov [#allocation16]   ;;  %s5011_s13 = scalar_lea.hbm %s6071_s10, 32768 }
  0x88   :  { %s115_s29 = sshll.u32 %s5079_s27, 4  ;;  %p5012_p8 = scmp.ne.s32.totalorder %s6071_s10, %s5011_s13  ;;  %s116_s29 = int_to_ptr.vmem [resolvable:$true] %s115_s29 }
  0x89   :  { %p5015_p9 = scmp.lt.u32.totalorder %s5011_s13, %s6071_s10 }
  0x8b   :  { %p5017_p10 = pnand %p5015_p9, %p5012_p8 }
  0x8d   :  { %5020 = shalt.err (!%p5017_p10)
}
  0x8e   :  { %s5021_s28 = scalar_lea.vmem %s116_s29, 32768  ;;  %p5026_p12 = scmp.lt.s32.totalorder %s116_s29, %s116_s29 }
  0x8f   :  { %p5022_p11 = scmp.ne.s32.totalorder %s116_s29, %s5021_s28  ;;  %p5027_p13 = scmp.lt.s32.totalorder %s5021_s28, %s5021_s28 }
  0x91   :  { %p5028_p0 = por %p5027_p13, %p5026_p12 }
  0x93   :  { %p5029_p1 = pnand %p5028_p0, %p5022_p11 }
  0x95   :  { %5032 = shalt.err (!%p5029_p1)
}
  0x96   :  { %s5080_s7 = smov 256   ;;  %s5081_s9 = smov 16  }
  0x97   :  { %121 = dma.hbm_to_vmem [thread:$0]  %s6071_s10, 32768, %s116_s29, [#allocation15], %s5080_s7, %s5080_s7, %s5081_s9  }
  0x98   :  { %5055 = dma.done.wait [#allocation3], 32  }
  0x99   :  { %5056 = vsyncadd [#allocation3], 4294967264 }
  0x9a   :  { %5057 = dma.done.wait [#allocation6], 160  }
  0x9b   :  { %5058 = vsyncadd [#allocation6], 4294967136 }
  0x9c   :  { %5059 = dma.done.wait [#allocation9], 4224  }
  0x9d   :  { %5060 = vsyncadd [#allocation9], 4294963072 }
  0x9e   :  { %5061 = dma.done.wait [#allocation12], 66048  }
  0x9f   :  { %5062 = vsyncadd [#allocation12], 4294901248 }
  0xa0   :  { %5063 = dma.done.wait [#allocation15], 33280  }
  0xa1   :  { %5064 = vsyncadd [#allocation15], 4294934016  ;;  %v5082_v0 = vmov 0.0   ;;  %vm5083_vm0 = vmmov 0   ;;  %v151_v1 = vld [vmem:[#allocation5] sm:$0x3] }
  0xa2   :  { %3786 = vmatprep.subr.mxu0 %v5082_v0  ;;  %3788 = vmatprep.mubr.msk.f32.mxu0 %vm5083_vm0, %v5082_v0  ;;  %v158_v2 = vld [vmem:[#allocation7] sm:$0xff]  ;;  %s5084_s10 = smov 4   ;;  %v150_v3 = vld [vmem:[#allocation2] sm:$0x3]  ;;  %vm156_vm1 = vcmask 31744   ;;  %vm159_vm2 = vcmask 64512  }
  0xa3   :  { %369 = vmatprep.mubr.f32.mxu1 %v5082_v0  ;;  %153 = vrot.lane.b32.xlu0 %v151_v1, %s5084_s10  ;;  %v270_v6 = vld [vmem:[#allocation10 + $0x8] sm:$0xff]  ;;  %v272_v8 = vld [vmem:[#allocation10 + $0x18] sm:$0xff]  ;;  %v269_v11 = vld [vmem:[#allocation10] sm:$0xff]  ;;  %vm233_vm3 = vcmask 517120   ;;  %vm301_vm4 = vcmask 523264   ;;  %vm447_vm5 = vcmask 1041408  }
  0xa4   :  { %3787 = vmatpush3.msra.mxu0 %v158_v2  ;;  %v274_v7 = vld [vmem:[#allocation10 + $0x28] sm:$0xff]  ;;  %v276_v10 = vld [vmem:[#allocation10 + $0x38] sm:$0xff]  ;;  %v273_v12 = vld [vmem:[#allocation10 + $0x20] sm:$0xff]  ;;  %vm508_vm6 = vcmask 1040384   ;;  %vm2589_vm7 = vcmask 1043456   ;;  %s5085_s24 = smov [#allocation17]  }
  0xa5   :  { %v3791_v9 = vpack.c.bf16 %v274_v7, %v270_v6  ;;  %v3807_v13 = vpack.c.bf16 %v276_v10, %v272_v8  ;;  %v3793_v14 = vpack.c.bf16 %v273_v12, %v269_v11  ;;  %v271_v15 = vld [vmem:[#allocation10 + $0x10] sm:$0xff]  ;;  %v278_v18 = vld [vmem:[#allocation10 + $0x48] sm:$0xff]  ;;  %v280_v20 = vld [vmem:[#allocation10 + $0x58] sm:$0xff]  ;;  %s3543_s26 = sshll.u32 %s5085_s24, 4  ;;  %s3544_s26 = int_to_ptr.vmem [resolvable:$true] %s3543_s26 }
  0xa6   :  { %v275_v16 = vld [vmem:[#allocation10 + $0x30] sm:$0xff]  ;;  %v282_v19 = vld [vmem:[#allocation10 + $0x68] sm:$0xff]  ;;  %v284_v22 = vld [vmem:[#allocation10 + $0x78] sm:$0xff]  ;;  %s5033_s27 = scalar_lea.vmem %s3544_s26, 64  ;;  %p5038_p3 = scmp.lt.s32.totalorder %s3544_s26, %s3544_s26 }
  0xa7   :  { %3792 = vmatprep.subr.bf16.mxu1 %v3791_v9  ;;  %v3809_v17 = vpack.c.bf16 %v275_v16, %v271_v15  ;;  %3808 = vmatprep.subr.bf16.mxu0 %v3807_v13  ;;  %v3795_v21 = vpack.c.bf16 %v282_v19, %v278_v18  ;;  %v277_v23 = vld [vmem:[#allocation10 + $0x40] sm:$0xff]  ;;  %v3811_v25 = vpack.c.bf16 %v284_v22, %v280_v20  ;;  %v279_v27 = vld [vmem:[#allocation10 + $0x50] sm:$0xff]  ;;  %v286_v30 = vld [vmem:[#allocation10 + $0x88] sm:$0xff]  ;;  %v258_v19 = vlaneseq  ;;  %p5034_p2 = scmp.ne.s32.totalorder %s3544_s26, %s5033_s27  ;;  %p5039_p4 = scmp.lt.s32.totalorder %s5033_s27, %s5033_s27 }
  0xa8   :  { %3794 = vmatpush1.bf16.msra.mxu1 %v3793_v14  ;;  %v281_v24 = vld [vmem:[#allocation10 + $0x60] sm:$0xff]  ;;  %v283_v28 = vld [vmem:[#allocation10 + $0x70] sm:$0xff]  ;;  %v290_v31 = vld [vmem:[#allocation10 + $0xa8] sm:$0xff] }
  0xa9   :  { %v3797_v26 = vpack.c.bf16 %v281_v24, %v277_v23  ;;  %3796 = vmatprep.subr.bf16.mxu1 %v3795_v21  ;;  %v3813_v29 = vpack.c.bf16 %v283_v28, %v279_v27  ;;  %v288_v32 = vld [vmem:[#allocation10 + $0x98] sm:$0xff]  ;;  %v3799_v33 = vpack.c.bf16 %v290_v31, %v286_v30  ;;  %v285_v35 = vld [vmem:[#allocation10 + $0x80] sm:$0xff]  ;;  %v287_v39 = vld [vmem:[#allocation10 + $0x90] sm:$0xff]  ;;  %v259_v21 = vshrl.u32 %v258_v19, 7  ;;  %p5040_p5 = por %p5039_p4, %p5038_p3 }
  0xaa   :  { %v292_v34 = vld [vmem:[#allocation10 + $0xb8] sm:$0xff]  ;;  %v289_v36 = vld [vmem:[#allocation10 + $0xa0] sm:$0xff]  ;;  %v291_v40 = vld [vmem:[#allocation10 + $0xb0] sm:$0xff] }
  0xab   :  { %v3815_v37 = vpack.c.bf16 %v292_v34, %v288_v32  ;;  %v3801_v38 = vpack.c.bf16 %v289_v36, %v285_v35  ;;  %v3817_v41 = vpack.c.bf16 %v291_v40, %v287_v39  ;;  %v294_v42 = vld [vmem:[#allocation10 + $0xc8] sm:$0xff]  ;;  %v296_v44 = vld [vmem:[#allocation10 + $0xd8] sm:$0xff]  ;;  %v293_v47 = vld [vmem:[#allocation10 + $0xc0] sm:$0xff]  ;;  %v5272_v22 = vsub.s32 0, %v259_v21  ;;  %p5041_p6 = pnand %p5040_p5, %p5034_p2 }
  0xac   :  { %3798 = vmatpush1.bf16.msra.mxu1 %v3797_v26  ;;  %v298_v43 = vld [vmem:[#allocation10 + $0xe8] sm:$0xff]  ;;  %v300_v46 = vld [vmem:[#allocation10 + $0xf8] sm:$0xff]  ;;  %v297_v48 = vld [vmem:[#allocation10 + $0xe0] sm:$0xff]  ;;  %v5276_v24 = vsub.s32 1, %v259_v21 }
  0xad   :  { %3800 = vmatprep.subr.bf16.mxu1 %v3799_v33  ;;  %v3803_v45 = vpack.c.bf16 %v298_v43, %v294_v42  ;;  %v3819_v49 = vpack.c.bf16 %v300_v46, %v296_v44  ;;  %v3805_v50 = vpack.c.bf16 %v297_v48, %v293_v47  ;;  %v295_v51 = vld [vmem:[#allocation10 + $0xd0] sm:$0xff]  ;;  %v5274_v23 = vld [vmem:[#allocation8] sm:$0x7f]  ;;  %v532_v36 = vld [vmem:[%s6066_s5 + $0x98] sm:$0xff] }
  0xae   :  { %v299_v52 = vld [vmem:[#allocation10 + $0xf0] sm:$0xff]  ;;  %v261_v26 = vrot.slane %v5274_v23, %v5272_v22  ;;  %v531_v35 = vld [vmem:[%s6066_s5 + $0x90] sm:$0xff]  ;;  %v516_v43 = vld [vmem:[%s6066_s5 + $0x18] sm:$0xff] }
  0xaf   :  { %v3821_v53 = vpack.c.bf16 %v299_v52, %v295_v51  ;;  %v529_v54 = vld [vmem:[%s6066_s5 + $0x80] sm:$0xff]  ;;  %v530_v55 = vld [vmem:[%s6066_s5 + $0x88] sm:$0xff]  ;;  %v515_v42 = vld [vmem:[%s6066_s5 + $0x10] sm:$0xff] }
  0xb0   :  { %3802 = vmatpush1.bf16.msra.mxu1 %v3801_v38  ;;  %v561_v56 = vld [vmem:[%s6066_s5 + $0x180] sm:$0xff]  ;;  %v3823_v57 = vpack.c.bf16 %v530_v55, %v529_v54  ;;  %v562_v58 = vld [vmem:[%s6066_s5 + $0x188] sm:$0xff]  ;;  %v564_v38 = vld [vmem:[%s6066_s5 + $0x198] sm:$0xff] }
  0xb1   :  { %3804 = vmatprep.subr.bf16.mxu1 %v3803_v45  ;;  %v3855_v59 = vpack.c.bf16 %v562_v58, %v561_v56  ;;  %v513_v30 = vld [vmem:[%s6066_s5] sm:$0xff]  ;;  %v514_v31 = vld [vmem:[%s6066_s5 + $0x8] sm:$0xff]  ;;  %v3827_v45 = vpack.c.bf16 %v532_v36, %v531_v35  ;;  %v547_v47 = vld [vmem:[%s6066_s5 + $0x110] sm:$0xff] }
  0xb2   :  { %v545_v33 = vld [vmem:[%s6066_s5 + $0x100] sm:$0xff]  ;;  %v546_v34 = vld [vmem:[%s6066_s5 + $0x108] sm:$0xff]  ;;  %v3825_v40 = vpack.c.bf16 %v514_v31, %v513_v30  ;;  %v548_v48 = vld [vmem:[%s6066_s5 + $0x118] sm:$0xff] }
  0xb3   :  { %v565_v51 = vld [vmem:[%s6066_s5 + $0x1a0] sm:$0xff]  ;;  %v566_v52 = vld [vmem:[%s6066_s5 + $0x1a8] sm:$0xff]  ;;  %v3861_v54 = vpack.c.bf16 %v548_v48, %v547_v47  ;;  %v572_v31 = vld [vmem:[%s6066_s5 + $0x1d8] sm:$0xff] }
  0xb4   :  { %3806 = vmatpush1.bf16.msra.mxu1 %v3805_v50  ;;  %v534_v50 = vld [vmem:[%s6066_s5 + $0xa8] sm:$0xff]  ;;  %v517_v55 = vld [vmem:[%s6066_s5 + $0x20] sm:$0xff]  ;;  %v3863_v58 = vpack.c.bf16 %v566_v52, %v565_v51  ;;  %v555_v36 = vld [vmem:[%s6066_s5 + $0x150] sm:$0xff] }
  0xb5   :  { %3824 = vmatprep.subr.bf16.mxu1 %v3823_v57  ;;  %v518_v56 = vld [vmem:[%s6066_s5 + $0x28] sm:$0xff]  ;;  %v553_v21 = vld [vmem:[%s6066_s5 + $0x140] sm:$0xff]  ;;  %v544_v52 = vld [vmem:[%s6066_s5 + $0xf8] sm:$0xff] }
  0xb6   :  { %v557_v48 = vld [vmem:[%s6066_s5 + $0x160] sm:$0xff] }
 0x115   :  { %v154_v4 = vpop.permute.xlu0 %153 }
 0x116   :  { %v157_v5 = vsel %vm156_vm1, %v150_v3, %v154_v4 }
 0x117   :  { %3789 = vmatmul.mubr.msk.f32.vlgmr.msra.gmra.mrb[0].mxu0 %vm159_vm2, %v157_v5 }
 0x118   :  { %440 = vmatprep.mubr.f32.mxu0 %v5082_v0  ;;  %3810 = vmatpush1.bf16.msra.mxu0 %v3809_v17 }
 0x119   :  { %3812 = vmatprep.subr.bf16.mxu0 %v3811_v25 }
 0x11c   :  { %3814 = vmatpush1.bf16.msra.mxu0 %v3813_v29  ;;  %v266_v29 = vrot.slane %v5274_v23, %v5276_v24 }
 0x11d   :  { %3816 = vmatprep.subr.bf16.mxu0 %v3815_v37  ;;  %v563_v37 = vld [vmem:[%s6066_s5 + $0x190] sm:$0xff] }
 0x11e   :  { %v3859_v46 = vpack.c.bf16 %v564_v38, %v563_v37  ;;  %v556_v37 = vld [vmem:[%s6066_s5 + $0x158] sm:$0xff] }
 0x11f   :  { %v3877_v38 = vpack.c.bf16 %v556_v37, %v555_v36 }
 0x120   :  { %3818 = vmatpush1.bf16.msra.mxu0 %v3817_v41  ;;  %v3857_v41 = vpack.c.bf16 %v546_v34, %v545_v33  ;;  %v524_v33 = vld [vmem:[%s6066_s5 + $0x58] sm:$0xff] }
 0x121   :  { %3820 = vmatprep.subr.bf16.mxu0 %v3819_v49  ;;  %v533_v49 = vld [vmem:[%s6066_s5 + $0xa0] sm:$0xff] }
 0x122   :  { %v3831_v57 = vpack.c.bf16 %v534_v50, %v533_v49  ;;  %v558_v49 = vld [vmem:[%s6066_s5 + $0x168] sm:$0xff]  ;;  %v543_v50 = vld [vmem:[%s6066_s5 + $0xf0] sm:$0xff] }
 0x123   :  { %v3881_v51 = vpack.c.bf16 %v558_v49, %v557_v48 }
 0x124   :  { %3822 = vmatpush1.bf16.msra.mxu0 %v3821_v53  ;;  %v3829_v53 = vpack.c.bf16 %v516_v43, %v515_v42  ;;  %v574_v43 = vld [vmem:[%s6066_s5 + $0x1e8] sm:$0xff] }
 0x125   :  { %3856 = vmatprep.subr.bf16.mxu0 %v3855_v59  ;;  %v549_v59 = vld [vmem:[%s6066_s5 + $0x120] sm:$0xff] }
 0x1ea   :  { %v229_v60 = vpop.f32.mrb[0].mxu0 }
 0x1eb   :  { %v234_v61 = vsel %vm233_vm3, %v229_v60, 0.0  ;;  %v242_v62 = vmul.f32 %v229_v60, %v229_v60  ;;  %v3790_v63 = vpop.f32.mrb[1].mxu0 }
 0x1ec   :  { %v235_v1 = vrot.slane %v234_v61, 4  ;;  %v567_v63 = vld [vmem:[%s6066_s5 + $0x1b0] sm:$0xff] }
 0x1ed   :  { %v243_v2 = vsel %vm233_vm3, %v242_v62, 0.0  ;;  %v536_v62 = vld [vmem:[%s6066_s5 + $0xb8] sm:$0xff] }
 0x1ee   :  { %v236_v3 = vadd.f32 %v235_v1, %v234_v61  ;;  %v244_v4 = vrot.slane %v243_v2, 4  ;;  %v535_v61 = vld [vmem:[%s6066_s5 + $0xb0] sm:$0xff]  ;;  %v568_v1 = vld [vmem:[%s6066_s5 + $0x1b8] sm:$0xff] }
 0x1f0   :  { %v237_v5 = vrot.slane %v236_v3, 2  ;;  %v245_v6 = vadd.f32 %v244_v4, %v243_v2  ;;  %v3833_v2 = vpack.c.bf16 %v518_v56, %v517_v55  ;;  %v3835_v4 = vpack.c.bf16 %v536_v62, %v535_v61  ;;  %v560_v61 = vld [vmem:[%s6066_s5 + $0x178] sm:$0xff] }
 0x1f1   :  { %v3851_v55 = vpack.c.bf16 %v544_v52, %v543_v50 }
 0x1f2   :  { %v238_v7 = vadd.f32 %v237_v5, %v236_v3  ;;  %v246_v8 = vrot.slane %v245_v6, 2  ;;  %v3867_v5 = vpack.c.bf16 %v568_v1, %v567_v63 }
 0x1f4   :  { %v239_v9 = vrot.slane %v238_v7, 1  ;;  %v247_v10 = vadd.f32 %v246_v8, %v245_v6  ;;  %v519_v6 = vld [vmem:[%s6066_s5 + $0x30] sm:$0xff] }
 0x1f5   :  { %v551_v8 = vld [vmem:[%s6066_s5 + $0x130] sm:$0xff] }
 0x1f6   :  { %v240_v11 = vadd.f32 %v239_v9, %v238_v7  ;;  %v248_v12 = vrot.slane %v247_v10, 1  ;;  %v520_v7 = vld [vmem:[%s6066_s5 + $0x38] sm:$0xff] }
 0x1f7   :  { %v3837_v9 = vpack.c.bf16 %v520_v7, %v519_v6 }
 0x1f8   :  { %v241_v13 = vmul.f32 0.5, %v240_v11  ;;  %v249_v14 = vadd.f32 %v248_v12, %v247_v10  ;;  %v552_v10 = vld [vmem:[%s6066_s5 + $0x138] sm:$0xff]  ;;  %v537_v12 = vld [vmem:[%s6066_s5 + $0xc0] sm:$0xff] }
 0x1f9   :  { %v3869_v11 = vpack.c.bf16 %v552_v10, %v551_v8 }
 0x1fa   :  { %v250_v15 = vmul.f32 0.5, %v249_v14  ;;  %v251_v16 = vmul.f32 %v241_v13, %v241_v13  ;;  %v254_v25 = vsub.f32 %v229_v60, %v241_v13  ;;  %v550_v60 = vld [vmem:[%s6066_s5 + $0x128] sm:$0xff]  ;;  %v569_v14 = vld [vmem:[%s6066_s5 + $0x1c0] sm:$0xff] }
 0x1fb   :  { %v3865_v3 = vpack.c.bf16 %v550_v60, %v549_v59  ;;  %v538_v13 = vld [vmem:[%s6066_s5 + $0xc8] sm:$0xff]  ;;  %v559_v59 = vld [vmem:[%s6066_s5 + $0x170] sm:$0xff] }
 0x1fc   :  { %v252_v17 = vsub.f32 %v250_v15, %v251_v16  ;;  %v3839_v15 = vpack.c.bf16 %v538_v13, %v537_v12  ;;  %v570_v16 = vld [vmem:[%s6066_s5 + $0x1c8] sm:$0xff]  ;;  %v3885_v62 = vpack.c.bf16 %v560_v61, %v559_v59 }
 0x1fd   :  { %v3871_v19 = vpack.c.bf16 %v570_v16, %v569_v14 }
 0x1fe   :  { %v253_v18 = vmax.f32 %v252_v17, 0.0  ;;  %v521_v17 = vld [vmem:[%s6066_s5 + $0x40] sm:$0xff] }
 0x200   :  { %v255_v20 = vadd.f32 1e-05, %v253_v18  ;;  %v522_v18 = vld [vmem:[%s6066_s5 + $0x48] sm:$0xff] }
 0x202   :  { %4824 = vrsqrt.f32 %v255_v20  ;;  %v3841_v20 = vpack.c.bf16 %v522_v18, %v521_v17 }
 0x20c   :  { %v4825_v27 = vpop.eup %4824 }
 0x20d   :  { %v257_v28 = vmul.f32 %v4825_v27, %v254_v25  ;;  %v554_v25 = vld [vmem:[%s6066_s5 + $0x148] sm:$0xff]  ;;  %v539_v27 = vld [vmem:[%s6066_s5 + $0xd0] sm:$0xff] }
 0x20f   :  { %v262_v32 = vmul.f32 %v261_v26, %v257_v28  ;;  %v3873_v26 = vpack.c.bf16 %v554_v25, %v553_v21  ;;  %v540_v28 = vld [vmem:[%s6066_s5 + $0xd8] sm:$0xff] }
 0x210   :  { %v3843_v30 = vpack.c.bf16 %v540_v28, %v539_v27 }
 0x211   :  { %v267_v39 = vadd.f32 %v266_v29, %v262_v32  ;;  %v571_v29 = vld [vmem:[%s6066_s5 + $0x1d0] sm:$0xff] }
 0x212   :  { %v523_v32 = vld [vmem:[%s6066_s5 + $0x50] sm:$0xff]  ;;  %v3875_v34 = vpack.c.bf16 %v572_v31, %v571_v29 }
 0x213   :  { %v268_v44 = vmax.f32 %v267_v39, 0.0  ;;  %v3845_v35 = vpack.c.bf16 %v524_v33, %v523_v32  ;;  %v541_v39 = vld [vmem:[%s6066_s5 + $0xe0] sm:$0xff] }
 0x215   :  { %3557 = vmatmul.mubr.msk.f32.vlgmr.msra.gmra.mrb[0].mxu1 %vm301_vm4, %v268_v44  ;;  %3558 = vmatmul.mubr.msk.f32.vlgmr.msra.gmra.mrb[2].mxu0 %vm301_vm4, %v268_v44  ;;  %v525_v44 = vld [vmem:[%s6066_s5 + $0x60] sm:$0xff] }
 0x216   :  { %3826 = vmatpush3.bf16.msra.mxu1 %v3825_v40  ;;  %3858 = vmatpush3.bf16.msra.mxu0 %v3857_v41  ;;  %v542_v40 = vld [vmem:[%s6066_s5 + $0xe8] sm:$0xff]  ;;  %v573_v41 = vld [vmem:[%s6066_s5 + $0x1e0] sm:$0xff] }
 0x217   :  { %3828 = vmatprep.subr.bf16.mxu1 %v3827_v45  ;;  %3860 = vmatprep.subr.bf16.mxu0 %v3859_v46  ;;  %v3847_v42 = vpack.c.bf16 %v542_v40, %v541_v39  ;;  %v526_v45 = vld [vmem:[%s6066_s5 + $0x68] sm:$0xff]  ;;  %v3879_v46 = vpack.c.bf16 %v574_v43, %v573_v41 }
 0x218   :  { %v3849_v47 = vpack.c.bf16 %v526_v45, %v525_v44 }
 0x21a   :  { %3830 = vmatpush3.bf16.msra.mxu1 %v3829_v53  ;;  %3862 = vmatpush3.bf16.msra.mxu0 %v3861_v54  ;;  %v575_v53 = vld [vmem:[%s6066_s5 + $0x1f0] sm:$0xff]  ;;  %v576_v54 = vld [vmem:[%s6066_s5 + $0x1f8] sm:$0xff] }
 0x21b   :  { %3832 = vmatprep.subr.bf16.mxu1 %v3831_v57  ;;  %3864 = vmatprep.subr.bf16.mxu0 %v3863_v58  ;;  %v3883_v56 = vpack.c.bf16 %v576_v54, %v575_v53  ;;  %v527_v57 = vld [vmem:[%s6066_s5 + $0x70] sm:$0xff]  ;;  %v528_v58 = vld [vmem:[%s6066_s5 + $0x78] sm:$0xff] }
 0x21c   :  { %v3853_v60 = vpack.c.bf16 %v528_v58, %v527_v57 }
 0x21e   :  { %3834 = vmatpush3.bf16.msra.mxu1 %v3833_v2  ;;  %3866 = vmatpush3.bf16.msra.mxu0 %v3865_v3 }
 0x21f   :  { %3836 = vmatprep.subr.bf16.mxu1 %v3835_v4  ;;  %3868 = vmatprep.subr.bf16.mxu0 %v3867_v5 }
 0x222   :  { %3838 = vmatpush3.bf16.msra.mxu1 %v3837_v9  ;;  %3870 = vmatpush3.bf16.msra.mxu0 %v3869_v11 }
 0x223   :  { %3840 = vmatprep.subr.bf16.mxu1 %v3839_v15  ;;  %3872 = vmatprep.subr.bf16.mxu0 %v3871_v19 }
 0x226   :  { %3842 = vmatpush3.bf16.msra.mxu1 %v3841_v20  ;;  %3874 = vmatpush3.bf16.msra.mxu0 %v3873_v26 }
 0x227   :  { %3844 = vmatprep.subr.bf16.mxu1 %v3843_v30  ;;  %3876 = vmatprep.subr.bf16.mxu0 %v3875_v34 }
 0x22a   :  { %3846 = vmatpush3.bf16.msra.mxu1 %v3845_v35  ;;  %3878 = vmatpush3.bf16.msra.mxu0 %v3877_v38 }
 0x22b   :  { %3848 = vmatprep.subr.bf16.mxu1 %v3847_v42  ;;  %3880 = vmatprep.subr.bf16.mxu0 %v3879_v46 }
 0x22e   :  { %3850 = vmatpush3.bf16.msra.mxu1 %v3849_v47  ;;  %3882 = vmatpush3.bf16.msra.mxu0 %v3881_v51 }
 0x22f   :  { %3852 = vmatprep.subr.bf16.mxu1 %v3851_v55  ;;  %3884 = vmatprep.subr.bf16.mxu0 %v3883_v56 }
 0x232   :  { %3854 = vmatpush3.bf16.msra.mxu1 %v3853_v60  ;;  %3886 = vmatpush3.bf16.msra.mxu0 %v3885_v62 }
 0x2e8   :  { %v5462_v63 = vpop.f32.mrb[0].mxu1  ;;  %v5464_v1 = vpop.f32.mrb[2].mxu0 }
 0x2e9   :  { %v448_v2 = vsel %vm447_vm5, %v5462_v63, 0.0  ;;  %v476_v3 = vmul.f32 %v5462_v63, %v5462_v63  ;;  %v462_v4 = vsel %vm447_vm5, %v5464_v1, 0.0  ;;  %v478_v5 = vmul.f32 %v5464_v1, %v5464_v1  ;;  %v5474_v6 = vpop.f32.mrb[1].mxu1  ;;  %v5476_v7 = vpop.f32.mrb[3].mxu0 }
 0x2ea   :  { %v449_v8 = vrot.slane %v448_v2, 4  ;;  %v463_v9 = vrot.slane %v462_v4, 4  ;;  %v455_v10 = vsel %vm447_vm5, %v5474_v6, 0.0  ;;  %v477_v11 = vmul.f32 %v5474_v6, %v5474_v6 }
 0x2eb   :  { %v480_v12 = vsel %vm447_vm5, %v476_v3, 0.0  ;;  %v494_v13 = vsel %vm447_vm5, %v478_v5, 0.0  ;;  %v456_v14 = vrot.slane %v455_v10, 4  ;;  %v469_v15 = vsel %vm447_vm5, %v5476_v7, 0.0 }
 0x2ec   :  { %v450_v16 = vadd.f32 %v449_v8, %v448_v2  ;;  %v481_v17 = vrot.slane %v480_v12, 4  ;;  %v464_v18 = vadd.f32 %v463_v9, %v462_v4  ;;  %v495_v19 = vrot.slane %v494_v13, 4 }
 0x2ed   :  { %v457_v20 = vadd.f32 %v456_v14, %v455_v10  ;;  %v487_v21 = vsel %vm447_vm5, %v477_v11, 0.0  ;;  %v470_v25 = vrot.slane %v469_v15, 4  ;;  %v479_v26 = vmul.f32 %v5476_v7, %v5476_v7  ;;  %v744_v14 = vld [vmem:[#allocation11 + $0x18] sm:$0xff] }
 0x2ee   :  { %v451_v27 = vrot.slane %v450_v16, 2  ;;  %v482_v28 = vadd.f32 %v481_v17, %v480_v12  ;;  %v496_v29 = vadd.f32 %v495_v19, %v494_v13  ;;  %v488_v31 = vrot.slane %v487_v21, 4  ;;  %v742_v12 = vld [vmem:[#allocation11 + $0x8] sm:$0xff]  ;;  %v741_v13 = vld [vmem:[#allocation11] sm:$0xff]  ;;  %819 = vmatprep.subr.mxu0 %v744_v14 }
 0x2ef   :  { %v458_v30 = vrot.slane %v457_v20, 2  ;;  %v471_v32 = vadd.f32 %v470_v25, %v469_v15  ;;  %v501_v33 = vsel %vm447_vm5, %v479_v26, 0.0  ;;  %v465_v35 = vrot.slane %v464_v18, 2  ;;  %748 = vmatprep.subr.mxu1 %v742_v12  ;;  %v743_v15 = vld [vmem:[#allocation11 + $0x10] sm:$0xff]  ;;  %v943_v17 = vld [vmem:[#allocation13 + $0x48] sm:$0xff]  ;;  %v970_v12 = vld [vmem:[#allocation13 + $0x120] sm:$0xff] }
 0x2f0   :  { %v483_v34 = vrot.slane %v482_v28, 2  ;;  %v497_v36 = vrot.slane %v496_v29, 2  ;;  %v489_v38 = vadd.f32 %v488_v31, %v487_v21  ;;  %v502_v40 = vrot.slane %v501_v33, 4  ;;  %v983_v14 = vld [vmem:[#allocation13 + $0x188] sm:$0xff] }
 0x2f1   :  { %v459_v37 = vadd.f32 %v458_v30, %v457_v20  ;;  %v472_v39 = vrot.slane %v471_v32, 2  ;;  %v452_v41 = vadd.f32 %v451_v27, %v450_v16  ;;  %v466_v47 = vadd.f32 %v465_v35, %v464_v18  ;;  %v935_v16 = vld [vmem:[#allocation13 + $0x8] sm:$0xff] }
 0x2f2   :  { %v484_v42 = vadd.f32 %v483_v34, %v482_v28  ;;  %v498_v43 = vadd.f32 %v497_v36, %v496_v29  ;;  %v490_v44 = vrot.slane %v489_v38, 2  ;;  %v503_v46 = vadd.f32 %v502_v40, %v501_v33  ;;  %v939_v18 = vld [vmem:[#allocation13 + $0x28] sm:$0xff] }
 0x2f3   :  { %v473_v45 = vadd.f32 %v472_v39, %v471_v32  ;;  %v460_v50 = vrot.slane %v459_v37, 1  ;;  %v453_v52 = vrot.slane %v452_v41, 1  ;;  %v467_v57 = vrot.slane %v466_v47, 1  ;;  %v947_v20 = vld [vmem:[#allocation13 + $0x68] sm:$0xff] }
 0x2f4   :  { %v485_v48 = vrot.slane %v484_v42, 1  ;;  %v504_v49 = vrot.slane %v503_v46, 2  ;;  %v491_v51 = vadd.f32 %v490_v44, %v489_v38  ;;  %v499_v53 = vrot.slane %v498_v43, 1  ;;  %v942_v44 = vld [vmem:[#allocation13 + $0x40] sm:$0xff] }
 0x2f5   :  { %v474_v55 = vrot.slane %v473_v45, 1  ;;  %v461_v59 = vadd.f32 %v460_v50, %v459_v37  ;;  %v454_v62 = vadd.f32 %v453_v52, %v452_v41  ;;  %v468_v9 = vadd.f32 %v467_v57, %v466_v47  ;;  %v951_v47 = vld [vmem:[#allocation13 + $0x88] sm:$0xff] }
 0x2f6   :  { %v492_v54 = vrot.slane %v491_v51, 1  ;;  %v505_v56 = vadd.f32 %v504_v49, %v503_v46  ;;  %v486_v58 = vadd.f32 %v485_v48, %v484_v42  ;;  %v500_v2 = vadd.f32 %v499_v53, %v498_v43  ;;  %v934_v43 = vld [vmem:[#allocation13] sm:$0xff]  ;;  %v959_v49 = vld [vmem:[#allocation13 + $0xc8] sm:$0xff] }
 0x2f7   :  { %v475_v4 = vadd.f32 %v474_v55, %v473_v45  ;;  %v3887_v19 = vpack.c.bf16 %v943_v17, %v935_v16  ;;  %v4143_v21 = vpack.c.bf16 %v947_v20, %v939_v18  ;;  %v938_v45 = vld [vmem:[#allocation13 + $0x20] sm:$0xff]  ;;  %v955_v50 = vld [vmem:[#allocation13 + $0xa8] sm:$0xff]  ;;  %v3889_v53 = vpack.c.bf16 %v942_v44, %v934_v43 }
 0x2f8   :  { %v493_v60 = vadd.f32 %v492_v54, %v491_v51  ;;  %v506_v61 = vrot.slane %v505_v56, 1  ;;  %v509_v8 = vsel %vm508_vm6, %v454_v62, %v486_v58  ;;  %v511_v11 = vsel %vm508_vm6, %v468_v9, %v500_v2  ;;  %v946_v46 = vld [vmem:[#allocation13 + $0x60] sm:$0xff]  ;;  %v963_v51 = vld [vmem:[#allocation13 + $0xe8] sm:$0xff] }
 0x2f9   :  { %v4145_v54 = vpack.c.bf16 %v946_v46, %v938_v45  ;;  %v950_v55 = vld [vmem:[#allocation13 + $0x80] sm:$0xff]  ;;  %v3891_v57 = vpack.c.bf16 %v959_v49, %v951_v47  ;;  %v4147_v58 = vpack.c.bf16 %v963_v51, %v955_v50  ;;  %v975_v2 = vld [vmem:[#allocation13 + $0x148] sm:$0xff] }
 0x2fa   :  { %v510_v3 = vsel %vm508_vm6, %v461_v59, %v493_v60  ;;  %v507_v5 = vadd.f32 %v506_v61, %v505_v56  ;;  %v958_v56 = vld [vmem:[#allocation13 + $0xc0] sm:$0xff]  ;;  %v967_v61 = vld [vmem:[#allocation13 + $0x108] sm:$0xff] }
 0x2fb   :  { %641 = vmatprep.mubr.f32.mxu1 %v510_v3  ;;  %v954_v59 = vld [vmem:[#allocation13 + $0xa0] sm:$0xff]  ;;  %v971_v3 = vld [vmem:[#allocation13 + $0x128] sm:$0xff] }
 0x2fc   :  { %v512_v10 = vsel %vm508_vm6, %v475_v4, %v507_v5  ;;  %642 = vmatmul.mubr.f32.vlgmr.msra.gmra.mrb[2].mxu1 %v509_v8  ;;  %v962_v60 = vld [vmem:[#allocation13 + $0xe0] sm:$0xff]  ;;  %v979_v4 = vld [vmem:[#allocation13 + $0x168] sm:$0xff] }
 0x2fd   :  { %711 = vmatprep.mubr.f32.mxu0 %v512_v10  ;;  %812 = vmatprep.mubr.f32.mxu1 %v5082_v0  ;;  %v4149_v5 = vpack.c.bf16 %v962_v60, %v954_v59  ;;  %v966_v8 = vld [vmem:[#allocation13 + $0x100] sm:$0xff]  ;;  %v3895_v10 = vpack.c.bf16 %v975_v2, %v967_v61  ;;  %v987_v16 = vld [vmem:[#allocation13 + $0x1a8] sm:$0xff] }
 0x2fe   :  { %712 = vmatmul.mubr.f32.vlgmr.msra.gmra.mrb[4].mxu0 %v511_v11  ;;  %749 = vmatpush1.msra.mxu1 %v741_v13  ;;  %v974_v9 = vld [vmem:[#allocation13 + $0x140] sm:$0xff]  ;;  %v4151_v11 = vpack.c.bf16 %v979_v4, %v971_v3  ;;  %v995_v17 = vld [vmem:[#allocation13 + $0x1e8] sm:$0xff] }
 0x2ff   :  { %883 = vmatprep.mubr.f32.mxu0 %v5082_v0  ;;  %820 = vmatpush1.msra.mxu0 %v743_v15  ;;  %v978_v13 = vld [vmem:[#allocation13 + $0x160] sm:$0xff]  ;;  %v991_v15 = vld [vmem:[#allocation13 + $0x1c8] sm:$0xff]  ;;  %v3897_v18 = vpack.c.bf16 %v974_v9, %v966_v8 }
 0x300   :  { %3888 = vmatprep.subr.bf16.mxu0 %v3887_v19  ;;  %4144 = vmatprep.subr.bf16.mxu1 %v4143_v21  ;;  %v4153_v19 = vpack.c.bf16 %v978_v13, %v970_v12  ;;  %v982_v20 = vld [vmem:[#allocation13 + $0x180] sm:$0xff]  ;;  %v1019_v43 = vld [vmem:[#allocation13 + $0x2a8] sm:$0xff] }
 0x301   :  { %v990_v21 = vld [vmem:[#allocation13 + $0x1c0] sm:$0xff]  ;;  %v1027_v44 = vld [vmem:[#allocation13 + $0x2e8] sm:$0xff] }
 0x302   :  { %v1014_v47 = vld [vmem:[#allocation13 + $0x280] sm:$0xff]  ;;  %v4163_v50 = vpack.c.bf16 %v1027_v44, %v1019_v43  ;;  %v1047_v4 = vld [vmem:[#allocation13 + $0x388] sm:$0xff] }
 0x303   :  { %v1018_v51 = vld [vmem:[#allocation13 + $0x2a0] sm:$0xff]  ;;  %v1059_v8 = vld [vmem:[#allocation13 + $0x3e8] sm:$0xff] }
 0x304   :  { %v1030_v59 = vld [vmem:[#allocation13 + $0x300] sm:$0xff]  ;;  %v1095_v44 = vld [vmem:[#allocation13 + $0x508] sm:$0xff] }
 0x305   :  { %v1038_v60 = vld [vmem:[#allocation13 + $0x340] sm:$0xff] }
 0x306   :  { %v1034_v2 = vld [vmem:[#allocation13 + $0x320] sm:$0xff]  ;;  %v3913_v9 = vpack.c.bf16 %v1038_v60, %v1030_v59  ;;  %v1123_v59 = vld [vmem:[#allocation13 + $0x5e8] sm:$0xff] }
 0x307   :  { %v1042_v3 = vld [vmem:[#allocation13 + $0x360] sm:$0xff] }
 0x308   :  { %v1054_v12 = vld [vmem:[#allocation13 + $0x3c0] sm:$0xff] }
 0x309   :  { %v1090_v43 = vld [vmem:[#allocation13 + $0x4e0] sm:$0xff] }
 0x3cf   :  { %v3608_v25 = vpop.f32.mrb[2].mxu1 }
 0x3d0   :  { %v3609_v26 = vpop.f32.mrb[3].mxu1 }
 0x3d1   :  { %v3643_v27 = vpop.f32.mrb[4].mxu0  ;;  %v3610_v28 = vadd.f32 %v3609_v26, %v3608_v25  ;;  %v3899_v25 = vpack.c.bf16 %v991_v15, %v983_v14  ;;  %v4155_v26 = vpack.c.bf16 %v995_v17, %v987_v16  ;;  %v1050_v15 = vld [vmem:[#allocation13 + $0x3a0] sm:$0xff]  ;;  %v1063_v17 = vld [vmem:[#allocation13 + $0x408] sm:$0xff] }
 0x3d2   :  { %v3644_v29 = vpop.f32.mrb[5].mxu0  ;;  %v1058_v16 = vld [vmem:[#allocation13 + $0x3e0] sm:$0xff] }
 0x3d3   :  { %v3645_v30 = vadd.f32 %v3644_v29, %v3643_v27  ;;  %v986_v27 = vld [vmem:[#allocation13 + $0x1a0] sm:$0xff]  ;;  %v999_v29 = vld [vmem:[#allocation13 + $0x208] sm:$0xff] }
 0x3d5   :  { %v714_v31 = vadd.f32 %v3645_v30, %v3610_v28  ;;  %v994_v28 = vld [vmem:[#allocation13 + $0x1e0] sm:$0xff]  ;;  %v1007_v30 = vld [vmem:[#allocation13 + $0x248] sm:$0xff] }
 0x3d7   :  { %v717_v32 = vmul.f32 %v714_v31, %v714_v31 }
 0x3d9   :  { %v719_v33 = vrot.slane %v717_v32, 7  ;;  %v1011_v32 = vld [vmem:[#allocation13 + $0x268] sm:$0xff] }
 0x3db   :  { %v721_v34 = vsub.f32 %v714_v31, %v719_v33  ;;  %v3901_v33 = vpack.c.bf16 %v990_v21, %v982_v20  ;;  %v1075_v20 = vld [vmem:[#allocation13 + $0x468] sm:$0xff] }
 0x3dd   :  { %v722_v35 = vmax.f32 %v721_v34, 0.0  ;;  %v4157_v34 = vpack.c.bf16 %v994_v28, %v986_v27  ;;  %v1070_v27 = vld [vmem:[#allocation13 + $0x440] sm:$0xff] }
 0x3df   :  { %v723_v36 = vadd.f32 1e-05, %v722_v35  ;;  %v998_v35 = vld [vmem:[#allocation13 + $0x200] sm:$0xff] }
 0x3e1   :  { %4826 = vrsqrt.f32 %v723_v36  ;;  %v1006_v36 = vld [vmem:[#allocation13 + $0x240] sm:$0xff] }
 0x3e2   :  { %v3905_v45 = vpack.c.bf16 %v1006_v36, %v998_v35  ;;  %v1091_v35 = vld [vmem:[#allocation13 + $0x4e8] sm:$0xff] }
 0x3eb   :  { %v4827_v37 = vpop.eup %4826 }
 0x3ec   :  { %v726_v38 = vrot.slane %v4827_v37, 7  ;;  %v3903_v37 = vpack.c.bf16 %v1007_v30, %v999_v29  ;;  %v1066_v30 = vld [vmem:[#allocation13 + $0x420] sm:$0xff] }
 0x3ee   :  { %v728_v39 = vmul.f32 %v726_v38, %v5274_v23 }
 0x3f0   :  { %v730_v40 = vrot.slane %v728_v39, 2  ;;  %v1002_v39 = vld [vmem:[#allocation13 + $0x220] sm:$0xff] }
 0x3f2   :  { %v732_v41 = vmul.f32 %v730_v40, %v714_v31  ;;  %v1003_v31 = vld [vmem:[#allocation13 + $0x228] sm:$0xff] }
 0x3f3   :  { %v4159_v38 = vpack.c.bf16 %v1011_v32, %v1003_v31  ;;  %v1074_v31 = vld [vmem:[#allocation13 + $0x460] sm:$0xff]  ;;  %v1079_v32 = vld [vmem:[#allocation13 + $0x488] sm:$0xff] }
 0x3f4   :  { %v734_v42 = vrot.slane %v732_v41, 5  ;;  %v1015_v41 = vld [vmem:[#allocation13 + $0x288] sm:$0xff] }
 0x3f6   :  { %v736_v48 = vsub.f32 %v5274_v23, %v734_v42  ;;  %v3893_v23 = vpack.c.bf16 %v958_v56, %v950_v55  ;;  %v1023_v42 = vld [vmem:[#allocation13 + $0x2c8] sm:$0xff] }
 0x3f7   :  { %v3907_v49 = vpack.c.bf16 %v1023_v42, %v1015_v41  ;;  %v1035_v55 = vld [vmem:[#allocation13 + $0x328] sm:$0xff]  ;;  %v1082_v42 = vld [vmem:[#allocation13 + $0x4a0] sm:$0xff] }
 0x3f8   :  { %v738_v52 = vrot.slane %v736_v48, 2  ;;  %v1022_v48 = vld [vmem:[#allocation13 + $0x2c0] sm:$0xff]  ;;  %v1043_v56 = vld [vmem:[#allocation13 + $0x368] sm:$0xff] }
 0x3fa   :  { %v740_v62 = vsel %vm508_vm6, %v730_v40, %v738_v52  ;;  %v1010_v40 = vld [vmem:[#allocation13 + $0x260] sm:$0xff] }
 0x3fb   :  { %3559 = vmatmul.mubr.msk.f32.vlgmr.msra.gmra.mrb[4].mxu1 %vm159_vm2, %v740_v62  ;;  %3560 = vmatmul.mubr.msk.f32.vlgmr.msra.gmra.mrb[6].mxu0 %vm159_vm2, %v740_v62  ;;  %v4161_v46 = vpack.c.bf16 %v1010_v40, %v1002_v39  ;;  %v1026_v52 = vld [vmem:[#allocation13 + $0x2e0] sm:$0xff]  ;;  %v4167_v62 = vpack.c.bf16 %v1043_v56, %v1035_v55  ;;  %v1111_v56 = vld [vmem:[#allocation13 + $0x588] sm:$0xff] }
 0x3fc   :  { %3890 = vmatpush1.bf16.msra.mxu0 %v3889_v53  ;;  %4146 = vmatpush1.bf16.msra.mxu1 %v4145_v54  ;;  %v1031_v53 = vld [vmem:[#allocation13 + $0x308] sm:$0xff]  ;;  %v1086_v39 = vld [vmem:[#allocation13 + $0x4c0] sm:$0xff] }
 0x3fd   :  { %3892 = vmatprep.subr.bf16.mxu0 %v3891_v57  ;;  %4148 = vmatprep.subr.bf16.mxu1 %v4147_v58  ;;  %v1039_v54 = vld [vmem:[#allocation13 + $0x348] sm:$0xff]  ;;  %v3909_v57 = vpack.c.bf16 %v1022_v48, %v1014_v47  ;;  %v4165_v58 = vpack.c.bf16 %v1026_v52, %v1018_v51  ;;  %v1102_v51 = vld [vmem:[#allocation13 + $0x540] sm:$0xff] }
 0x3fe   :  { %v3911_v61 = vpack.c.bf16 %v1039_v54, %v1031_v53  ;;  %v1107_v47 = vld [vmem:[#allocation13 + $0x568] sm:$0xff]  ;;  %v1098_v54 = vld [vmem:[#allocation13 + $0x520] sm:$0xff] }
 0x3ff   :  { %v1106_v55 = vld [vmem:[#allocation13 + $0x560] sm:$0xff] }
 0x400   :  { %3894 = vmatpush1.bf16.msra.mxu0 %v3893_v23  ;;  %4150 = vmatpush1.bf16.msra.mxu1 %v4149_v5  ;;  %v1055_v23 = vld [vmem:[#allocation13 + $0x3c8] sm:$0xff] }
 0x401   :  { %3896 = vmatprep.subr.bf16.mxu0 %v3895_v10  ;;  %4152 = vmatprep.subr.bf16.mxu1 %v4151_v11  ;;  %v1051_v5 = vld [vmem:[#allocation13 + $0x3a8] sm:$0xff]  ;;  %v4169_v10 = vpack.c.bf16 %v1042_v3, %v1034_v2  ;;  %v1046_v11 = vld [vmem:[#allocation13 + $0x380] sm:$0xff]  ;;  %v3915_v13 = vpack.c.bf16 %v1055_v23, %v1047_v4 }
 0x402   :  { %v4171_v14 = vpack.c.bf16 %v1059_v8, %v1051_v5  ;;  %v3917_v21 = vpack.c.bf16 %v1054_v12, %v1046_v11  ;;  %v1118_v2 = vld [vmem:[#allocation13 + $0x5c0] sm:$0xff]  ;;  %v1127_v8 = vld [vmem:[#allocation13 + $0x608] sm:$0xff] }
 0x403   :  { %v1114_v23 = vld [vmem:[#allocation13 + $0x5a0] sm:$0xff]  ;;  %v1139_v11 = vld [vmem:[#allocation13 + $0x668] sm:$0xff] }
 0x404   :  { %3898 = vmatpush1.bf16.msra.mxu0 %v3897_v18  ;;  %4154 = vmatpush1.bf16.msra.mxu1 %v4153_v19  ;;  %v1071_v18 = vld [vmem:[#allocation13 + $0x448] sm:$0xff]  ;;  %v1122_v5 = vld [vmem:[#allocation13 + $0x5e0] sm:$0xff] }
 0x405   :  { %3900 = vmatprep.subr.bf16.mxu0 %v3899_v25  ;;  %4156 = vmatprep.subr.bf16.mxu1 %v4155_v26  ;;  %v1067_v19 = vld [vmem:[#allocation13 + $0x428] sm:$0xff]  ;;  %v4173_v25 = vpack.c.bf16 %v1058_v16, %v1050_v15  ;;  %v1062_v26 = vld [vmem:[#allocation13 + $0x400] sm:$0xff]  ;;  %v3919_v28 = vpack.c.bf16 %v1071_v18, %v1063_v17 }
 0x406   :  { %v4175_v29 = vpack.c.bf16 %v1075_v20, %v1067_v19  ;;  %v3921_v36 = vpack.c.bf16 %v1070_v27, %v1062_v26  ;;  %v1134_v15 = vld [vmem:[#allocation13 + $0x640] sm:$0xff]  ;;  %v1143_v20 = vld [vmem:[#allocation13 + $0x688] sm:$0xff] }
 0x407   :  { %v1130_v18 = vld [vmem:[#allocation13 + $0x620] sm:$0xff]  ;;  %v1155_v26 = vld [vmem:[#allocation13 + $0x6e8] sm:$0xff] }
 0x408   :  { %3902 = vmatpush1.bf16.msra.mxu0 %v3901_v33  ;;  %4158 = vmatpush1.bf16.msra.mxu1 %v4157_v34  ;;  %v1087_v33 = vld [vmem:[#allocation13 + $0x4c8] sm:$0xff]  ;;  %v1138_v19 = vld [vmem:[#allocation13 + $0x660] sm:$0xff] }
 0x409   :  { %3904 = vmatprep.subr.bf16.mxu0 %v3903_v37  ;;  %4160 = vmatprep.subr.bf16.mxu1 %v4159_v38  ;;  %v1083_v34 = vld [vmem:[#allocation13 + $0x4a8] sm:$0xff]  ;;  %v4177_v37 = vpack.c.bf16 %v1074_v31, %v1066_v30  ;;  %v1078_v38 = vld [vmem:[#allocation13 + $0x480] sm:$0xff]  ;;  %v3923_v40 = vpack.c.bf16 %v1087_v33, %v1079_v32 }
 0x40a   :  { %v4179_v41 = vpack.c.bf16 %v1091_v35, %v1083_v34  ;;  %v3925_v48 = vpack.c.bf16 %v1086_v39, %v1078_v38  ;;  %v1150_v32 = vld [vmem:[#allocation13 + $0x6c0] sm:$0xff]  ;;  %v1167_v38 = vld [vmem:[#allocation13 + $0x748] sm:$0xff] }
 0x40b   :  { %v1146_v33 = vld [vmem:[#allocation13 + $0x6a0] sm:$0xff]  ;;  %v1163_v39 = vld [vmem:[#allocation13 + $0x728] sm:$0xff] }
 0x40c   :  { %3906 = vmatpush1.bf16.msra.mxu0 %v3905_v45  ;;  %4162 = vmatpush1.bf16.msra.mxu1 %v4161_v46  ;;  %v1103_v45 = vld [vmem:[#allocation13 + $0x548] sm:$0xff]  ;;  %v1154_v34 = vld [vmem:[#allocation13 + $0x6e0] sm:$0xff] }
 0x40d   :  { %3908 = vmatprep.subr.bf16.mxu0 %v3907_v49  ;;  %4164 = vmatprep.subr.bf16.mxu1 %v4163_v50  ;;  %v1099_v46 = vld [vmem:[#allocation13 + $0x528] sm:$0xff]  ;;  %v4181_v49 = vpack.c.bf16 %v1090_v43, %v1082_v42  ;;  %v1094_v50 = vld [vmem:[#allocation13 + $0x500] sm:$0xff]  ;;  %v3927_v52 = vpack.c.bf16 %v1103_v45, %v1095_v44 }
 0x40e   :  { %v4183_v53 = vpack.c.bf16 %v1107_v47, %v1099_v46  ;;  %v3929_v60 = vpack.c.bf16 %v1102_v51, %v1094_v50  ;;  %v1158_v42 = vld [vmem:[#allocation13 + $0x700] sm:$0xff]  ;;  %v1183_v50 = vld [vmem:[#allocation13 + $0x7c8] sm:$0xff] }
 0x40f   :  { %v1166_v43 = vld [vmem:[#allocation13 + $0x740] sm:$0xff]  ;;  %v1179_v51 = vld [vmem:[#allocation13 + $0x7a8] sm:$0xff] }
 0x410   :  { %3910 = vmatpush1.bf16.msra.mxu0 %v3909_v57  ;;  %4166 = vmatpush1.bf16.msra.mxu1 %v4165_v58  ;;  %v1119_v57 = vld [vmem:[#allocation13 + $0x5c8] sm:$0xff]  ;;  %v3945_v45 = vpack.c.bf16 %v1166_v43, %v1158_v42  ;;  %v1162_v46 = vld [vmem:[#allocation13 + $0x720] sm:$0xff] }
 0x411   :  { %3912 = vmatprep.subr.bf16.mxu0 %v3911_v61  ;;  %4168 = vmatprep.subr.bf16.mxu1 %v4167_v62  ;;  %v1115_v58 = vld [vmem:[#allocation13 + $0x5a8] sm:$0xff]  ;;  %v4185_v61 = vpack.c.bf16 %v1106_v55, %v1098_v54  ;;  %v1110_v62 = vld [vmem:[#allocation13 + $0x580] sm:$0xff]  ;;  %v3931_v3 = vpack.c.bf16 %v1119_v57, %v1111_v56 }
 0x412   :  { %v4187_v4 = vpack.c.bf16 %v1123_v59, %v1115_v58  ;;  %v3933_v12 = vpack.c.bf16 %v1118_v2, %v1110_v62  ;;  %v1170_v47 = vld [vmem:[#allocation13 + $0x760] sm:$0xff]  ;;  %v1199_v62 = vld [vmem:[#allocation13 + $0x848] sm:$0xff] }
 0x413   :  { %v1174_v54 = vld [vmem:[#allocation13 + $0x780] sm:$0xff]  ;;  %v1195_v2 = vld [vmem:[#allocation13 + $0x828] sm:$0xff] }
 0x414   :  { %3914 = vmatpush1.bf16.msra.mxu0 %v3913_v9  ;;  %4170 = vmatpush1.bf16.msra.mxu1 %v4169_v10  ;;  %v1135_v9 = vld [vmem:[#allocation13 + $0x648] sm:$0xff]  ;;  %v1182_v55 = vld [vmem:[#allocation13 + $0x7c0] sm:$0xff] }
 0x415   :  { %3916 = vmatprep.subr.bf16.mxu0 %v3915_v13  ;;  %4172 = vmatprep.subr.bf16.mxu1 %v4171_v14  ;;  %v1131_v10 = vld [vmem:[#allocation13 + $0x628] sm:$0xff]  ;;  %v4189_v13 = vpack.c.bf16 %v1122_v5, %v1114_v23  ;;  %v1126_v14 = vld [vmem:[#allocation13 + $0x600] sm:$0xff]  ;;  %v3935_v16 = vpack.c.bf16 %v1135_v9, %v1127_v8  ;;  %v3949_v57 = vpack.c.bf16 %v1182_v55, %v1174_v54 }
 0x416   :  { %v4191_v17 = vpack.c.bf16 %v1139_v11, %v1131_v10  ;;  %v3937_v27 = vpack.c.bf16 %v1134_v15, %v1126_v14  ;;  %v1178_v58 = vld [vmem:[#allocation13 + $0x7a0] sm:$0xff]  ;;  %v1223_v42 = vld [vmem:[#allocation13 + $0x908] sm:$0xff] }
 0x417   :  { %v1186_v59 = vld [vmem:[#allocation13 + $0x7e0] sm:$0xff] }
 0x418   :  { %3918 = vmatpush1.bf16.msra.mxu0 %v3917_v21  ;;  %4174 = vmatpush1.bf16.msra.mxu1 %v4173_v25  ;;  %v1151_v21 = vld [vmem:[#allocation13 + $0x6c8] sm:$0xff]  ;;  %v1226_v55 = vld [vmem:[#allocation13 + $0x920] sm:$0xff] }
 0x419   :  { %3920 = vmatprep.subr.bf16.mxu0 %v3919_v28  ;;  %4176 = vmatprep.subr.bf16.mxu1 %v4175_v29  ;;  %v1147_v25 = vld [vmem:[#allocation13 + $0x6a8] sm:$0xff]  ;;  %v4193_v28 = vpack.c.bf16 %v1138_v19, %v1130_v18  ;;  %v1142_v29 = vld [vmem:[#allocation13 + $0x680] sm:$0xff]  ;;  %v3939_v30 = vpack.c.bf16 %v1151_v21, %v1143_v20 }
 0x41a   :  { %v4195_v31 = vpack.c.bf16 %v1155_v26, %v1147_v25  ;;  %v3941_v35 = vpack.c.bf16 %v1150_v32, %v1142_v29  ;;  %v1190_v26 = vld [vmem:[#allocation13 + $0x800] sm:$0xff] }
 0x41b   :  { %v1198_v29 = vld [vmem:[#allocation13 + $0x840] sm:$0xff] }
 0x41c   :  { %3922 = vmatpush1.bf16.msra.mxu0 %v3921_v36  ;;  %4178 = vmatpush1.bf16.msra.mxu1 %v4177_v37  ;;  %v4197_v36 = vpack.c.bf16 %v1154_v34, %v1146_v33  ;;  %v1159_v37 = vld [vmem:[#allocation13 + $0x708] sm:$0xff] }
 0x41d   :  { %3924 = vmatprep.subr.bf16.mxu0 %v3923_v40  ;;  %4180 = vmatprep.subr.bf16.mxu1 %v4179_v41  ;;  %v3943_v40 = vpack.c.bf16 %v1167_v38, %v1159_v37  ;;  %v1171_v41 = vld [vmem:[#allocation13 + $0x768] sm:$0xff]  ;;  %v1214_v38 = vld [vmem:[#allocation13 + $0x8c0] sm:$0xff] }
 0x41e   :  { %v4199_v44 = vpack.c.bf16 %v1171_v41, %v1163_v39  ;;  %v1215_v33 = vld [vmem:[#allocation13 + $0x8c8] sm:$0xff]  ;;  %v1218_v41 = vld [vmem:[#allocation13 + $0x8e0] sm:$0xff] }
 0x41f   :  { %v1211_v34 = vld [vmem:[#allocation13 + $0x8a8] sm:$0xff] }
 0x420   :  { %3926 = vmatpush1.bf16.msra.mxu0 %v3925_v48  ;;  %4182 = vmatpush1.bf16.msra.mxu1 %v4181_v49  ;;  %v4201_v48 = vpack.c.bf16 %v1170_v47, %v1162_v46  ;;  %v1175_v49 = vld [vmem:[#allocation13 + $0x788] sm:$0xff] }
 0x421   :  { %3928 = vmatprep.subr.bf16.mxu0 %v3927_v52  ;;  %4184 = vmatprep.subr.bf16.mxu1 %v4183_v53  ;;  %v3947_v52 = vpack.c.bf16 %v1183_v50, %v1175_v49  ;;  %v1187_v53 = vld [vmem:[#allocation13 + $0x7e8] sm:$0xff] }
 0x422   :  { %v4203_v56 = vpack.c.bf16 %v1187_v53, %v1179_v51  ;;  %v1227_v46 = vld [vmem:[#allocation13 + $0x928] sm:$0xff]  ;;  %v1222_v51 = vld [vmem:[#allocation13 + $0x900] sm:$0xff] }
 0x423   :  { %v1235_v47 = vld [vmem:[#allocation13 + $0x968] sm:$0xff] }
 0x424   :  { %3930 = vmatpush1.bf16.msra.mxu0 %v3929_v60  ;;  %4186 = vmatpush1.bf16.msra.mxu1 %v4185_v61  ;;  %v4205_v60 = vpack.c.bf16 %v1186_v59, %v1178_v58  ;;  %v1191_v61 = vld [vmem:[#allocation13 + $0x808] sm:$0xff]  ;;  %v4215_v54 = vpack.c.bf16 %v1235_v47, %v1227_v46  ;;  %v1298_v46 = vld [vmem:[#allocation13 + $0xb60] sm:$0xff] }
 0x425   :  { %3932 = vmatprep.subr.bf16.mxu0 %v3931_v3  ;;  %4188 = vmatprep.subr.bf16.mxu1 %v4187_v4  ;;  %v3951_v3 = vpack.c.bf16 %v1199_v62, %v1191_v61  ;;  %v1203_v4 = vld [vmem:[#allocation13 + $0x868] sm:$0xff] }
 0x426   :  { %v4207_v23 = vpack.c.bf16 %v1203_v4, %v1195_v2  ;;  %v1247_v58 = vld [vmem:[#allocation13 + $0x9c8] sm:$0xff]  ;;  %v1238_v2 = vld [vmem:[#allocation13 + $0x980] sm:$0xff] }
 0x427   :  { %v1243_v59 = vld [vmem:[#allocation13 + $0x9a8] sm:$0xff] }
 0x428   :  { %3934 = vmatpush1.bf16.msra.mxu0 %v3933_v12  ;;  %4190 = vmatpush1.bf16.msra.mxu1 %v4189_v13  ;;  %v1303_v47 = vld [vmem:[#allocation13 + $0xb88] sm:$0xff] }
 0x429   :  { %3936 = vmatprep.subr.bf16.mxu0 %v3935_v16  ;;  %4192 = vmatprep.subr.bf16.mxu1 %v4191_v17 }
 0x42c   :  { %3938 = vmatpush1.bf16.msra.mxu0 %v3937_v27  ;;  %4194 = vmatpush1.bf16.msra.mxu1 %v4193_v28 }
 0x42d   :  { %3940 = vmatprep.subr.bf16.mxu0 %v3939_v30  ;;  %4196 = vmatprep.subr.bf16.mxu1 %v4195_v31  ;;  %v1202_v30 = vld [vmem:[#allocation13 + $0x860] sm:$0xff] }
 0x430   :  { %3942 = vmatpush1.bf16.msra.mxu0 %v3941_v35  ;;  %4198 = vmatpush1.bf16.msra.mxu1 %v4197_v36  ;;  %v1219_v35 = vld [vmem:[#allocation13 + $0x8e8] sm:$0xff]  ;;  %v3953_v36 = vpack.c.bf16 %v1198_v29, %v1190_v26 }
 0x431   :  { %3944 = vmatprep.subr.bf16.mxu0 %v3943_v40  ;;  %4200 = vmatprep.subr.bf16.mxu1 %v4199_v44  ;;  %v1210_v40 = vld [vmem:[#allocation13 + $0x8a0] sm:$0xff]  ;;  %v4211_v44 = vpack.c.bf16 %v1219_v35, %v1211_v34  ;;  %v1275_v26 = vld [vmem:[#allocation13 + $0xaa8] sm:$0xff] }
 0x432   :  { %v4213_v50 = vpack.c.bf16 %v1218_v41, %v1210_v40  ;;  %v1282_v34 = vld [vmem:[#allocation13 + $0xae0] sm:$0xff]  ;;  %v1287_v35 = vld [vmem:[#allocation13 + $0xb08] sm:$0xff] }
 0x433   :  { %v1286_v41 = vld [vmem:[#allocation13 + $0xb00] sm:$0xff] }
 0x434   :  { %3946 = vmatpush1.bf16.msra.mxu0 %v3945_v45  ;;  %4202 = vmatpush1.bf16.msra.mxu1 %v4201_v48  ;;  %v1231_v45 = vld [vmem:[#allocation13 + $0x948] sm:$0xff] }
 0x435   :  { %3948 = vmatprep.subr.bf16.mxu0 %v3947_v52  ;;  %4204 = vmatprep.subr.bf16.mxu1 %v4203_v56  ;;  %v1230_v52 = vld [vmem:[#allocation13 + $0x940] sm:$0xff]  ;;  %v3959_v53 = vpack.c.bf16 %v1231_v45, %v1223_v42 }
 0x436   :  { %v1234_v56 = vld [vmem:[#allocation13 + $0x960] sm:$0xff]  ;;  %v3961_v61 = vpack.c.bf16 %v1230_v52, %v1222_v51  ;;  %v1315_v51 = vld [vmem:[#allocation13 + $0xbe8] sm:$0xff] }
 0x437   :  { %v4217_v62 = vpack.c.bf16 %v1234_v56, %v1226_v55  ;;  %v1294_v42 = vld [vmem:[#allocation13 + $0xb40] sm:$0xff] }
 0x438   :  { %3950 = vmatpush1.bf16.msra.mxu0 %v3949_v57  ;;  %4206 = vmatpush1.bf16.msra.mxu1 %v4205_v60  ;;  %v1239_v57 = vld [vmem:[#allocation13 + $0x988] sm:$0xff]  ;;  %v1290_v45 = vld [vmem:[#allocation13 + $0xb20] sm:$0xff]  ;;  %v3977_v52 = vpack.c.bf16 %v1294_v42, %v1286_v41 }
 0x439   :  { %3952 = vmatprep.subr.bf16.mxu0 %v3951_v3  ;;  %4208 = vmatprep.subr.bf16.mxu1 %v4207_v23  ;;  %v1251_v60 = vld [vmem:[#allocation13 + $0x9e8] sm:$0xff]  ;;  %v1246_v3 = vld [vmem:[#allocation13 + $0x9c0] sm:$0xff]  ;;  %v3963_v4 = vpack.c.bf16 %v1247_v58, %v1239_v57 }
 0x43a   :  { %v4219_v23 = vpack.c.bf16 %v1251_v60, %v1243_v59  ;;  %v1310_v55 = vld [vmem:[#allocation13 + $0xbc0] sm:$0xff]  ;;  %v1319_v60 = vld [vmem:[#allocation13 + $0xc08] sm:$0xff] }
 0x43b   :  { %v1306_v58 = vld [vmem:[#allocation13 + $0xba0] sm:$0xff]  ;;  %v1379_v41 = vld [vmem:[#allocation13 + $0xde8] sm:$0xff] }
 0x43c   :  { %v1314_v59 = vld [vmem:[#allocation13 + $0xbe0] sm:$0xff] }
 0x4ce   :  { %v814_v5 = vpop.f32.mrb[4].mxu1  ;;  %v885_v8 = vpop.f32.mrb[6].mxu0 }
 0x4cf   :  { %v893_v9 = vrot.slane %v814_v5, %v5272_v22  ;;  %v901_v10 = vrot.slane %v885_v8, %v5272_v22  ;;  %v816_v11 = vpop.f32.mrb[5].mxu1  ;;  %v887_v12 = vpop.f32.mrb[7].mxu0  ;;  %v913_v16 = vrot.slane %v814_v5, %v5276_v24  ;;  %v921_v18 = vrot.slane %v885_v8, %v5276_v24  ;;  %v1242_v5 = vld [vmem:[#allocation13 + $0x9a0] sm:$0xff] }
 0x4d0   :  { %v897_v13 = vrot.slane %v816_v11, %v5272_v22  ;;  %v905_v14 = vrot.slane %v887_v12, %v5272_v22  ;;  %v917_v20 = vrot.slane %v816_v11, %v5276_v24  ;;  %v925_v25 = vrot.slane %v887_v12, %v5276_v24  ;;  %v1250_v8 = vld [vmem:[#allocation13 + $0x9e0] sm:$0xff]  ;;  %v1259_v11 = vld [vmem:[#allocation13 + $0xa28] sm:$0xff] }
 0x4d1   :  { %v906_v15 = vmul.f32 %v893_v9, %v5462_v63  ;;  %v908_v17 = vmul.f32 %v901_v10, %v5464_v1  ;;  %v1194_v63 = vld [vmem:[#allocation13 + $0x820] sm:$0xff]  ;;  %v1207_v1 = vld [vmem:[#allocation13 + $0x888] sm:$0xff] }
 0x4d2   :  { %v907_v19 = vmul.f32 %v897_v13, %v5474_v6  ;;  %v909_v21 = vmul.f32 %v905_v14, %v5476_v7  ;;  %v4209_v37 = vpack.c.bf16 %v1202_v30, %v1194_v63  ;;  %v1206_v7 = vld [vmem:[#allocation13 + $0x880] sm:$0xff]  ;;  %v3955_v43 = vpack.c.bf16 %v1215_v33, %v1207_v1  ;;  %v1255_v9 = vld [vmem:[#allocation13 + $0xa08] sm:$0xff] }
 0x4d3   :  { %v926_v27 = vadd.f32 %v913_v16, %v906_v15  ;;  %v5513_v28 = vadd.f32 %v921_v18, %v908_v17  ;;  %v3957_v49 = vpack.c.bf16 %v1214_v38, %v1206_v7  ;;  %v1263_v10 = vld [vmem:[#allocation13 + $0xa48] sm:$0xff]  ;;  %v3965_v13 = vpack.c.bf16 %v1246_v3, %v1238_v2  ;;  %v1254_v15 = vld [vmem:[#allocation13 + $0xa00] sm:$0xff] }
 0x4d4   :  { %v927_v31 = vadd.f32 %v917_v20, %v907_v19  ;;  %v929_v32 = vadd.f32 %v925_v25, %v909_v21  ;;  %v1267_v12 = vld [vmem:[#allocation13 + $0xa68] sm:$0xff]  ;;  %v4221_v14 = vpack.c.bf16 %v1250_v8, %v1242_v5  ;;  %v1262_v16 = vld [vmem:[#allocation13 + $0xa40] sm:$0xff]  ;;  %v3967_v17 = vpack.c.bf16 %v1263_v10, %v1255_v9 }
 0x4d5   :  { %v5517_v39 = vmax.f32 %v926_v27, 0.0  ;;  %v4223_v18 = vpack.c.bf16 %v1267_v12, %v1259_v11  ;;  %v1258_v19 = vld [vmem:[#allocation13 + $0xa20] sm:$0xff]  ;;  %v1271_v21 = vld [vmem:[#allocation13 + $0xa88] sm:$0xff]  ;;  %v3969_v29 = vpack.c.bf16 %v1262_v16, %v1254_v15 }
 0x4d6   :  { %v5515_v6 = vmax.f32 %v927_v31, 0.0  ;;  %v5521_v48 = vmax.f32 %v929_v32, 0.0  ;;  %v1266_v20 = vld [vmem:[#allocation13 + $0xa60] sm:$0xff]  ;;  %v1279_v25 = vld [vmem:[#allocation13 + $0xac8] sm:$0xff] }
 0x4d7   :  { %v1283_v27 = vld [vmem:[#allocation13 + $0xae8] sm:$0xff]  ;;  %v4225_v63 = vpack.c.bf16 %v1266_v20, %v1258_v19  ;;  %v1270_v30 = vld [vmem:[#allocation13 + $0xa80] sm:$0xff]  ;;  %v3971_v32 = vpack.c.bf16 %v1279_v25, %v1271_v21 }
 0x4d8   :  { %1510 = vmatprep.mubr.f32.mxu0 %v5515_v6  ;;  %1794 = vmatprep.mubr.f32.mxu1 %v5515_v6  ;;  %v1278_v31 = vld [vmem:[#allocation13 + $0xac0] sm:$0xff]  ;;  %v4227_v1 = vpack.c.bf16 %v1283_v27, %v1275_v26  ;;  %v1299_v7 = vld [vmem:[#allocation13 + $0xb68] sm:$0xff] }
 0x4d9   :  { %1511 = vmatmul.mubr.f32.vlgmr.msra.gmra.mrb[8].mxu0 %v5517_v39  ;;  %1795 = vmatmul.mubr.f32.vlgmr.msra.gmra.mrb[6].mxu1 %v5517_v39  ;;  %v1274_v33 = vld [vmem:[#allocation13 + $0xaa0] sm:$0xff]  ;;  %v3973_v38 = vpack.c.bf16 %v1278_v31, %v1270_v30  ;;  %v1331_v2 = vld [vmem:[#allocation13 + $0xc68] sm:$0xff] }
 0x4da   :  { %3954 = vmatpush1.bf16.msra.mxu0 %v3953_v36  ;;  %4210 = vmatpush1.bf16.msra.mxu1 %v4209_v37  ;;  %v1295_v36 = vld [vmem:[#allocation13 + $0xb48] sm:$0xff]  ;;  %v4229_v40 = vpack.c.bf16 %v1282_v34, %v1274_v33  ;;  %v1326_v5 = vld [vmem:[#allocation13 + $0xc40] sm:$0xff] }
 0x4db   :  { %1581 = vmatprep.mubr.f32.mxu0 %v5521_v48  ;;  %1865 = vmatprep.mubr.f32.mxu1 %v5521_v48  ;;  %v1291_v37 = vld [vmem:[#allocation13 + $0xb28] sm:$0xff]  ;;  %v1322_v10 = vld [vmem:[#allocation13 + $0xc20] sm:$0xff] }
 0x4dc   :  { %3956 = vmatprep.subr.bf16.mxu0 %v3955_v43  ;;  %4212 = vmatprep.subr.bf16.mxu1 %v4211_v44  ;;  %v3975_v43 = vpack.c.bf16 %v1295_v36, %v1287_v35  ;;  %v4231_v44 = vpack.c.bf16 %v1299_v7, %v1291_v37  ;;  %v1330_v11 = vld [vmem:[#allocation13 + $0xc60] sm:$0xff]  ;;  %v1335_v12 = vld [vmem:[#allocation13 + $0xc88] sm:$0xff] }
 0x4dd   :  { %v1347_v15 = vld [vmem:[#allocation13 + $0xce8] sm:$0xff]  ;;  %v1342_v19 = vld [vmem:[#allocation13 + $0xcc0] sm:$0xff] }
 0x4de   :  { %3958 = vmatpush1.bf16.msra.mxu0 %v3957_v49  ;;  %4214 = vmatpush1.bf16.msra.mxu1 %v4213_v50  ;;  %v1311_v49 = vld [vmem:[#allocation13 + $0xbc8] sm:$0xff]  ;;  %v1338_v25 = vld [vmem:[#allocation13 + $0xca0] sm:$0xff] }
 0x4df   :  { %3960 = vmatprep.subr.bf16.mxu0 %v3959_v53  ;;  %4216 = vmatprep.subr.bf16.mxu1 %v4215_v54  ;;  %v1307_v50 = vld [vmem:[#allocation13 + $0xba8] sm:$0xff]  ;;  %v4233_v53 = vpack.c.bf16 %v1298_v46, %v1290_v45  ;;  %v1302_v54 = vld [vmem:[#allocation13 + $0xb80] sm:$0xff]  ;;  %v3979_v56 = vpack.c.bf16 %v1311_v49, %v1303_v47 }
 0x4e0   :  { %v4235_v57 = vpack.c.bf16 %v1315_v51, %v1307_v50  ;;  %v3981_v3 = vpack.c.bf16 %v1310_v55, %v1302_v54  ;;  %v1346_v26 = vld [vmem:[#allocation13 + $0xce0] sm:$0xff]  ;;  %v1351_v27 = vld [vmem:[#allocation13 + $0xd08] sm:$0xff] }
 0x4e1   :  { %v1363_v30 = vld [vmem:[#allocation13 + $0xd68] sm:$0xff]  ;;  %v1358_v33 = vld [vmem:[#allocation13 + $0xd40] sm:$0xff] }
 0x4e2   :  { %3962 = vmatpush1.bf16.msra.mxu0 %v3961_v61  ;;  %4218 = vmatpush1.bf16.msra.mxu1 %v4217_v62  ;;  %v1327_v61 = vld [vmem:[#allocation13 + $0xc48] sm:$0xff]  ;;  %v1354_v36 = vld [vmem:[#allocation13 + $0xd20] sm:$0xff] }
 0x4e3   :  { %3964 = vmatprep.subr.bf16.mxu0 %v3963_v4  ;;  %4220 = vmatprep.subr.bf16.mxu1 %v4219_v23  ;;  %v1323_v62 = vld [vmem:[#allocation13 + $0xc28] sm:$0xff]  ;;  %v4237_v4 = vpack.c.bf16 %v1314_v59, %v1306_v58  ;;  %v1318_v23 = vld [vmem:[#allocation13 + $0xc00] sm:$0xff]  ;;  %v3983_v8 = vpack.c.bf16 %v1327_v61, %v1319_v60 }
 0x4e4   :  { %v4239_v9 = vpack.c.bf16 %v1331_v2, %v1323_v62  ;;  %v3985_v16 = vpack.c.bf16 %v1326_v5, %v1318_v23  ;;  %v1362_v37 = vld [vmem:[#allocation13 + $0xd60] sm:$0xff]  ;;  %v1367_v7 = vld [vmem:[#allocation13 + $0xd88] sm:$0xff] }
 0x4e5   :  { %v1374_v45 = vld [vmem:[#allocation13 + $0xdc0] sm:$0xff]  ;;  %v1383_v51 = vld [vmem:[#allocation13 + $0xe08] sm:$0xff] }
 0x4e6   :  { %3966 = vmatpush1.bf16.msra.mxu0 %v3965_v13  ;;  %4222 = vmatpush1.bf16.msra.mxu1 %v4221_v14  ;;  %v1343_v13 = vld [vmem:[#allocation13 + $0xcc8] sm:$0xff]  ;;  %v1370_v49 = vld [vmem:[#allocation13 + $0xda0] sm:$0xff] }
 0x4e7   :  { %3968 = vmatprep.subr.bf16.mxu0 %v3967_v17  ;;  %4224 = vmatprep.subr.bf16.mxu1 %v4223_v18  ;;  %v1339_v14 = vld [vmem:[#allocation13 + $0xca8] sm:$0xff]  ;;  %v4241_v17 = vpack.c.bf16 %v1330_v11, %v1322_v10  ;;  %v1334_v18 = vld [vmem:[#allocation13 + $0xc80] sm:$0xff]  ;;  %v3987_v20 = vpack.c.bf16 %v1343_v13, %v1335_v12 }
 0x4e8   :  { %v4243_v21 = vpack.c.bf16 %v1347_v15, %v1339_v14  ;;  %v3989_v31 = vpack.c.bf16 %v1342_v19, %v1334_v18  ;;  %v1378_v50 = vld [vmem:[#allocation13 + $0xde0] sm:$0xff]  ;;  %v1395_v54 = vld [vmem:[#allocation13 + $0xe68] sm:$0xff] }
 0x4e9   :  { %v1390_v58 = vld [vmem:[#allocation13 + $0xe40] sm:$0xff]  ;;  %v1399_v2 = vld [vmem:[#allocation13 + $0xe88] sm:$0xff] }
 0x4ea   :  { %3970 = vmatpush1.bf16.msra.mxu0 %v3969_v29  ;;  %4226 = vmatpush1.bf16.msra.mxu1 %v4225_v63  ;;  %v1359_v29 = vld [vmem:[#allocation13 + $0xd48] sm:$0xff]  ;;  %v1386_v61 = vld [vmem:[#allocation13 + $0xe20] sm:$0xff] }
 0x4eb   :  { %3972 = vmatprep.subr.bf16.mxu0 %v3971_v32  ;;  %4228 = vmatprep.subr.bf16.mxu1 %v4227_v1  ;;  %v1355_v63 = vld [vmem:[#allocation13 + $0xd28] sm:$0xff]  ;;  %v4245_v32 = vpack.c.bf16 %v1346_v26, %v1338_v25  ;;  %v1350_v1 = vld [vmem:[#allocation13 + $0xd00] sm:$0xff]  ;;  %v3991_v34 = vpack.c.bf16 %v1359_v29, %v1351_v27 }
 0x4ec   :  { %v4247_v35 = vpack.c.bf16 %v1363_v30, %v1355_v63  ;;  %v3993_v42 = vpack.c.bf16 %v1358_v33, %v1350_v1  ;;  %v1394_v62 = vld [vmem:[#allocation13 + $0xe60] sm:$0xff]  ;;  %v1411_v23 = vld [vmem:[#allocation13 + $0xee8] sm:$0xff] }
 0x4ed   :  { %v1406_v10 = vld [vmem:[#allocation13 + $0xec0] sm:$0xff]  ;;  %v1415_v15 = vld [vmem:[#allocation13 + $0xf08] sm:$0xff] }
 0x4ee   :  { %3974 = vmatpush1.bf16.msra.mxu0 %v3973_v38  ;;  %4230 = vmatpush1.bf16.msra.mxu1 %v4229_v40  ;;  %v1375_v38 = vld [vmem:[#allocation13 + $0xdc8] sm:$0xff]  ;;  %v1402_v13 = vld [vmem:[#allocation13 + $0xea0] sm:$0xff] }
 0x4ef   :  { %3976 = vmatprep.subr.bf16.mxu0 %v3975_v43  ;;  %4232 = vmatprep.subr.bf16.mxu1 %v4231_v44  ;;  %v1371_v40 = vld [vmem:[#allocation13 + $0xda8] sm:$0xff]  ;;  %v4249_v43 = vpack.c.bf16 %v1362_v37, %v1354_v36  ;;  %v1366_v44 = vld [vmem:[#allocation13 + $0xd80] sm:$0xff]  ;;  %v3995_v46 = vpack.c.bf16 %v1375_v38, %v1367_v7 }
 0x4f0   :  { %v4251_v47 = vpack.c.bf16 %v1379_v41, %v1371_v40  ;;  %v3997_v55 = vpack.c.bf16 %v1374_v45, %v1366_v44  ;;  %v1410_v14 = vld [vmem:[#allocation13 + $0xee0] sm:$0xff]  ;;  %v1427_v18 = vld [vmem:[#allocation13 + $0xf68] sm:$0xff]  ;;  %v937_v41 = vld [vmem:[#allocation13 + $0x18] sm:$0xff] }
 0x4f1   :  { %v1422_v25 = vld [vmem:[#allocation13 + $0xf40] sm:$0xff]  ;;  %v1431_v30 = vld [vmem:[#allocation13 + $0xf88] sm:$0xff] }
 0x4f2   :  { %3978 = vmatpush1.bf16.msra.mxu0 %v3977_v52  ;;  %4234 = vmatpush1.bf16.msra.mxu1 %v4233_v53  ;;  %v1391_v52 = vld [vmem:[#allocation13 + $0xe48] sm:$0xff]  ;;  %v1418_v29 = vld [vmem:[#allocation13 + $0xf20] sm:$0xff] }
 0x4f3   :  { %3980 = vmatprep.subr.bf16.mxu0 %v3979_v56  ;;  %4236 = vmatprep.subr.bf16.mxu1 %v4235_v57  ;;  %v1387_v53 = vld [vmem:[#allocation13 + $0xe28] sm:$0xff]  ;;  %v4253_v56 = vpack.c.bf16 %v1378_v50, %v1370_v49  ;;  %v1382_v57 = vld [vmem:[#allocation13 + $0xe00] sm:$0xff]  ;;  %v3999_v59 = vpack.c.bf16 %v1391_v52, %v1383_v51  ;;  %v953_v49 = vld [vmem:[#allocation13 + $0x98] sm:$0xff]  ;;  %v5528_v52 = vmax.f32 %v5513_v28, 0.0 }
 0x4f4   :  { %v4255_v60 = vpack.c.bf16 %v1395_v54, %v1387_v53  ;;  %v4001_v5 = vpack.c.bf16 %v1390_v58, %v1382_v57  ;;  %v1426_v63 = vld [vmem:[#allocation13 + $0xf60] sm:$0xff]  ;;  %v1443_v1 = vld [vmem:[#allocation13 + $0xfe8] sm:$0xff]  ;;  %v961_v50 = vld [vmem:[#allocation13 + $0xd8] sm:$0xff] }
 0x4f5   :  { %v1438_v7 = vld [vmem:[#allocation13 + $0xfc0] sm:$0xff]  ;;  %v4019_v53 = vpack.c.bf16 %v961_v50, %v953_v49  ;;  %v952_v54 = vld [vmem:[#allocation13 + $0x90] sm:$0xff]  ;;  %v977_v57 = vld [vmem:[#allocation13 + $0x158] sm:$0xff] }
 0x4f6   :  { %3982 = vmatpush1.bf16.msra.mxu0 %v3981_v3  ;;  %4238 = vmatpush1.bf16.msra.mxu1 %v4237_v4  ;;  %v1407_v3 = vld [vmem:[#allocation13 + $0xec8] sm:$0xff]  ;;  %v1434_v38 = vld [vmem:[#allocation13 + $0xfa0] sm:$0xff]  ;;  %v985_v28 = vld [vmem:[#allocation13 + $0x198] sm:$0xff] }
 0x4f7   :  { %3984 = vmatprep.subr.bf16.mxu0 %v3983_v8  ;;  %4240 = vmatprep.subr.bf16.mxu1 %v4239_v9  ;;  %v1403_v4 = vld [vmem:[#allocation13 + $0xea8] sm:$0xff]  ;;  %v4257_v8 = vpack.c.bf16 %v1394_v62, %v1386_v61  ;;  %v1398_v9 = vld [vmem:[#allocation13 + $0xe80] sm:$0xff]  ;;  %v4003_v11 = vpack.c.bf16 %v1407_v3, %v1399_v2  ;;  %v976_v61 = vld [vmem:[#allocation13 + $0x150] sm:$0xff] }
 0x4f8   :  { %v4259_v12 = vpack.c.bf16 %v1411_v23, %v1403_v4  ;;  %v4005_v19 = vpack.c.bf16 %v1406_v10, %v1398_v9  ;;  %v1442_v40 = vld [vmem:[#allocation13 + $0xfe0] sm:$0xff]  ;;  %v993_v62 = vld [vmem:[#allocation13 + $0x1d8] sm:$0xff]  ;;  %v984_v4 = vld [vmem:[#allocation13 + $0x190] sm:$0xff] }
 0x4f9   :  { %v4269_v44 = vpack.c.bf16 %v1442_v40, %v1434_v38  ;;  %v4027_v3 = vpack.c.bf16 %v993_v62, %v985_v28  ;;  %v992_v23 = vld [vmem:[#allocation13 + $0x1d0] sm:$0xff]  ;;  %v1081_v38 = vld [vmem:[#allocation13 + $0x498] sm:$0xff] }
 0x4fa   :  { %3986 = vmatpush1.bf16.msra.mxu0 %v3985_v16  ;;  %4242 = vmatpush1.bf16.msra.mxu1 %v4241_v17  ;;  %v1423_v16 = vld [vmem:[#allocation13 + $0xf48] sm:$0xff]  ;;  %v4029_v9 = vpack.c.bf16 %v992_v23, %v984_v4  ;;  %v1089_v40 = vld [vmem:[#allocation13 + $0x4d8] sm:$0xff]  ;;  %v1096_v50 = vld [vmem:[#allocation13 + $0x510] sm:$0xff] }
 0x4fb   :  { %3988 = vmatprep.subr.bf16.mxu0 %v3987_v20  ;;  %4244 = vmatprep.subr.bf16.mxu1 %v4243_v21  ;;  %v1419_v17 = vld [vmem:[#allocation13 + $0xf28] sm:$0xff]  ;;  %v4261_v20 = vpack.c.bf16 %v1410_v14, %v1402_v13  ;;  %v1414_v21 = vld [vmem:[#allocation13 + $0xf00] sm:$0xff]  ;;  %v4007_v26 = vpack.c.bf16 %v1423_v16, %v1415_v15  ;;  %v1017_v13 = vld [vmem:[#allocation13 + $0x298] sm:$0xff] }
 0x4fc   :  { %v4263_v27 = vpack.c.bf16 %v1427_v18, %v1419_v17  ;;  %v4009_v33 = vpack.c.bf16 %v1422_v25, %v1414_v21  ;;  %v1025_v14 = vld [vmem:[#allocation13 + $0x2d8] sm:$0xff]  ;;  %v1016_v17 = vld [vmem:[#allocation13 + $0x290] sm:$0xff] }
 0x4fd   :  { %v4035_v16 = vpack.c.bf16 %v1025_v14, %v1017_v13  ;;  %v1024_v18 = vld [vmem:[#allocation13 + $0x2d0] sm:$0xff]  ;;  %v1153_v4 = vld [vmem:[#allocation13 + $0x6d8] sm:$0xff] }
 0x4fe   :  { %3990 = vmatpush1.bf16.msra.mxu0 %v3989_v31  ;;  %4246 = vmatpush1.bf16.msra.mxu1 %v4245_v32  ;;  %v1439_v31 = vld [vmem:[#allocation13 + $0xfc8] sm:$0xff]  ;;  %v4037_v21 = vpack.c.bf16 %v1024_v18, %v1016_v17  ;;  %v1128_v62 = vld [vmem:[#allocation13 + $0x610] sm:$0xff]  ;;  %v1185_v17 = vld [vmem:[#allocation13 + $0x7d8] sm:$0xff] }
 0x4ff   :  { %3992 = vmatprep.subr.bf16.mxu0 %v3991_v34  ;;  %4248 = vmatprep.subr.bf16.mxu1 %v4247_v35  ;;  %v1435_v32 = vld [vmem:[#allocation13 + $0xfa8] sm:$0xff]  ;;  %v4265_v34 = vpack.c.bf16 %v1426_v63, %v1418_v29  ;;  %v1430_v35 = vld [vmem:[#allocation13 + $0xf80] sm:$0xff]  ;;  %v4011_v36 = vpack.c.bf16 %v1439_v31, %v1431_v30  ;;  %v1049_v29 = vld [vmem:[#allocation13 + $0x398] sm:$0xff] }
 0x500   :  { %v4267_v37 = vpack.c.bf16 %v1443_v1, %v1435_v32  ;;  %v1057_v63 = vld [vmem:[#allocation13 + $0x3d8] sm:$0xff]  ;;  %v1048_v32 = vld [vmem:[#allocation13 + $0x390] sm:$0xff] }
 0x501   :  { %v4043_v31 = vpack.c.bf16 %v1057_v63, %v1049_v29  ;;  %v1056_v1 = vld [vmem:[#allocation13 + $0x3d0] sm:$0xff] }
 0x502   :  { %3994 = vmatpush1.bf16.msra.mxu0 %v3993_v42  ;;  %4250 = vmatpush1.bf16.msra.mxu1 %v4249_v43  ;;  %v945_v42 = vld [vmem:[#allocation13 + $0x58] sm:$0xff]  ;;  %v4013_v43 = vpack.c.bf16 %v1438_v7, %v1430_v35  ;;  %v4045_v35 = vpack.c.bf16 %v1056_v1, %v1048_v32  ;;  %v1072_v7 = vld [vmem:[#allocation13 + $0x450] sm:$0xff] }
 0x503   :  { %3996 = vmatprep.subr.bf16.mxu0 %v3995_v46  ;;  %4252 = vmatprep.subr.bf16.mxu1 %v4251_v47  ;;  %v4015_v45 = vpack.c.bf16 %v945_v42, %v937_v41  ;;  %v936_v46 = vld [vmem:[#allocation13 + $0x10] sm:$0xff]  ;;  %v4051_v42 = vpack.c.bf16 %v1089_v40, %v1081_v38  ;;  %v1217_v32 = vld [vmem:[#allocation13 + $0x8d8] sm:$0xff] }
 0x504   :  { %v944_v47 = vld [vmem:[#allocation13 + $0x50] sm:$0xff] }
 0x505   :  { %v4017_v51 = vpack.c.bf16 %v944_v47, %v936_v46  ;;  %v1105_v46 = vld [vmem:[#allocation13 + $0x558] sm:$0xff]  ;;  %v1160_v14 = vld [vmem:[#allocation13 + $0x710] sm:$0xff] }
 0x506   :  { %3998 = vmatpush1.bf16.msra.mxu0 %v3997_v55  ;;  %4254 = vmatpush1.bf16.msra.mxu1 %v4253_v56  ;;  %v960_v55 = vld [vmem:[#allocation13 + $0xd0] sm:$0xff]  ;;  %v969_v56 = vld [vmem:[#allocation13 + $0x118] sm:$0xff] }
 0x507   :  { %4000 = vmatprep.subr.bf16.mxu0 %v3999_v59  ;;  %4256 = vmatprep.subr.bf16.mxu1 %v4255_v60  ;;  %v4021_v58 = vpack.c.bf16 %v960_v55, %v952_v54  ;;  %v4023_v59 = vpack.c.bf16 %v977_v57, %v969_v56  ;;  %v968_v60 = vld [vmem:[#allocation13 + $0x110] sm:$0xff]  ;;  %v1121_v54 = vld [vmem:[#allocation13 + $0x5d8] sm:$0xff] }
 0x508   :  { %v4025_v2 = vpack.c.bf16 %v976_v61, %v968_v60  ;;  %v1112_v57 = vld [vmem:[#allocation13 + $0x590] sm:$0xff]  ;;  %v1137_v60 = vld [vmem:[#allocation13 + $0x658] sm:$0xff] }
 0x509   :  { %v1192_v63 = vld [vmem:[#allocation13 + $0x810] sm:$0xff] }
 0x50a   :  { %4002 = vmatpush1.bf16.msra.mxu0 %v4001_v5  ;;  %4258 = vmatpush1.bf16.msra.mxu1 %v4257_v8  ;;  %v1001_v5 = vld [vmem:[#allocation13 + $0x218] sm:$0xff]  ;;  %v1224_v38 = vld [vmem:[#allocation13 + $0x910] sm:$0xff] }
 0x50b   :  { %4004 = vmatprep.subr.bf16.mxu0 %v4003_v11  ;;  %4260 = vmatprep.subr.bf16.mxu1 %v4259_v12  ;;  %v1009_v8 = vld [vmem:[#allocation13 + $0x258] sm:$0xff]  ;;  %v1000_v11 = vld [vmem:[#allocation13 + $0x210] sm:$0xff] }
 0x50c   :  { %v4031_v10 = vpack.c.bf16 %v1009_v8, %v1001_v5  ;;  %v1008_v12 = vld [vmem:[#allocation13 + $0x250] sm:$0xff] }
 0x50d   :  { %v4033_v15 = vpack.c.bf16 %v1008_v12, %v1000_v11  ;;  %v1144_v8 = vld [vmem:[#allocation13 + $0x690] sm:$0xff]  ;;  %v1169_v11 = vld [vmem:[#allocation13 + $0x758] sm:$0xff] }
 0x50e   :  { %4006 = vmatpush1.bf16.msra.mxu0 %v4005_v19  ;;  %4262 = vmatpush1.bf16.msra.mxu1 %v4261_v20  ;;  %v1033_v19 = vld [vmem:[#allocation13 + $0x318] sm:$0xff]  ;;  %v1232_v40 = vld [vmem:[#allocation13 + $0x950] sm:$0xff] }
 0x50f   :  { %4008 = vmatprep.subr.bf16.mxu0 %v4007_v26  ;;  %4264 = vmatprep.subr.bf16.mxu1 %v4263_v27  ;;  %v1041_v20 = vld [vmem:[#allocation13 + $0x358] sm:$0xff]  ;;  %v1032_v26 = vld [vmem:[#allocation13 + $0x310] sm:$0xff] }
 0x510   :  { %v4039_v25 = vpack.c.bf16 %v1041_v20, %v1033_v19  ;;  %v1040_v27 = vld [vmem:[#allocation13 + $0x350] sm:$0xff] }
 0x511   :  { %v4041_v30 = vpack.c.bf16 %v1040_v27, %v1032_v26  ;;  %v1176_v20 = vld [vmem:[#allocation13 + $0x790] sm:$0xff]  ;;  %v1201_v26 = vld [vmem:[#allocation13 + $0x858] sm:$0xff] }
 0x512   :  { %4010 = vmatpush1.bf16.msra.mxu0 %v4009_v33  ;;  %4266 = vmatpush1.bf16.msra.mxu1 %v4265_v34  ;;  %v1065_v33 = vld [vmem:[#allocation13 + $0x418] sm:$0xff] }
 0x513   :  { %4012 = vmatprep.subr.bf16.mxu0 %v4011_v36  ;;  %4268 = vmatprep.subr.bf16.mxu1 %v4267_v37  ;;  %v1073_v34 = vld [vmem:[#allocation13 + $0x458] sm:$0xff]  ;;  %v1064_v37 = vld [vmem:[#allocation13 + $0x410] sm:$0xff] }
 0x514   :  { %v4047_v36 = vpack.c.bf16 %v1073_v34, %v1065_v33  ;;  %v4049_v41 = vpack.c.bf16 %v1072_v7, %v1064_v37  ;;  %v1208_v34 = vld [vmem:[#allocation13 + $0x890] sm:$0xff]  ;;  %v1233_v37 = vld [vmem:[#allocation13 + $0x958] sm:$0xff] }
 0x516   :  { %4014 = vmatpush1.bf16.msra.mxu0 %v4013_v43  ;;  %4270 = vmatpush1.bf16.msra.mxu1 %v4269_v44  ;;  %v1080_v43 = vld [vmem:[#allocation13 + $0x490] sm:$0xff] }
 0x517   :  { %4016 = vmatprep.subr.bf16.mxu0 %v4015_v45  ;;  %v1088_v44 = vld [vmem:[#allocation13 + $0x4d0] sm:$0xff]  ;;  %v1097_v45 = vld [vmem:[#allocation13 + $0x518] sm:$0xff] }
 0x518   :  { %v4053_v47 = vpack.c.bf16 %v1088_v44, %v1080_v43  ;;  %v4055_v49 = vpack.c.bf16 %v1105_v46, %v1097_v45  ;;  %v1249_v43 = vld [vmem:[#allocation13 + $0x9d8] sm:$0xff]  ;;  %v2158_v44 = vld [vmem:[%s6069_s8 + $0x80] sm:$0xff] }
 0x519   :  { %1582 = vmatmul.mubr.f32.vlgmr.msra.gmra.mrb[8].mxu0 %v5528_v52  ;;  %1866 = vmatmul.mubr.f32.vlgmr.msra.gmra.mrb[6].mxu1 %v5528_v52  ;;  %v2159_v45 = vld [vmem:[%s6069_s8 + $0x88] sm:$0xff]  ;;  %v2142_v46 = vld [vmem:[%s6069_s8] sm:$0xff] }
 0x51a   :  { %4018 = vmatpush1.bf16.msra.mxu0 %v4017_v51  ;;  %1652 = vmatprep.mubr.f32.mxu0 %v5515_v6  ;;  %v1104_v51 = vld [vmem:[#allocation13 + $0x550] sm:$0xff] }
 0x51b   :  { %4020 = vmatprep.subr.bf16.mxu0 %v4019_v53  ;;  %v1113_v53 = vld [vmem:[#allocation13 + $0x598] sm:$0xff]  ;;  %v4057_v55 = vpack.c.bf16 %v1104_v51, %v1096_v50  ;;  %v4089_v51 = vpack.c.bf16 %v1232_v40, %v1224_v38 }
 0x51c   :  { %v4059_v56 = vpack.c.bf16 %v1121_v54, %v1113_v53  ;;  %v1240_v53 = vld [vmem:[#allocation13 + $0x990] sm:$0xff]  ;;  %v1321_v38 = vld [vmem:[#allocation13 + $0xc18] sm:$0xff] }
 0x51d   :  { %v1248_v54 = vld [vmem:[#allocation13 + $0x9d0] sm:$0xff]  ;;  %v1329_v40 = vld [vmem:[#allocation13 + $0xc58] sm:$0xff] }
 0x51e   :  { %4022 = vmatpush1.bf16.msra.mxu0 %v4021_v58  ;;  %v1120_v58 = vld [vmem:[#allocation13 + $0x5d0] sm:$0xff] }
 0x51f   :  { %4024 = vmatprep.subr.bf16.mxu0 %v4023_v59  ;;  %v1129_v59 = vld [vmem:[#allocation13 + $0x618] sm:$0xff]  ;;  %v4061_v61 = vpack.c.bf16 %v1120_v58, %v1112_v57 }
 0x520   :  { %v4063_v28 = vpack.c.bf16 %v1137_v60, %v1129_v59  ;;  %v1265_v57 = vld [vmem:[#allocation13 + $0xa58] sm:$0xff]  ;;  %v2161_v59 = vld [vmem:[%s6069_s8 + $0x98] sm:$0xff] }
 0x521   :  { %v2160_v58 = vld [vmem:[%s6069_s8 + $0x90] sm:$0xff] }
 0x522   :  { %4026 = vmatpush1.bf16.msra.mxu0 %v4025_v2  ;;  %v1136_v2 = vld [vmem:[#allocation13 + $0x650] sm:$0xff]  ;;  %v2144_v60 = vld [vmem:[%s6069_s8 + $0x10] sm:$0xff] }
 0x523   :  { %4028 = vmatprep.subr.bf16.mxu0 %v4027_v3  ;;  %v1145_v3 = vld [vmem:[#allocation13 + $0x698] sm:$0xff]  ;;  %v4065_v23 = vpack.c.bf16 %v1136_v2, %v1128_v62  ;;  %v4093_v2 = vpack.c.bf16 %v1248_v54, %v1240_v53 }
 0x524   :  { %v4067_v5 = vpack.c.bf16 %v1153_v4, %v1145_v3  ;;  %v1256_v3 = vld [vmem:[#allocation13 + $0xa10] sm:$0xff]  ;;  %v1337_v53 = vld [vmem:[#allocation13 + $0xc98] sm:$0xff] }
 0x525   :  { %v1264_v4 = vld [vmem:[#allocation13 + $0xa50] sm:$0xff]  ;;  %v1345_v54 = vld [vmem:[#allocation13 + $0xcd8] sm:$0xff] }
 0x526   :  { %4030 = vmatpush1.bf16.msra.mxu0 %v4029_v9  ;;  %v1152_v9 = vld [vmem:[#allocation13 + $0x6d0] sm:$0xff] }
 0x527   :  { %4032 = vmatprep.subr.bf16.mxu0 %v4031_v10  ;;  %v1161_v10 = vld [vmem:[#allocation13 + $0x718] sm:$0xff]  ;;  %v4069_v12 = vpack.c.bf16 %v1152_v9, %v1144_v8  ;;  %v2162_v9 = vld [vmem:[%s6069_s8 + $0xa0] sm:$0xff] }
 0x528   :  { %v4071_v13 = vpack.c.bf16 %v1169_v11, %v1161_v10  ;;  %v1281_v8 = vld [vmem:[#allocation13 + $0xad8] sm:$0xff]  ;;  %v2146_v11 = vld [vmem:[%s6069_s8 + $0x20] sm:$0xff] }
 0x529   :  { %v2163_v10 = vld [vmem:[%s6069_s8 + $0xa8] sm:$0xff] }
 0x52a   :  { %4034 = vmatpush1.bf16.msra.mxu0 %v4033_v15  ;;  %v1168_v15 = vld [vmem:[#allocation13 + $0x750] sm:$0xff] }
 0x52b   :  { %4036 = vmatprep.subr.bf16.mxu0 %v4035_v16  ;;  %v1177_v16 = vld [vmem:[#allocation13 + $0x798] sm:$0xff]  ;;  %v4073_v18 = vpack.c.bf16 %v1168_v15, %v1160_v14  ;;  %v4097_v15 = vpack.c.bf16 %v1264_v4, %v1256_v3 }
 0x52c   :  { %v4075_v19 = vpack.c.bf16 %v1185_v17, %v1177_v16  ;;  %v1272_v16 = vld [vmem:[#allocation13 + $0xa90] sm:$0xff]  ;;  %v1353_v3 = vld [vmem:[#allocation13 + $0xd18] sm:$0xff] }
 0x52d   :  { %v1280_v17 = vld [vmem:[#allocation13 + $0xad0] sm:$0xff]  ;;  %v1361_v4 = vld [vmem:[#allocation13 + $0xd58] sm:$0xff] }
 0x52e   :  { %4038 = vmatpush1.bf16.msra.mxu0 %v4037_v21  ;;  %v1184_v21 = vld [vmem:[#allocation13 + $0x7d0] sm:$0xff] }
 0x52f   :  { %4040 = vmatprep.subr.bf16.mxu0 %v4039_v25  ;;  %v1193_v25 = vld [vmem:[#allocation13 + $0x818] sm:$0xff]  ;;  %v4077_v27 = vpack.c.bf16 %v1184_v21, %v1176_v20 }
 0x530   :  { %v4079_v29 = vpack.c.bf16 %v1201_v26, %v1193_v25  ;;  %v1297_v20 = vld [vmem:[#allocation13 + $0xb58] sm:$0xff]  ;;  %v2165_v25 = vld [vmem:[%s6069_s8 + $0xb8] sm:$0xff] }
 0x531   :  { %v2164_v21 = vld [vmem:[%s6069_s8 + $0xb0] sm:$0xff] }
 0x532   :  { %4042 = vmatpush1.bf16.msra.mxu0 %v4041_v30  ;;  %v1200_v30 = vld [vmem:[#allocation13 + $0x850] sm:$0xff]  ;;  %v2148_v26 = vld [vmem:[%s6069_s8 + $0x30] sm:$0xff] }
 0x533   :  { %4044 = vmatprep.subr.bf16.mxu0 %v4043_v31  ;;  %v1209_v31 = vld [vmem:[#allocation13 + $0x898] sm:$0xff]  ;;  %v4081_v1 = vpack.c.bf16 %v1200_v30, %v1192_v63  ;;  %v4101_v30 = vpack.c.bf16 %v1280_v17, %v1272_v16  ;;  %v4119_v16 = vpack.c.bf16 %v1361_v4, %v1353_v3  ;;  %v1360_v17 = vld [vmem:[#allocation13 + $0xd50] sm:$0xff] }
 0x534   :  { %v4083_v33 = vpack.c.bf16 %v1217_v32, %v1209_v31  ;;  %v1288_v32 = vld [vmem:[#allocation13 + $0xb10] sm:$0xff]  ;;  %v957_v3 = vld [vmem:[#allocation13 + $0xb8] sm:$0xff] }
 0x535   :  { %v965_v4 = vld [vmem:[#allocation13 + $0xf8] sm:$0xff] }
 0x536   :  { %4046 = vmatpush1.bf16.msra.mxu0 %v4045_v35  ;;  %v1216_v35 = vld [vmem:[#allocation13 + $0x8d0] sm:$0xff] }
 0x537   :  { %4048 = vmatprep.subr.bf16.mxu0 %v4047_v36  ;;  %v1225_v36 = vld [vmem:[#allocation13 + $0x918] sm:$0xff]  ;;  %v4085_v7 = vpack.c.bf16 %v1216_v35, %v1208_v34 }
 0x538   :  { %v1313_v34 = vld [vmem:[#allocation13 + $0xbd8] sm:$0xff] }
 0x53a   :  { %4050 = vmatpush1.bf16.msra.mxu0 %v4049_v41  ;;  %v4087_v41 = vpack.c.bf16 %v1233_v37, %v1225_v36  ;;  %v1304_v36 = vld [vmem:[#allocation13 + $0xb90] sm:$0xff] }
 0x53b   :  { %4052 = vmatprep.subr.bf16.mxu0 %v4051_v42  ;;  %v1241_v42 = vld [vmem:[#allocation13 + $0x998] sm:$0xff]  ;;  %v1312_v37 = vld [vmem:[#allocation13 + $0xbd0] sm:$0xff] }
 0x53e   :  { %4054 = vmatpush1.bf16.msra.mxu0 %v4053_v47  ;;  %v2143_v47 = vld [vmem:[%s6069_s8 + $0x8] sm:$0xff] }
 0x53f   :  { %4056 = vmatprep.subr.bf16.mxu0 %v4055_v49  ;;  %v4399_v49 = vpack.c.bf16 %v2159_v45, %v2158_v44  ;;  %v4401_v50 = vpack.c.bf16 %v2143_v47, %v2142_v46  ;;  %v2151_v44 = vld [vmem:[%s6069_s8 + $0x48] sm:$0xff]  ;;  %v4109_v47 = vpack.c.bf16 %v1312_v37, %v1304_v36 }
 0x540   :  { %v1384_v37 = vld [vmem:[#allocation13 + $0xe10] sm:$0xff] }
 0x541   :  { %4400 = vmatprep.subr.bf16.mxu1 %v4399_v49  ;;  %v1320_v49 = vld [vmem:[#allocation13 + $0xc10] sm:$0xff] }
 0x542   :  { %4058 = vmatpush1.bf16.msra.mxu0 %v4057_v55  ;;  %v4091_v55 = vpack.c.bf16 %v1249_v43, %v1241_v42  ;;  %4402 = vmatpush3.bf16.msra.mxu1 %v4401_v50  ;;  %v2167_v42 = vld [vmem:[%s6069_s8 + $0xc8] sm:$0xff]  ;;  %v2150_v43 = vld [vmem:[%s6069_s8 + $0x40] sm:$0xff] }
 0x543   :  { %4060 = vmatprep.subr.bf16.mxu0 %v4059_v56  ;;  %v1257_v56 = vld [vmem:[#allocation13 + $0xa18] sm:$0xff]  ;;  %v4417_v46 = vpack.c.bf16 %v2151_v44, %v2150_v43  ;;  %v1328_v50 = vld [vmem:[#allocation13 + $0xc50] sm:$0xff] }
 0x544   :  { %v1400_v43 = vld [vmem:[#allocation13 + $0xe90] sm:$0xff] }
 0x545   :  { %v1408_v44 = vld [vmem:[#allocation13 + $0xed0] sm:$0xff] }
 0x546   :  { %4062 = vmatpush1.bf16.msra.mxu0 %v4061_v61  ;;  %v2145_v61 = vld [vmem:[%s6069_s8 + $0x18] sm:$0xff] }
 0x547   :  { %4064 = vmatprep.subr.bf16.mxu0 %v4063_v28  ;;  %v4403_v28 = vpack.c.bf16 %v2161_v59, %v2160_v58  ;;  %v4405_v62 = vpack.c.bf16 %v2145_v61, %v2144_v60  ;;  %v2153_v58 = vld [vmem:[%s6069_s8 + $0x58] sm:$0xff]  ;;  %v4113_v61 = vpack.c.bf16 %v1328_v50, %v1320_v49  ;;  %v1416_v50 = vld [vmem:[#allocation13 + $0xf10] sm:$0xff] }
 0x549   :  { %4404 = vmatprep.subr.bf16.mxu1 %v4403_v28  ;;  %v1336_v28 = vld [vmem:[#allocation13 + $0xc90] sm:$0xff] }
 0x54a   :  { %4066 = vmatpush1.bf16.msra.mxu0 %v4065_v23  ;;  %v4095_v23 = vpack.c.bf16 %v1265_v57, %v1257_v56  ;;  %4406 = vmatpush3.bf16.msra.mxu1 %v4405_v62  ;;  %v2169_v56 = vld [vmem:[%s6069_s8 + $0xd8] sm:$0xff]  ;;  %v2152_v57 = vld [vmem:[%s6069_s8 + $0x50] sm:$0xff]  ;;  %v1344_v62 = vld [vmem:[#allocation13 + $0xcd0] sm:$0xff] }
 0x54b   :  { %4068 = vmatprep.subr.bf16.mxu0 %v4067_v5  ;;  %v1273_v5 = vld [vmem:[#allocation13 + $0xa98] sm:$0xff]  ;;  %v4421_v60 = vpack.c.bf16 %v2153_v58, %v2152_v57  ;;  %v1432_v57 = vld [vmem:[#allocation13 + $0xf90] sm:$0xff] }
 0x54c   :  { %v1440_v58 = vld [vmem:[#allocation13 + $0xfd0] sm:$0xff] }
 0x54e   :  { %4070 = vmatpush1.bf16.msra.mxu0 %v4069_v12  ;;  %v2147_v12 = vld [vmem:[%s6069_s8 + $0x28] sm:$0xff] }
 0x54f   :  { %4072 = vmatprep.subr.bf16.mxu0 %v4071_v13  ;;  %v4407_v13 = vpack.c.bf16 %v2163_v10, %v2162_v9  ;;  %v4409_v14 = vpack.c.bf16 %v2147_v12, %v2146_v11  ;;  %v2155_v9 = vld [vmem:[%s6069_s8 + $0x68] sm:$0xff]  ;;  %v4117_v12 = vpack.c.bf16 %v1344_v62, %v1336_v28 }
 0x550   :  { %v940_v62 = vld [vmem:[#allocation13 + $0x30] sm:$0xff] }
 0x551   :  { %4408 = vmatprep.subr.bf16.mxu1 %v4407_v13  ;;  %v1352_v13 = vld [vmem:[#allocation13 + $0xd10] sm:$0xff] }
 0x552   :  { %4074 = vmatpush1.bf16.msra.mxu0 %v4073_v18  ;;  %v4099_v18 = vpack.c.bf16 %v1281_v8, %v1273_v5  ;;  %4410 = vmatpush3.bf16.msra.mxu1 %v4409_v14  ;;  %v2171_v5 = vld [vmem:[%s6069_s8 + $0xe8] sm:$0xff]  ;;  %v2154_v8 = vld [vmem:[%s6069_s8 + $0x60] sm:$0xff]  ;;  %v2172_v14 = vld [vmem:[%s6069_s8 + $0xf0] sm:$0xff] }
 0x553   :  { %4076 = vmatprep.subr.bf16.mxu0 %v4075_v19  ;;  %v1289_v19 = vld [vmem:[#allocation13 + $0xb18] sm:$0xff]  ;;  %v4425_v11 = vpack.c.bf16 %v2155_v9, %v2154_v8  ;;  %v956_v8 = vld [vmem:[#allocation13 + $0xb0] sm:$0xff] }
 0x554   :  { %v4103_v31 = vpack.c.bf16 %v1297_v20, %v1289_v19  ;;  %v2156_v19 = vld [vmem:[%s6069_s8 + $0x70] sm:$0xff]  ;;  %v2157_v20 = vld [vmem:[%s6069_s8 + $0x78] sm:$0xff]  ;;  %v964_v9 = vld [vmem:[#allocation13 + $0xf0] sm:$0xff] }
 0x556   :  { %4078 = vmatpush1.bf16.msra.mxu0 %v4077_v27  ;;  %v2149_v27 = vld [vmem:[%s6069_s8 + $0x38] sm:$0xff] }
 0x557   :  { %4080 = vmatprep.subr.bf16.mxu0 %v4079_v29  ;;  %v4411_v29 = vpack.c.bf16 %v2165_v25, %v2164_v21  ;;  %v4413_v63 = vpack.c.bf16 %v2149_v27, %v2148_v26  ;;  %v1369_v21 = vld [vmem:[#allocation13 + $0xd98] sm:$0xff]  ;;  %v4429_v26 = vpack.c.bf16 %v2157_v20, %v2156_v19  ;;  %v4121_v27 = vpack.c.bf16 %v1360_v17, %v1352_v13  ;;  %v988_v20 = vld [vmem:[#allocation13 + $0x1b0] sm:$0xff] }
 0x558   :  { %v1377_v25 = vld [vmem:[#allocation13 + $0xdd8] sm:$0xff] }
 0x559   :  { %1653 = vmatmul.mubr.f32.vlgmr.msra.gmra.mrb[10].mxu0 %v5517_v39  ;;  %4412 = vmatprep.subr.bf16.mxu1 %v4411_v29  ;;  %v1368_v29 = vld [vmem:[#allocation13 + $0xd90] sm:$0xff]  ;;  %v997_v17 = vld [vmem:[#allocation13 + $0x1f8] sm:$0xff] }
 0x55a   :  { %4082 = vmatpush1.bf16.msra.mxu0 %v4081_v1  ;;  %1723 = vmatprep.mubr.f32.mxu0 %v5521_v48  ;;  %v1296_v1 = vld [vmem:[#allocation13 + $0xb50] sm:$0xff] }
 0x55b   :  { %4084 = vmatprep.subr.bf16.mxu0 %v4083_v33  ;;  %v1305_v33 = vld [vmem:[#allocation13 + $0xb98] sm:$0xff]  ;;  %4414 = vmatpush3.bf16.msra.mxu1 %v4413_v63  ;;  %v4105_v35 = vpack.c.bf16 %v1296_v1, %v1288_v32  ;;  %v4123_v63 = vpack.c.bf16 %v1377_v25, %v1369_v21  ;;  %v996_v21 = vld [vmem:[#allocation13 + $0x1f0] sm:$0xff] }
 0x55c   :  { %v2223_v32 = vld [vmem:[%s6069_s8 + $0x288] sm:$0xff] }
 0x55d   :  { %v1385_v1 = vld [vmem:[#allocation13 + $0xe18] sm:$0xff] }
 0x55e   :  { %4086 = vmatpush1.bf16.msra.mxu0 %v4085_v7  ;;  %v4107_v7 = vpack.c.bf16 %v1313_v34, %v1305_v33  ;;  %v1393_v33 = vld [vmem:[#allocation13 + $0xe58] sm:$0xff] }
 0x55f   :  { %4088 = vmatprep.subr.bf16.mxu0 %v4087_v41  ;;  %v2166_v41 = vld [vmem:[%s6069_s8 + $0xc0] sm:$0xff]  ;;  %v4127_v36 = vpack.c.bf16 %v1393_v33, %v1385_v1  ;;  %v1005_v25 = vld [vmem:[#allocation13 + $0x238] sm:$0xff] }
 0x560   :  { %v4415_v45 = vpack.c.bf16 %v2167_v42, %v2166_v41  ;;  %v1020_v33 = vld [vmem:[#allocation13 + $0x2b0] sm:$0xff] }
 0x562   :  { %4090 = vmatpush1.bf16.msra.mxu0 %v4089_v51  ;;  %v4111_v51 = vpack.c.bf16 %v1329_v40, %v1321_v38  ;;  %4416 = vmatprep.subr.bf16.mxu1 %v4415_v45  ;;  %v1401_v38 = vld [vmem:[#allocation13 + $0xe98] sm:$0xff] }
 0x563   :  { %4092 = vmatprep.subr.bf16.mxu0 %v4091_v55  ;;  %v2168_v55 = vld [vmem:[%s6069_s8 + $0xd0] sm:$0xff]  ;;  %4418 = vmatpush3.bf16.msra.mxu1 %v4417_v46 }
 0x564   :  { %v4419_v59 = vpack.c.bf16 %v2169_v56, %v2168_v55  ;;  %v1409_v40 = vld [vmem:[#allocation13 + $0xed8] sm:$0xff] }
 0x565   :  { %v4131_v42 = vpack.c.bf16 %v1409_v40, %v1401_v38  ;;  %v1417_v45 = vld [vmem:[#allocation13 + $0xf18] sm:$0xff]  ;;  %v1036_v38 = vld [vmem:[#allocation13 + $0x330] sm:$0xff] }
 0x566   :  { %4094 = vmatpush1.bf16.msra.mxu0 %v4093_v2  ;;  %v4115_v2 = vpack.c.bf16 %v1345_v54, %v1337_v53  ;;  %4420 = vmatprep.subr.bf16.mxu1 %v4419_v59  ;;  %v1425_v46 = vld [vmem:[#allocation13 + $0xf58] sm:$0xff]  ;;  %v1044_v40 = vld [vmem:[#allocation13 + $0x370] sm:$0xff] }
 0x567   :  { %4096 = vmatprep.subr.bf16.mxu0 %v4095_v23  ;;  %v2170_v23 = vld [vmem:[%s6069_s8 + $0xe0] sm:$0xff]  ;;  %4422 = vmatpush3.bf16.msra.mxu1 %v4421_v60  ;;  %v4135_v49 = vpack.c.bf16 %v1425_v46, %v1417_v45  ;;  %v1433_v53 = vld [vmem:[#allocation13 + $0xf98] sm:$0xff] }
 0x568   :  { %v4423_v10 = vpack.c.bf16 %v2171_v5, %v2170_v23  ;;  %v1441_v54 = vld [vmem:[#allocation13 + $0xfd8] sm:$0xff]  ;;  %v4275_v5 = vpack.c.bf16 %v965_v4, %v957_v3  ;;  %v1052_v45 = vld [vmem:[#allocation13 + $0x3b0] sm:$0xff] }
 0x569   :  { %v4139_v56 = vpack.c.bf16 %v1441_v54, %v1433_v53  ;;  %v941_v59 = vld [vmem:[#allocation13 + $0x38] sm:$0xff]  ;;  %v1060_v46 = vld [vmem:[#allocation13 + $0x3f0] sm:$0xff] }
 0x56a   :  { %4098 = vmatpush1.bf16.msra.mxu0 %v4097_v15  ;;  %v2173_v15 = vld [vmem:[%s6069_s8 + $0xf8] sm:$0xff]  ;;  %4424 = vmatprep.subr.bf16.mxu1 %v4423_v10  ;;  %v949_v60 = vld [vmem:[#allocation13 + $0x78] sm:$0xff]  ;;  %v1068_v53 = vld [vmem:[#allocation13 + $0x430] sm:$0xff] }
 0x56b   :  { %4100 = vmatprep.subr.bf16.mxu0 %v4099_v18  ;;  %v4427_v18 = vpack.c.bf16 %v2173_v15, %v2172_v14  ;;  %4426 = vmatpush3.bf16.msra.mxu1 %v4425_v11  ;;  %v4271_v28 = vpack.c.bf16 %v949_v60, %v941_v59  ;;  %v973_v10 = vld [vmem:[#allocation13 + $0x138] sm:$0xff]  ;;  %v972_v14 = vld [vmem:[#allocation13 + $0x130] sm:$0xff] }
 0x56c   :  { %v981_v11 = vld [vmem:[#allocation13 + $0x178] sm:$0xff]  ;;  %v980_v15 = vld [vmem:[#allocation13 + $0x170] sm:$0xff] }
 0x56d   :  { %4428 = vmatprep.subr.bf16.mxu1 %v4427_v18  ;;  %v4279_v13 = vpack.c.bf16 %v981_v11, %v973_v10  ;;  %v4281_v18 = vpack.c.bf16 %v980_v15, %v972_v14  ;;  %v1076_v54 = vld [vmem:[#allocation13 + $0x470] sm:$0xff] }
 0x56e   :  { %4102 = vmatpush1.bf16.msra.mxu0 %v4101_v30  ;;  %v1376_v30 = vld [vmem:[#allocation13 + $0xdd0] sm:$0xff] }
 0x56f   :  { %4104 = vmatprep.subr.bf16.mxu0 %v4103_v31  ;;  %v2222_v31 = vld [vmem:[%s6069_s8 + $0x280] sm:$0xff]  ;;  %4430 = vmatpush3.bf16.msra.mxu1 %v4429_v26  ;;  %v1013_v26 = vld [vmem:[#allocation13 + $0x278] sm:$0xff] }
 0x570   :  { %v4463_v34 = vpack.c.bf16 %v2223_v32, %v2222_v31  ;;  %v1029_v31 = vld [vmem:[#allocation13 + $0x2f8] sm:$0xff]  ;;  %v1084_v59 = vld [vmem:[#allocation13 + $0x4b0] sm:$0xff] }
 0x571   :  { %v1092_v60 = vld [vmem:[#allocation13 + $0x4f0] sm:$0xff] }
 0x572   :  { %4106 = vmatpush1.bf16.msra.mxu0 %v4105_v35  ;;  %v4125_v35 = vpack.c.bf16 %v1376_v30, %v1368_v29  ;;  %4464 = vmatprep.subr.bf16.mxu1 %v4463_v34  ;;  %v4287_v29 = vpack.c.bf16 %v1013_v26, %v1005_v25  ;;  %v1021_v30 = vld [vmem:[#allocation13 + $0x2b8] sm:$0xff]  ;;  %v1028_v34 = vld [vmem:[#allocation13 + $0x2f0] sm:$0xff] }
 0x573   :  { %4108 = vmatprep.subr.bf16.mxu0 %v4107_v7  ;;  %v1392_v7 = vld [vmem:[#allocation13 + $0xe50] sm:$0xff]  ;;  %v4291_v1 = vpack.c.bf16 %v1029_v31, %v1021_v30 }
 0x574   :  { %v4129_v41 = vpack.c.bf16 %v1392_v7, %v1384_v37  ;;  %v4293_v37 = vpack.c.bf16 %v1028_v34, %v1020_v33  ;;  %v1100_v3 = vld [vmem:[#allocation13 + $0x530] sm:$0xff] }
 0x575   :  { %v1108_v4 = vld [vmem:[#allocation13 + $0x570] sm:$0xff] }
 0x576   :  { %4110 = vmatpush1.bf16.msra.mxu0 %v4109_v47  ;;  %v4133_v47 = vpack.c.bf16 %v1408_v44, %v1400_v43  ;;  %v4297_v43 = vpack.c.bf16 %v1044_v40, %v1036_v38  ;;  %v1116_v10 = vld [vmem:[#allocation13 + $0x5b0] sm:$0xff] }
 0x577   :  { %4112 = vmatprep.subr.bf16.mxu0 %v4111_v51  ;;  %v1424_v51 = vld [vmem:[#allocation13 + $0xf50] sm:$0xff] }
 0x578   :  { %v4137_v55 = vpack.c.bf16 %v1424_v51, %v1416_v50  ;;  %v4301_v50 = vpack.c.bf16 %v1060_v46, %v1052_v45  ;;  %v1124_v11 = vld [vmem:[#allocation13 + $0x5f0] sm:$0xff] }
 0x579   :  { %v4317_v14 = vpack.c.bf16 %v1124_v11, %v1116_v10  ;;  %v1148_v25 = vld [vmem:[#allocation13 + $0x6b0] sm:$0xff] }
 0x57a   :  { %4114 = vmatpush1.bf16.msra.mxu0 %v4113_v61  ;;  %v4141_v61 = vpack.c.bf16 %v1440_v58, %v1432_v57  ;;  %v4305_v57 = vpack.c.bf16 %v1076_v54, %v1068_v53  ;;  %v1156_v26 = vld [vmem:[#allocation13 + $0x6f0] sm:$0xff] }
 0x57b   :  { %4116 = vmatprep.subr.bf16.mxu0 %v4115_v2  ;;  %v948_v2 = vld [vmem:[#allocation13 + $0x70] sm:$0xff] }
 0x57c   :  { %v4273_v23 = vpack.c.bf16 %v948_v2, %v940_v62  ;;  %v4309_v62 = vpack.c.bf16 %v1092_v60, %v1084_v59  ;;  %v1164_v30 = vld [vmem:[#allocation13 + $0x730] sm:$0xff] }
 0x57d   :  { %v1172_v31 = vld [vmem:[#allocation13 + $0x770] sm:$0xff] }
 0x57e   :  { %4118 = vmatpush1.bf16.msra.mxu0 %v4117_v12  ;;  %v4277_v12 = vpack.c.bf16 %v964_v9, %v956_v8  ;;  %v4313_v8 = vpack.c.bf16 %v1108_v4, %v1100_v3  ;;  %v4329_v33 = vpack.c.bf16 %v1172_v31, %v1164_v30  ;;  %v1268_v4 = vld [vmem:[#allocation13 + $0xa70] sm:$0xff] }
 0x57f   :  { %4120 = vmatprep.subr.bf16.mxu0 %v4119_v16  ;;  %v989_v16 = vld [vmem:[#allocation13 + $0x1b8] sm:$0xff]  ;;  %v1276_v10 = vld [vmem:[#allocation13 + $0xab0] sm:$0xff] }
 0x580   :  { %v4283_v19 = vpack.c.bf16 %v997_v17, %v989_v16  ;;  %v1132_v16 = vld [vmem:[#allocation13 + $0x630] sm:$0xff] }
 0x581   :  { %v1140_v17 = vld [vmem:[#allocation13 + $0x670] sm:$0xff] }
 0x582   :  { %4122 = vmatpush1.bf16.msra.mxu0 %v4121_v27  ;;  %v4285_v27 = vpack.c.bf16 %v996_v21, %v988_v20  ;;  %v4321_v20 = vpack.c.bf16 %v1140_v17, %v1132_v16  ;;  %v1284_v11 = vld [vmem:[#allocation13 + $0xaf0] sm:$0xff] }
 0x583   :  { %4124 = vmatprep.subr.bf16.mxu0 %v4123_v63  ;;  %v1012_v63 = vld [vmem:[#allocation13 + $0x270] sm:$0xff] }
 0x584   :  { %v1292_v16 = vld [vmem:[#allocation13 + $0xb30] sm:$0xff] }
 0x585   :  { %v1300_v17 = vld [vmem:[#allocation13 + $0xb70] sm:$0xff] }
 0x586   :  { %4126 = vmatpush1.bf16.msra.mxu0 %v4125_v35  ;;  %v1037_v35 = vld [vmem:[#allocation13 + $0x338] sm:$0xff]  ;;  %v4361_v31 = vpack.c.bf16 %v1300_v17, %v1292_v16 }
 0x587   :  { %4128 = vmatprep.subr.bf16.mxu0 %v4127_v36  ;;  %v1045_v36 = vld [vmem:[#allocation13 + $0x378] sm:$0xff] }
 0x588   :  { %v4295_v7 = vpack.c.bf16 %v1045_v36, %v1037_v35  ;;  %v1180_v35 = vld [vmem:[#allocation13 + $0x7b0] sm:$0xff] }
 0x589   :  { %v1188_v36 = vld [vmem:[#allocation13 + $0x7f0] sm:$0xff] }
 0x58a   :  { %4130 = vmatpush1.bf16.msra.mxu0 %v4129_v41  ;;  %v1053_v41 = vld [vmem:[#allocation13 + $0x3b8] sm:$0xff]  ;;  %v4333_v38 = vpack.c.bf16 %v1188_v36, %v1180_v35  ;;  %v1316_v36 = vld [vmem:[#allocation13 + $0xbf0] sm:$0xff] }
 0x58b   :  { %4132 = vmatprep.subr.bf16.mxu0 %v4131_v42  ;;  %v1061_v42 = vld [vmem:[#allocation13 + $0x3f8] sm:$0xff] }
 0x58c   :  { %v4299_v44 = vpack.c.bf16 %v1061_v42, %v1053_v41  ;;  %v1196_v41 = vld [vmem:[#allocation13 + $0x830] sm:$0xff] }
 0x58d   :  { %v1204_v42 = vld [vmem:[#allocation13 + $0x870] sm:$0xff] }
 0x58e   :  { %4134 = vmatpush1.bf16.msra.mxu0 %v4133_v47  ;;  %v1069_v47 = vld [vmem:[#allocation13 + $0x438] sm:$0xff]  ;;  %v4337_v45 = vpack.c.bf16 %v1204_v42, %v1196_v41 }
 0x58f   :  { %4136 = vmatprep.subr.bf16.mxu0 %v4135_v49  ;;  %v1077_v49 = vld [vmem:[#allocation13 + $0x478] sm:$0xff] }
 0x590   :  { %v4303_v51 = vpack.c.bf16 %v1077_v49, %v1069_v47  ;;  %v1212_v47 = vld [vmem:[#allocation13 + $0x8b0] sm:$0xff] }
 0x591   :  { %v1220_v49 = vld [vmem:[#allocation13 + $0x8f0] sm:$0xff] }
 0x592   :  { %4138 = vmatpush1.bf16.msra.mxu0 %v4137_v55  ;;  %v1085_v55 = vld [vmem:[#allocation13 + $0x4b8] sm:$0xff]  ;;  %v4341_v53 = vpack.c.bf16 %v1220_v49, %v1212_v47 }
 0x593   :  { %4140 = vmatprep.subr.bf16.mxu0 %v4139_v56  ;;  %v1093_v56 = vld [vmem:[#allocation13 + $0x4f8] sm:$0xff] }
 0x594   :  { %v4307_v58 = vpack.c.bf16 %v1093_v56, %v1085_v55  ;;  %v1228_v55 = vld [vmem:[#allocation13 + $0x930] sm:$0xff] }
 0x595   :  { %v1236_v56 = vld [vmem:[#allocation13 + $0x970] sm:$0xff] }
 0x596   :  { %4142 = vmatpush1.bf16.msra.mxu0 %v4141_v61  ;;  %v1101_v61 = vld [vmem:[#allocation13 + $0x538] sm:$0xff]  ;;  %v4345_v59 = vpack.c.bf16 %v1236_v56, %v1228_v55  ;;  %v1324_v55 = vld [vmem:[#allocation13 + $0xc30] sm:$0xff] }
 0x597   :  { %4272 = vmatprep.subr.bf16.mxu0 %v4271_v28  ;;  %v1109_v28 = vld [vmem:[#allocation13 + $0x578] sm:$0xff]  ;;  %v1332_v56 = vld [vmem:[#allocation13 + $0xc70] sm:$0xff] }
 0x598   :  { %v4311_v2 = vpack.c.bf16 %v1109_v28, %v1101_v61  ;;  %v1244_v61 = vld [vmem:[#allocation13 + $0x9b0] sm:$0xff] }
 0x599   :  { %1724 = vmatmul.mubr.f32.vlgmr.msra.gmra.mrb[10].mxu0 %v5528_v52  ;;  %v1252_v28 = vld [vmem:[#allocation13 + $0x9f0] sm:$0xff] }
 0x59a   :  { %4274 = vmatpush1.bf16.msra.mxu0 %v4273_v23  ;;  %1936 = vmatprep.mubr.f32.mxu0 %v5515_v6  ;;  %v1004_v6 = vld [vmem:[#allocation13 + $0x230] sm:$0xff]  ;;  %v1117_v23 = vld [vmem:[#allocation13 + $0x5b8] sm:$0xff] }
 0x59b   :  { %4276 = vmatprep.subr.bf16.mxu0 %v4275_v5  ;;  %v4289_v32 = vpack.c.bf16 %v1012_v63, %v1004_v6  ;;  %v1125_v5 = vld [vmem:[#allocation13 + $0x5f8] sm:$0xff]  ;;  %v4325_v6 = vpack.c.bf16 %v1156_v26, %v1148_v25 }
 0x59c   :  { %v4315_v9 = vpack.c.bf16 %v1125_v5, %v1117_v23  ;;  %v1277_v23 = vld [vmem:[#allocation13 + $0xab8] sm:$0xff] }
 0x59d   :  { %v1285_v5 = vld [vmem:[#allocation13 + $0xaf8] sm:$0xff] }
 0x59e   :  { %4278 = vmatpush1.bf16.msra.mxu0 %v4277_v12  ;;  %v1133_v12 = vld [vmem:[#allocation13 + $0x638] sm:$0xff] }
 0x59f   :  { %4280 = vmatprep.subr.bf16.mxu0 %v4279_v13  ;;  %v1141_v13 = vld [vmem:[#allocation13 + $0x678] sm:$0xff] }
 0x5a0   :  { %v4319_v15 = vpack.c.bf16 %v1141_v13, %v1133_v12  ;;  %v1293_v12 = vld [vmem:[#allocation13 + $0xb38] sm:$0xff] }
 0x5a1   :  { %v1301_v13 = vld [vmem:[#allocation13 + $0xb78] sm:$0xff] }
 0x5a2   :  { %4282 = vmatpush1.bf16.msra.mxu0 %v4281_v18  ;;  %v1149_v18 = vld [vmem:[#allocation13 + $0x6b8] sm:$0xff] }
 0x5a3   :  { %4284 = vmatprep.subr.bf16.mxu0 %v4283_v19  ;;  %v1157_v19 = vld [vmem:[#allocation13 + $0x6f8] sm:$0xff] }
 0x5a4   :  { %v4323_v21 = vpack.c.bf16 %v1157_v19, %v1149_v18 }
 0x5a6   :  { %4286 = vmatpush1.bf16.msra.mxu0 %v4285_v27  ;;  %v1165_v27 = vld [vmem:[#allocation13 + $0x738] sm:$0xff] }
 0x5a7   :  { %4288 = vmatprep.subr.bf16.mxu0 %v4287_v29  ;;  %v1173_v29 = vld [vmem:[#allocation13 + $0x778] sm:$0xff] }
 0x5a8   :  { %v4327_v63 = vpack.c.bf16 %v1173_v29, %v1165_v27 }
 0x5aa   :  { %4290 = vmatpush1.bf16.msra.mxu0 %v4289_v32  ;;  %v1181_v32 = vld [vmem:[#allocation13 + $0x7b8] sm:$0xff] }
 0x5ab   :  { %4292 = vmatprep.subr.bf16.mxu0 %v4291_v1  ;;  %v1189_v1 = vld [vmem:[#allocation13 + $0x7f8] sm:$0xff] }
 0x5ac   :  { %v4331_v34 = vpack.c.bf16 %v1189_v1, %v1181_v32  ;;  %v1308_v32 = vld [vmem:[#allocation13 + $0xbb0] sm:$0xff] }
 0x5ad   :  { %v4365_v47 = vpack.c.bf16 %v1316_v36, %v1308_v32 }
 0x5ae   :  { %4294 = vmatpush1.bf16.msra.mxu0 %v4293_v37  ;;  %v1197_v37 = vld [vmem:[#allocation13 + $0x838] sm:$0xff] }
 0x5af   :  { %4296 = vmatprep.subr.bf16.mxu0 %v4295_v7  ;;  %v1205_v7 = vld [vmem:[#allocation13 + $0x878] sm:$0xff] }
 0x5b0   :  { %v4335_v40 = vpack.c.bf16 %v1205_v7, %v1197_v37  ;;  %v1325_v37 = vld [vmem:[#allocation13 + $0xc38] sm:$0xff] }
 0x5b1   :  { %v1333_v7 = vld [vmem:[#allocation13 + $0xc78] sm:$0xff] }
 0x5b2   :  { %4298 = vmatpush1.bf16.msra.mxu0 %v4297_v43  ;;  %v1213_v43 = vld [vmem:[#allocation13 + $0x8b8] sm:$0xff]  ;;  %v4367_v49 = vpack.c.bf16 %v1333_v7, %v1325_v37 }
 0x5b3   :  { %4300 = vmatprep.subr.bf16.mxu0 %v4299_v44  ;;  %v1221_v44 = vld [vmem:[#allocation13 + $0x8f8] sm:$0xff] }
 0x5b4   :  { %v4339_v46 = vpack.c.bf16 %v1221_v44, %v1213_v43  ;;  %v1373_v37 = vld [vmem:[#allocation13 + $0xdb8] sm:$0xff] }
 0x5b5   :  { %v1381_v7 = vld [vmem:[#allocation13 + $0xdf8] sm:$0xff] }
 0x5b6   :  { %4302 = vmatpush1.bf16.msra.mxu0 %v4301_v50  ;;  %v1229_v50 = vld [vmem:[#allocation13 + $0x938] sm:$0xff] }
 0x5b7   :  { %4304 = vmatprep.subr.bf16.mxu0 %v4303_v51  ;;  %v1237_v51 = vld [vmem:[#allocation13 + $0x978] sm:$0xff] }
 0x5b8   :  { %v4343_v54 = vpack.c.bf16 %v1237_v51, %v1229_v50 }
 0x5ba   :  { %4306 = vmatpush1.bf16.msra.mxu0 %v4305_v57  ;;  %v1245_v57 = vld [vmem:[#allocation13 + $0x9b8] sm:$0xff] }
 0x5bb   :  { %4308 = vmatprep.subr.bf16.mxu0 %v4307_v58  ;;  %v1253_v58 = vld [vmem:[#allocation13 + $0x9f8] sm:$0xff] }
 0x5bc   :  { %v4347_v60 = vpack.c.bf16 %v1253_v58, %v1245_v57  ;;  %v1341_v58 = vld [vmem:[#allocation13 + $0xcb8] sm:$0xff] }
 0x5be   :  { %4310 = vmatpush1.bf16.msra.mxu0 %v4309_v62  ;;  %v1261_v62 = vld [vmem:[#allocation13 + $0xa38] sm:$0xff] }
 0x5bf   :  { %4312 = vmatprep.subr.bf16.mxu0 %v4311_v2  ;;  %v1269_v2 = vld [vmem:[#allocation13 + $0xa78] sm:$0xff] }
 0x5c0   :  { %v4351_v3 = vpack.c.bf16 %v1269_v2, %v1261_v62 }
 0x5c2   :  { %4314 = vmatpush1.bf16.msra.mxu0 %v4313_v8 }
 0x5c3   :  { %4316 = vmatprep.subr.bf16.mxu0 %v4315_v9  ;;  %v4355_v9 = vpack.c.bf16 %v1285_v5, %v1277_v23 }
 0x5c6   :  { %4318 = vmatpush1.bf16.msra.mxu0 %v4317_v14  ;;  %v4357_v14 = vpack.c.bf16 %v1284_v11, %v1276_v10  ;;  %v1357_v11 = vld [vmem:[#allocation13 + $0xd38] sm:$0xff] }
 0x5c7   :  { %4320 = vmatprep.subr.bf16.mxu0 %v4319_v15  ;;  %v4359_v15 = vpack.c.bf16 %v1301_v13, %v1293_v12  ;;  %v1365_v12 = vld [vmem:[#allocation13 + $0xd78] sm:$0xff] }
 0x5ca   :  { %4322 = vmatpush1.bf16.msra.mxu0 %v4321_v20  ;;  %v1309_v20 = vld [vmem:[#allocation13 + $0xbb8] sm:$0xff] }
 0x5cb   :  { %4324 = vmatprep.subr.bf16.mxu0 %v4323_v21  ;;  %v1317_v21 = vld [vmem:[#allocation13 + $0xbf8] sm:$0xff] }
 0x5cc   :  { %v4363_v35 = vpack.c.bf16 %v1317_v21, %v1309_v20  ;;  %v2206_v20 = vld [vmem:[%s6069_s8 + $0x200] sm:$0xff] }
 0x5ce   :  { %4326 = vmatpush1.bf16.msra.mxu0 %v4325_v6 }
 0x5cf   :  { %4328 = vmatprep.subr.bf16.mxu0 %v4327_v63 }
 0x5d2   :  { %4330 = vmatpush1.bf16.msra.mxu0 %v4329_v33 }
 0x5d3   :  { %4332 = vmatprep.subr.bf16.mxu0 %v4331_v34 }
 0x5d6   :  { %4334 = vmatpush1.bf16.msra.mxu0 %v4333_v38 }
 0x5d7   :  { %4336 = vmatprep.subr.bf16.mxu0 %v4335_v40 }
 0x5d9   :  { %1937 = vmatmul.mubr.f32.vlgmr.msra.gmra.mrb[12].mxu0 %v5517_v39  ;;  %v4349_v39 = vpack.c.bf16 %v1252_v28, %v1244_v61 }
 0x5da   :  { %4338 = vmatpush1.bf16.msra.mxu0 %v4337_v45  ;;  %2007 = vmatprep.mubr.f32.mxu0 %v5521_v48  ;;  %v1260_v48 = vld [vmem:[#allocation13 + $0xa30] sm:$0xff] }
 0x5db   :  { %4340 = vmatprep.subr.bf16.mxu0 %v4339_v46  ;;  %v4353_v8 = vpack.c.bf16 %v1268_v4, %v1260_v48 }
 0x5de   :  { %4342 = vmatpush1.bf16.msra.mxu0 %v4341_v53 }
 0x5df   :  { %4344 = vmatprep.subr.bf16.mxu0 %v4343_v54 }
 0x5e2   :  { %4346 = vmatpush1.bf16.msra.mxu0 %v4345_v59  ;;  %v1349_v59 = vld [vmem:[#allocation13 + $0xcf8] sm:$0xff] }
 0x5e3   :  { %4348 = vmatprep.subr.bf16.mxu0 %v4347_v60  ;;  %v4371_v5 = vpack.c.bf16 %v1349_v59, %v1341_v58  ;;  %v1389_v58 = vld [vmem:[#allocation13 + $0xe38] sm:$0xff] }
 0x5e4   :  { %v1397_v59 = vld [vmem:[#allocation13 + $0xe78] sm:$0xff] }
 0x5e6   :  { %4350 = vmatpush1.bf16.msra.mxu0 %v4349_v39 }
 0x5e7   :  { %4352 = vmatprep.subr.bf16.mxu0 %v4351_v3  ;;  %v4369_v3 = vpack.c.bf16 %v1332_v56, %v1324_v55  ;;  %v2227_v55 = vld [vmem:[%s6069_s8 + $0x2a8] sm:$0xff] }
 0x5ea   :  { %4354 = vmatpush1.bf16.msra.mxu0 %v4353_v8  ;;  %v1340_v8 = vld [vmem:[#allocation13 + $0xcb0] sm:$0xff] }
 0x5eb   :  { %4356 = vmatprep.subr.bf16.mxu0 %v4355_v9  ;;  %v1348_v9 = vld [vmem:[#allocation13 + $0xcf0] sm:$0xff] }
 0x5ec   :  { %v5641_v18 = vpop.f32.mrb[8].mxu0  ;;  %v5643_v19 = vpop.f32.mrb[6].mxu1  ;;  %v4373_v17 = vpack.c.bf16 %v1348_v9, %v1340_v8  ;;  %v1405_v8 = vld [vmem:[#allocation13 + $0xeb8] sm:$0xff] }
 0x5ed   :  { %v2014_v25 = vsel %vm447_vm5, %v5641_v18, 0.0  ;;  %v2070_v26 = vmul.f32 %v5641_v18, %v5641_v18  ;;  %v5649_v27 = vpop.f32.mrb[9].mxu0  ;;  %v5651_v29 = vpop.f32.mrb[7].mxu1  ;;  %v2074_v56 = vmul.f32 %v5643_v19, %v5643_v19  ;;  %v1413_v9 = vld [vmem:[#allocation13 + $0xef8] sm:$0xff] }
 0x5ee   :  { %v2015_v6 = vrot.slane %v2014_v25, 4  ;;  %v2021_v63 = vsel %vm447_vm5, %v5649_v27, 0.0  ;;  %v2071_v30 = vmul.f32 %v5649_v27, %v5649_v27  ;;  %4358 = vmatpush1.bf16.msra.mxu0 %v4357_v14  ;;  %v2049_v34 = vsel %vm447_vm5, %v5651_v29, 0.0 }
 0x5ef   :  { %v2078_v1 = vsel %vm447_vm5, %v2070_v26, 0.0  ;;  %v2022_v33 = vrot.slane %v2021_v63, 4  ;;  %4360 = vmatprep.subr.bf16.mxu0 %v4359_v15  ;;  %v2050_v43 = vrot.slane %v2049_v34, 4  ;;  %v2075_v44 = vmul.f32 %v5651_v29, %v5651_v29 }
 0x5f0   :  { %v2016_v38 = vadd.f32 %v2015_v6, %v2014_v25  ;;  %v2079_v40 = vrot.slane %v2078_v1, 4  ;;  %v2085_v42 = vsel %vm447_vm5, %v2071_v30, 0.0  ;;  %v2207_v25 = vld [vmem:[%s6069_s8 + $0x208] sm:$0xff] }
 0x5f1   :  { %v2023_v41 = vadd.f32 %v2022_v33, %v2021_v63  ;;  %v2086_v51 = vrot.slane %v2085_v42, 4  ;;  %v2051_v53 = vadd.f32 %v2050_v43, %v2049_v34  ;;  %v2113_v54 = vsel %vm447_vm5, %v2075_v44, 0.0  ;;  %v1356_v30 = vld [vmem:[#allocation13 + $0xd30] sm:$0xff]  ;;  %v2225_v33 = vld [vmem:[%s6069_s8 + $0x298] sm:$0xff] }
 0x5f2   :  { %v2017_v45 = vrot.slane %v2016_v38, 2  ;;  %v2080_v46 = vadd.f32 %v2079_v40, %v2078_v1  ;;  %4362 = vmatpush1.bf16.msra.mxu0 %v4361_v31  ;;  %v2114_v62 = vrot.slane %v2113_v54, 4  ;;  %v4375_v63 = vpack.c.bf16 %v1365_v12, %v1357_v11  ;;  %v1364_v31 = vld [vmem:[#allocation13 + $0xd70] sm:$0xff]  ;;  %v2224_v1 = vld [vmem:[%s6069_s8 + $0x290] sm:$0xff] }
 0x5f3   :  { %v2024_v50 = vrot.slane %v2023_v41, 2  ;;  %4364 = vmatprep.subr.bf16.mxu0 %v4363_v35  ;;  %v2087_v61 = vadd.f32 %v2086_v51, %v2085_v42  ;;  %v2052_v28 = vrot.slane %v2051_v53, 2  ;;  %v4465_v40 = vpack.c.bf16 %v2207_v25, %v2206_v20  ;;  %v2230_v25 = vld [vmem:[%s6069_s8 + $0x2c0] sm:$0xff] }
 0x5f4   :  { %v2081_v57 = vrot.slane %v2080_v46, 2  ;;  %v2018_v2 = vadd.f32 %v2017_v45, %v2016_v38  ;;  %v2115_v23 = vadd.f32 %v2114_v62, %v2113_v54  ;;  %v4467_v45 = vpack.c.bf16 %v2225_v33, %v2224_v1  ;;  %v2226_v54 = vld [vmem:[%s6069_s8 + $0x2a0] sm:$0xff] }
 0x5f5   :  { %v2025_v60 = vadd.f32 %v2024_v50, %v2023_v41  ;;  %v2088_v48 = vrot.slane %v2087_v61, 2  ;;  %v2053_v4 = vadd.f32 %v2052_v28, %v2051_v53  ;;  %v4377_v41 = vpack.c.bf16 %v1364_v31, %v1356_v30  ;;  %v1380_v53 = vld [vmem:[#allocation13 + $0xdf0] sm:$0xff] }
 0x5f6   :  { %v2082_v39 = vadd.f32 %v2081_v57, %v2080_v46  ;;  %4366 = vmatpush1.bf16.msra.mxu0 %v4365_v47  ;;  %v2116_v13 = vrot.slane %v2115_v23, 2  ;;  %v2019_v16 = vrot.slane %v2018_v2, 1  ;;  %v2208_v46 = vld [vmem:[%s6069_s8 + $0x210] sm:$0xff]  ;;  %v2209_v47 = vld [vmem:[%s6069_s8 + $0x218] sm:$0xff]  ;;  %v4379_v51 = vpack.c.bf16 %v1381_v7, %v1373_v37  ;;  %v2210_v62 = vld [vmem:[%s6069_s8 + $0x220] sm:$0xff] }
 0x5f7   :  { %4368 = vmatprep.subr.bf16.mxu0 %v4367_v49  ;;  %v2026_v14 = vrot.slane %v2025_v60, 1  ;;  %v2089_v15 = vadd.f32 %v2088_v48, %v2087_v61  ;;  %v2054_v26 = vrot.slane %v2053_v4, 1  ;;  %v1372_v49 = vld [vmem:[#allocation13 + $0xdb0] sm:$0xff]  ;;  %v4471_v28 = vpack.c.bf16 %v2227_v55, %v2226_v54 }
 0x5f8   :  { %v2083_v10 = vrot.slane %v2082_v39, 1  ;;  %v2117_v6 = vadd.f32 %v2116_v13, %v2115_v23  ;;  %v2020_v38 = vadd.f32 %v2019_v16, %v2018_v2  ;;  %v4381_v61 = vpack.c.bf16 %v1380_v53, %v1372_v49  ;;  %v2211_v2 = vld [vmem:[%s6069_s8 + $0x228] sm:$0xff]  ;;  %v2229_v23 = vld [vmem:[%s6069_s8 + $0x2b8] sm:$0xff]  ;;  %v2214_v33 = vld [vmem:[%s6069_s8 + $0x240] sm:$0xff] }
 0x5f9   :  { %v2090_v21 = vrot.slane %v2089_v15, 1  ;;  %v2027_v34 = vadd.f32 %v2026_v14, %v2025_v60  ;;  %v2055_v43 = vadd.f32 %v2054_v26, %v2053_v4  ;;  %v4469_v60 = vpack.c.bf16 %v2209_v47, %v2208_v46  ;;  %v1396_v48 = vld [vmem:[#allocation13 + $0xe70] sm:$0xff]  ;;  %v2228_v4 = vld [vmem:[%s6069_s8 + $0x2b0] sm:$0xff]  ;;  %v2217_v49 = vld [vmem:[%s6069_s8 + $0x258] sm:$0xff] }
 0x5fa   :  { %4370 = vmatpush1.bf16.msra.mxu0 %v4369_v3  ;;  %v2084_v32 = vadd.f32 %v2083_v10, %v2082_v39  ;;  %v2118_v36 = vrot.slane %v2117_v6, 1  ;;  %v1388_v39 = vld [vmem:[#allocation13 + $0xe30] sm:$0xff]  ;;  %v4383_v3 = vpack.c.bf16 %v1397_v59, %v1389_v58  ;;  %v4473_v10 = vpack.c.bf16 %v2211_v2, %v2210_v62  ;;  %v2212_v14 = vld [vmem:[%s6069_s8 + $0x230] sm:$0xff] }
 0x5fb   :  { %4372 = vmatprep.subr.bf16.mxu0 %v4371_v5  ;;  %v2091_v35 = vadd.f32 %v2090_v21, %v2089_v15  ;;  %v2106_v5 = vsel %vm447_vm5, %v2074_v56, 0.0  ;;  %v2042_v11 = vsel %vm447_vm5, %v5643_v19, 0.0  ;;  %v4385_v12 = vpack.c.bf16 %v1396_v48, %v1388_v39  ;;  %v2213_v15 = vld [vmem:[%s6069_s8 + $0x238] sm:$0xff]  ;;  %v1404_v16 = vld [vmem:[#allocation13 + $0xeb0] sm:$0xff]  ;;  %v2216_v47 = vld [vmem:[%s6069_s8 + $0x250] sm:$0xff] }
 0x5fc   :  { %v2119_v44 = vadd.f32 %v2118_v36, %v2117_v6  ;;  %v2134_v50 = vsel %vm508_vm6, %v2020_v38, %v2084_v32  ;;  %v4475_v13 = vpack.c.bf16 %v2229_v23, %v2228_v4  ;;  %v4387_v20 = vpack.c.bf16 %v1413_v9, %v1405_v8  ;;  %v1412_v21 = vld [vmem:[#allocation13 + $0xef0] sm:$0xff]  ;;  %v1421_v6 = vld [vmem:[#allocation13 + $0xf38] sm:$0xff]  ;;  %v2237_v48 = vld [vmem:[%s6069_s8 + $0x2f8] sm:$0xff] }
 0x5fd   :  { %v2135_v42 = vsel %vm508_vm6, %v2027_v34, %v2091_v35  ;;  %v2231_v26 = vld [vmem:[%s6069_s8 + $0x2c8] sm:$0xff]  ;;  %v2043_v30 = vrot.slane %v2042_v11, 4  ;;  %v4477_v31 = vpack.c.bf16 %v2213_v15, %v2212_v14  ;;  %v4389_v32 = vpack.c.bf16 %v1412_v21, %v1404_v16  ;;  %v2232_v38 = vld [vmem:[%s6069_s8 + $0x2d0] sm:$0xff]  ;;  %v2234_v55 = vld [vmem:[%s6069_s8 + $0x2e0] sm:$0xff] }
 0x5fe   :  { %4374 = vmatpush1.bf16.msra.mxu0 %v4373_v17  ;;  %2334 = vmatprep.mubr.f32.mxu1 %v2135_v42  ;;  %v2139_v57 = vsel %vm508_vm6, %v2055_v43, %v2119_v44  ;;  %v2107_v17 = vrot.slane %v2106_v5, 4  ;;  %v4479_v1 = vpack.c.bf16 %v2231_v26, %v2230_v25  ;;  %v2215_v34 = vld [vmem:[%s6069_s8 + $0x248] sm:$0xff]  ;;  %v2218_v62 = vld [vmem:[%s6069_s8 + $0x260] sm:$0xff]  ;;  %v2236_v39 = vld [vmem:[%s6069_s8 + $0x2f0] sm:$0xff] }
 0x5ff   :  { %4376 = vmatprep.subr.bf16.mxu0 %v4375_v63  ;;  %2335 = vmatmul.mubr.f32.vlgmr.msra.gmra.mrb[8].mxu1 %v2134_v50  ;;  %v1429_v63 = vld [vmem:[#allocation13 + $0xf78] sm:$0xff]  ;;  %v1420_v35 = vld [vmem:[#allocation13 + $0xf30] sm:$0xff]  ;;  %v2044_v43 = vadd.f32 %v2043_v30, %v2042_v11  ;;  %v4481_v44 = vpack.c.bf16 %v2215_v34, %v2214_v33  ;;  %v2193_v9 = vld [vmem:[%s6069_s8 + $0x198] sm:$0xff] }
 0x600   :  { %4466 = vmatpush3.bf16.msra.mxu1 %v4465_v40  ;;  %2474 = vmatprep.mubr.f32.mxu1 %v2139_v57  ;;  %v2108_v36 = vadd.f32 %v2107_v17, %v2106_v5  ;;  %v4391_v37 = vpack.c.bf16 %v1429_v63, %v1421_v6  ;;  %v1428_v7 = vld [vmem:[#allocation13 + $0xf70] sm:$0xff]  ;;  %v2233_v40 = vld [vmem:[%s6069_s8 + $0x2d8] sm:$0xff]  ;;  %v1445_v42 = vld [vmem:[#allocation13 + $0xff8] sm:$0xff] }
 0x601   :  { %4468 = vmatprep.subr.bf16.mxu1 %v4467_v45  ;;  %v4393_v45 = vpack.c.bf16 %v1428_v7, %v1420_v35  ;;  %v4483_v46 = vpack.c.bf16 %v2233_v40, %v2232_v38  ;;  %v1436_v50 = vld [vmem:[#allocation13 + $0xfb0] sm:$0xff]  ;;  %v2045_v59 = vrot.slane %v2044_v43, 2  ;;  %v2192_v8 = vld [vmem:[%s6069_s8 + $0x190] sm:$0xff]  ;;  %v2221_v14 = vld [vmem:[%s6069_s8 + $0x278] sm:$0xff] }
 0x602   :  { %4378 = vmatpush1.bf16.msra.mxu0 %v4377_v41  ;;  %v1437_v41 = vld [vmem:[#allocation13 + $0xfb8] sm:$0xff]  ;;  %v1444_v54 = vld [vmem:[#allocation13 + $0xff0] sm:$0xff]  ;;  %v4435_v17 = vpack.c.bf16 %v2193_v9, %v2192_v8  ;;  %v2177_v21 = vld [vmem:[%s6069_s8 + $0x118] sm:$0xff] }
 0x603   :  { %4380 = vmatprep.subr.bf16.mxu0 %v4379_v51  ;;  %v2109_v51 = vrot.slane %v2108_v36, 2  ;;  %v4395_v53 = vpack.c.bf16 %v1445_v42, %v1437_v41  ;;  %v2235_v56 = vld [vmem:[%s6069_s8 + $0x2e8] sm:$0xff]  ;;  %v2190_v57 = vld [vmem:[%s6069_s8 + $0x180] sm:$0xff]  ;;  %v2196_v34 = vld [vmem:[%s6069_s8 + $0x1b0] sm:$0xff] }
 0x604   :  { %4470 = vmatpush3.bf16.msra.mxu1 %v4469_v60  ;;  %v2191_v58 = vld [vmem:[%s6069_s8 + $0x188] sm:$0xff]  ;;  %v4485_v60 = vpack.c.bf16 %v2217_v49, %v2216_v47  ;;  %v2174_v23 = vld [vmem:[%s6069_s8 + $0x100] sm:$0xff]  ;;  %v2180_v38 = vld [vmem:[%s6069_s8 + $0x130] sm:$0xff] }
 0x605   :  { %4472 = vmatprep.subr.bf16.mxu1 %v4471_v28  ;;  %v4487_v28 = vpack.c.bf16 %v2235_v56, %v2234_v55  ;;  %v2219_v2 = vld [vmem:[%s6069_s8 + $0x268] sm:$0xff]  ;;  %v4431_v4 = vpack.c.bf16 %v2191_v58, %v2190_v57  ;;  %v2194_v25 = vld [vmem:[%s6069_s8 + $0x1a0] sm:$0xff]  ;;  %v2181_v40 = vld [vmem:[%s6069_s8 + $0x138] sm:$0xff] }
 0x606   :  { %4382 = vmatpush1.bf16.msra.mxu0 %v4381_v61  ;;  %v4397_v61 = vpack.c.bf16 %v1444_v54, %v1436_v50  ;;  %v2175_v5 = vld [vmem:[%s6069_s8 + $0x108] sm:$0xff]  ;;  %v4489_v11 = vpack.c.bf16 %v2219_v2, %v2218_v62  ;;  %v2198_v41 = vld [vmem:[%s6069_s8 + $0x1c0] sm:$0xff]  ;;  %v2200_v47 = vld [vmem:[%s6069_s8 + $0x1d0] sm:$0xff] }
 0x607   :  { %4384 = vmatprep.subr.bf16.mxu0 %v4383_v3  ;;  %v2110_v3 = vadd.f32 %v2109_v51, %v2108_v36  ;;  %v4433_v15 = vpack.c.bf16 %v2175_v5, %v2174_v23  ;;  %v2195_v26 = vld [vmem:[%s6069_s8 + $0x1a8] sm:$0xff]  ;;  %v2201_v49 = vld [vmem:[%s6069_s8 + $0x1d8] sm:$0xff]  ;;  %v2202_v55 = vld [vmem:[%s6069_s8 + $0x1e0] sm:$0xff] }
 0x608   :  { %4474 = vmatpush3.bf16.msra.mxu1 %v4473_v10  ;;  %v2046_v10 = vadd.f32 %v2045_v59, %v2044_v43  ;;  %v2179_v33 = vld [vmem:[%s6069_s8 + $0x128] sm:$0xff]  ;;  %v4445_v43 = vpack.c.bf16 %v2181_v40, %v2180_v38  ;;  %v4451_v51 = vpack.c.bf16 %v2201_v49, %v2200_v47  ;;  %v2185_v54 = vld [vmem:[%s6069_s8 + $0x158] sm:$0xff]  ;;  %v2186_v59 = vld [vmem:[%s6069_s8 + $0x160] sm:$0xff] }
 0x609   :  { %4476 = vmatprep.subr.bf16.mxu1 %v4475_v13  ;;  %v2220_v13 = vld [vmem:[%s6069_s8 + $0x270] sm:$0xff]  ;;  %v2111_v16 = vrot.slane %v2110_v3, 1  ;;  %v2199_v42 = vld [vmem:[%s6069_s8 + $0x1c8] sm:$0xff]  ;;  %v2238_v40 = vld [vmem:[%s6069_s8 + $0x300] sm:$0xff] }
 0x60a   :  { %4386 = vmatpush1.bf16.msra.mxu0 %v4385_v12  ;;  %v4491_v12 = vpack.c.bf16 %v2237_v48, %v2236_v39  ;;  %v2047_v6 = vrot.slane %v2046_v10, 1  ;;  %v4493_v63 = vpack.c.bf16 %v2221_v14, %v2220_v13  ;;  %v2203_v56 = vld [vmem:[%s6069_s8 + $0x1e8] sm:$0xff]  ;;  %v2188_v39 = vld [vmem:[%s6069_s8 + $0x170] sm:$0xff] }
 0x60b   :  { %4388 = vmatprep.subr.bf16.mxu0 %v4387_v20  ;;  %v2176_v20 = vld [vmem:[%s6069_s8 + $0x110] sm:$0xff]  ;;  %v4455_v58 = vpack.c.bf16 %v2203_v56, %v2202_v55  ;;  %v2255_v23 = vld [vmem:[%s6069_s8 + $0x388] sm:$0xff]  ;;  %v2258_v56 = vld [vmem:[%s6069_s8 + $0x3a0] sm:$0xff] }
 0x60c   :  { %4478 = vmatpush3.bf16.msra.mxu1 %v4477_v31  ;;  %v4437_v30 = vpack.c.bf16 %v2177_v21, %v2176_v20  ;;  %v2112_v31 = vadd.f32 %v2111_v16, %v2110_v3  ;;  %v2048_v35 = vadd.f32 %v2047_v6, %v2046_v10  ;;  %v2189_v3 = vld [vmem:[%s6069_s8 + $0x178] sm:$0xff] }
 0x60d   :  { %4480 = vmatprep.subr.bf16.mxu1 %v4479_v1  ;;  %v2178_v1 = vld [vmem:[%s6069_s8 + $0x120] sm:$0xff]  ;;  %v4461_v48 = vpack.c.bf16 %v2189_v3, %v2188_v39  ;;  %v2244_v3 = vld [vmem:[%s6069_s8 + $0x330] sm:$0xff] }
 0x60e   :  { %4390 = vmatpush1.bf16.msra.mxu0 %v4389_v32  ;;  %v4439_v32 = vpack.c.bf16 %v2195_v26, %v2194_v25  ;;  %v4441_v36 = vpack.c.bf16 %v2179_v33, %v2178_v1 }
 0x60f   :  { %4392 = vmatprep.subr.bf16.mxu0 %v4391_v37  ;;  %v2138_v37 = vsel %vm508_vm6, %v2048_v35, %v2112_v31 }
 0x610   :  { %4482 = vmatpush3.bf16.msra.mxu1 %v4481_v44  ;;  %v4447_v44 = vpack.c.bf16 %v2199_v42, %v2198_v41  ;;  %v2239_v41 = vld [vmem:[%s6069_s8 + $0x308] sm:$0xff] }
 0x611   :  { %4484 = vmatprep.subr.bf16.mxu1 %v4483_v46  ;;  %v2183_v46 = vld [vmem:[%s6069_s8 + $0x148] sm:$0xff]  ;;  %v4497_v49 = vpack.c.bf16 %v2239_v41, %v2238_v40 }
 0x612   :  { %4394 = vmatpush1.bf16.msra.mxu0 %v4393_v45  ;;  %v2182_v45 = vld [vmem:[%s6069_s8 + $0x140] sm:$0xff] }
 0x613   :  { %4396 = vmatprep.subr.bf16.mxu0 %v4395_v53  ;;  %v4449_v50 = vpack.c.bf16 %v2183_v46, %v2182_v45  ;;  %v2184_v53 = vld [vmem:[%s6069_s8 + $0x150] sm:$0xff] }
 0x614   :  { %4486 = vmatpush3.bf16.msra.mxu1 %v4485_v60  ;;  %v4453_v57 = vpack.c.bf16 %v2185_v54, %v2184_v53  ;;  %v2187_v60 = vld [vmem:[%s6069_s8 + $0x168] sm:$0xff]  ;;  %v2240_v53 = vld [vmem:[%s6069_s8 + $0x310] sm:$0xff]  ;;  %v2241_v54 = vld [vmem:[%s6069_s8 + $0x318] sm:$0xff] }
 0x615   :  { %4488 = vmatprep.subr.bf16.mxu1 %v4487_v28  ;;  %v2205_v28 = vld [vmem:[%s6069_s8 + $0x1f8] sm:$0xff]  ;;  %v4457_v62 = vpack.c.bf16 %v2187_v60, %v2186_v59  ;;  %v2242_v60 = vld [vmem:[%s6069_s8 + $0x320] sm:$0xff] }
 0x616   :  { %4398 = vmatpush1.bf16.msra.mxu0 %v4397_v61  ;;  %v2204_v61 = vld [vmem:[%s6069_s8 + $0x1f0] sm:$0xff] }
 0x617   :  { %4432 = vmatprep.subr.bf16.mxu0 %v4431_v4  ;;  %v4459_v2 = vpack.c.bf16 %v2205_v28, %v2204_v61  ;;  %v2254_v4 = vld [vmem:[%s6069_s8 + $0x380] sm:$0xff]  ;;  %v2243_v61 = vld [vmem:[%s6069_s8 + $0x328] sm:$0xff]  ;;  %v2260_v28 = vld [vmem:[%s6069_s8 + $0x3b0] sm:$0xff] }
 0x618   :  { %4490 = vmatpush3.bf16.msra.mxu1 %v4489_v11  ;;  %v4495_v5 = vpack.c.bf16 %v2255_v23, %v2254_v4  ;;  %v2262_v4 = vld [vmem:[%s6069_s8 + $0x3c0] sm:$0xff]  ;;  %v2263_v23 = vld [vmem:[%s6069_s8 + $0x3c8] sm:$0xff] }
 0x619   :  { %2008 = vmatmul.mubr.f32.vlgmr.msra.gmra.mrb[12].mxu0 %v5528_v52  ;;  %4492 = vmatprep.subr.bf16.mxu1 %v4491_v12  ;;  %v2197_v52 = vld [vmem:[%s6069_s8 + $0x1b8] sm:$0xff] }
 0x61a   :  { %4434 = vmatpush3.bf16.msra.mxu0 %v4433_v15  ;;  %v4443_v7 = vpack.c.bf16 %v2197_v52, %v2196_v34 }
 0x61b   :  { %4436 = vmatprep.subr.bf16.mxu0 %v4435_v17 }
 0x61c   :  { %4494 = vmatpush3.bf16.msra.mxu1 %v4493_v63 }
 0x61e   :  { %4438 = vmatpush3.bf16.msra.mxu0 %v4437_v30 }
 0x61f   :  { %4440 = vmatprep.subr.bf16.mxu0 %v4439_v32  ;;  %2475 = vmatmul.mubr.f32.vlgmr.msra.gmra.mrb[10].mxu1 %v2138_v37 }
 0x620   :  { %2670 = vmatprep.mubr.f32.mxu1 %v5082_v0 }
 0x622   :  { %4442 = vmatpush3.bf16.msra.mxu0 %v4441_v36 }
 0x623   :  { %4444 = vmatprep.subr.bf16.mxu0 %v4443_v7 }
 0x626   :  { %4446 = vmatpush3.bf16.msra.mxu0 %v4445_v43  ;;  %v2256_v43 = vld [vmem:[%s6069_s8 + $0x390] sm:$0xff] }
 0x627   :  { %4448 = vmatprep.subr.bf16.mxu0 %v4447_v44  ;;  %v2257_v44 = vld [vmem:[%s6069_s8 + $0x398] sm:$0xff] }
 0x62a   :  { %4450 = vmatpush3.bf16.msra.mxu0 %v4449_v50 }
 0x62b   :  { %4452 = vmatprep.subr.bf16.mxu0 %v4451_v51  ;;  %v4499_v51 = vpack.c.bf16 %v2257_v44, %v2256_v43 }
 0x62e   :  { %4454 = vmatpush3.bf16.msra.mxu0 %v4453_v57  ;;  %v2259_v57 = vld [vmem:[%s6069_s8 + $0x3a8] sm:$0xff] }
 0x62f   :  { %4456 = vmatprep.subr.bf16.mxu0 %v4455_v58  ;;  %v4501_v58 = vpack.c.bf16 %v2241_v54, %v2240_v53  ;;  %v4503_v59 = vpack.c.bf16 %v2259_v57, %v2258_v56 }
 0x632   :  { %4458 = vmatpush3.bf16.msra.mxu0 %v4457_v62  ;;  %v2261_v62 = vld [vmem:[%s6069_s8 + $0x3b8] sm:$0xff] }
 0x633   :  { %4460 = vmatprep.subr.bf16.mxu0 %v4459_v2  ;;  %v4505_v2 = vpack.c.bf16 %v2243_v61, %v2242_v60  ;;  %v4507_v39 = vpack.c.bf16 %v2261_v62, %v2260_v28 }
 0x636   :  { %4462 = vmatpush3.bf16.msra.mxu0 %v4461_v48  ;;  %v2245_v48 = vld [vmem:[%s6069_s8 + $0x338] sm:$0xff] }
 0x637   :  { %4496 = vmatprep.subr.bf16.mxu0 %v4495_v5  ;;  %v4509_v5 = vpack.c.bf16 %v2245_v48, %v2244_v3 }
 0x66c   :  { %v5867_v8 = vpop.f32.mrb[10].mxu0 }
 0x66d   :  { %v2028_v9 = vsel %vm447_vm5, %v5867_v8, 0.0  ;;  %v2072_v10 = vmul.f32 %v5867_v8, %v5867_v8  ;;  %v5873_v11 = vpop.f32.mrb[11].mxu0 }
 0x66e   :  { %v2029_v12 = vrot.slane %v2028_v9, 4  ;;  %v2035_v13 = vsel %vm447_vm5, %v5873_v11, 0.0  ;;  %v2073_v14 = vmul.f32 %v5873_v11, %v5873_v11 }
 0x66f   :  { %v2092_v15 = vsel %vm447_vm5, %v2072_v10, 0.0  ;;  %v2036_v16 = vrot.slane %v2035_v13, 4  ;;  %v2246_v10 = vld [vmem:[%s6069_s8 + $0x340] sm:$0xff] }
 0x670   :  { %v2030_v17 = vadd.f32 %v2029_v12, %v2028_v9  ;;  %v2093_v20 = vrot.slane %v2092_v15, 4  ;;  %v2099_v21 = vsel %vm447_vm5, %v2073_v14, 0.0  ;;  %v4511_v9 = vpack.c.bf16 %v2263_v23, %v2262_v4  ;;  %v2247_v12 = vld [vmem:[%s6069_s8 + $0x348] sm:$0xff]  ;;  %v2265_v14 = vld [vmem:[%s6069_s8 + $0x3d8] sm:$0xff] }
 0x671   :  { %v2037_v25 = vadd.f32 %v2036_v16, %v2035_v13  ;;  %v2100_v26 = vrot.slane %v2099_v21, 4  ;;  %v2264_v13 = vld [vmem:[%s6069_s8 + $0x3d0] sm:$0xff] }
 0x672   :  { %v2031_v6 = vrot.slane %v2030_v17, 2  ;;  %v2094_v63 = vadd.f32 %v2093_v20, %v2092_v15  ;;  %v4513_v15 = vpack.c.bf16 %v2247_v12, %v2246_v10  ;;  %v4515_v16 = vpack.c.bf16 %v2265_v14, %v2264_v13  ;;  %v2249_v20 = vld [vmem:[%s6069_s8 + $0x358] sm:$0xff] }
 0x673   :  { %v2038_v30 = vrot.slane %v2037_v25, 2  ;;  %v2101_v31 = vadd.f32 %v2100_v26, %v2099_v21  ;;  %v2266_v21 = vld [vmem:[%s6069_s8 + $0x3e0] sm:$0xff] }
 0x674   :  { %v2032_v32 = vadd.f32 %v2031_v6, %v2030_v17  ;;  %v2095_v1 = vrot.slane %v2094_v63, 2  ;;  %v2248_v17 = vld [vmem:[%s6069_s8 + $0x350] sm:$0xff] }
 0x675   :  { %v2039_v33 = vadd.f32 %v2038_v30, %v2037_v25  ;;  %v2102_v34 = vrot.slane %v2101_v31, 2  ;;  %v2267_v25 = vld [vmem:[%s6069_s8 + $0x3e8] sm:$0xff]  ;;  %v4517_v26 = vpack.c.bf16 %v2249_v20, %v2248_v17 }
 0x676   :  { %v2096_v52 = vadd.f32 %v2095_v1, %v2094_v63  ;;  %v2033_v37 = vrot.slane %v2032_v32, 1  ;;  %v4519_v6 = vpack.c.bf16 %v2267_v25, %v2266_v21  ;;  %v2250_v63 = vld [vmem:[%s6069_s8 + $0x360] sm:$0xff]  ;;  %v2251_v30 = vld [vmem:[%s6069_s8 + $0x368] sm:$0xff] }
 0x677   :  { %v2040_v35 = vrot.slane %v2039_v33, 1  ;;  %v2103_v36 = vadd.f32 %v2102_v34, %v2101_v31  ;;  %v2268_v31 = vld [vmem:[%s6069_s8 + $0x3f0] sm:$0xff]  ;;  %v4521_v1 = vpack.c.bf16 %v2251_v30, %v2250_v63  ;;  %v2575_v63 = vld [vmem:[#allocation14 + $0x8] sm:$0xff] }
 0x678   :  { %v2097_v7 = vrot.slane %v2096_v52, 1  ;;  %v2034_v47 = vadd.f32 %v2033_v37, %v2032_v32  ;;  %v2269_v32 = vld [vmem:[%s6069_s8 + $0x3f8] sm:$0xff]  ;;  %v2252_v34 = vld [vmem:[%s6069_s8 + $0x370] sm:$0xff] }
 0x679   :  { %v2104_v38 = vrot.slane %v2103_v36, 1  ;;  %v2041_v45 = vadd.f32 %v2040_v35, %v2039_v33  ;;  %v4523_v33 = vpack.c.bf16 %v2269_v32, %v2268_v31  ;;  %v2583_v31 = vcombine.high %v2575_v63, %v2575_v63  ;;  %v2576_v32 = vld [vmem:[#allocation14 + $0x10] sm:$0xff] }
 0x67a   :  { %v2098_v42 = vadd.f32 %v2097_v7, %v2096_v52  ;;  %v2253_v52 = vld [vmem:[%s6069_s8 + $0x378] sm:$0xff] }
 0x67b   :  { %v2105_v46 = vadd.f32 %v2104_v38, %v2103_v36  ;;  %v4525_v35 = vpack.c.bf16 %v2253_v52, %v2252_v34 }
 0x67c   :  { %v2136_v55 = vsel %vm508_vm6, %v2034_v47, %v2098_v42 }
 0x67d   :  { %v2137_v50 = vsel %vm508_vm6, %v2041_v45, %v2105_v46 }
 0x67e   :  { %2404 = vmatprep.mubr.f32.mxu0 %v2137_v50 }
 0x67f   :  { %2405 = vmatmul.mubr.f32.vlgmr.msra.gmra.mrb[14].mxu0 %v2136_v55 }
 0x680   :  { %4498 = vmatpush3.bf16.msra.mxu0 %v4497_v49 }
 0x681   :  { %4500 = vmatprep.subr.bf16.mxu0 %v4499_v51 }
 0x684   :  { %4502 = vmatpush3.bf16.msra.mxu0 %v4501_v58 }
 0x685   :  { %4504 = vmatprep.subr.bf16.mxu0 %v4503_v59 }
 0x688   :  { %4506 = vmatpush3.bf16.msra.mxu0 %v4505_v2 }
 0x689   :  { %4508 = vmatprep.subr.bf16.mxu0 %v4507_v39 }
 0x68c   :  { %4510 = vmatpush3.bf16.msra.mxu0 %v4509_v5 }
 0x68d   :  { %4512 = vmatprep.subr.bf16.mxu0 %v4511_v9 }
 0x690   :  { %4514 = vmatpush3.bf16.msra.mxu0 %v4513_v15 }
 0x691   :  { %4516 = vmatprep.subr.bf16.mxu0 %v4515_v16 }
 0x694   :  { %4518 = vmatpush3.bf16.msra.mxu0 %v4517_v26 }
 0x695   :  { %4520 = vmatprep.subr.bf16.mxu0 %v4519_v6  ;;  %v2574_v6 = vld [vmem:[#allocation14] sm:$0xff] }
 0x696   :  { %v2582_v30 = vcombine.high %v2574_v6, %v2574_v6 }
 0x698   :  { %4522 = vmatpush3.bf16.msra.mxu0 %v4521_v1  ;;  %3561 = vmatprep.subr.msk.mxu1 %vm2589_vm7, %v2582_v30  ;;  %v2577_v1 = vld [vmem:[#allocation14 + $0x18] sm:$0xff]  ;;  %v2999_v30 = vld [vmem:[#allocation16 + $0xa8] sm:$0xff] }
 0x699   :  { %4524 = vmatprep.subr.bf16.mxu0 %v4523_v33  ;;  %3562 = vmatpush1.msk.msra.mxu1 %vm2589_vm7, %v2574_v6  ;;  %v2584_v33 = vcombine.high %v2576_v32, %v2576_v32  ;;  %v2585_v34 = vcombine.high %v2577_v1, %v2577_v1  ;;  %v2994_v6 = vld [vmem:[#allocation16 + $0x80] sm:$0xff] }
 0x69b   :  { %3567 = vmatprep.subr.msk.mxu1 %vm2589_vm7, %v2584_v33  ;;  %v2998_v33 = vld [vmem:[#allocation16 + $0xa0] sm:$0xff] }
 0x69c   :  { %4526 = vmatpush3.bf16.msra.mxu0 %v4525_v35 }
 0x69d   :  { %3564 = vmatprep.subr.msk.mxu0 %vm2589_vm7, %v2583_v31  ;;  %v3001_v31 = vld [vmem:[#allocation16 + $0xb8] sm:$0xff] }
 0x6d2   :  { %v3678_v36 = vpop.f32.mrb[8].mxu1 }
 0x6d3   :  { %v3679_v37 = vpop.f32.mrb[9].mxu1 }
 0x6d4   :  { %v3680_v7 = vadd.f32 %v3679_v37, %v3678_v36 }
 0x6ec   :  { %v5973_v38 = vpop.f32.mrb[12].mxu0 }
 0x6ed   :  { %v2056_v40 = vsel %vm447_vm5, %v5973_v38, 0.0  ;;  %v2076_v41 = vmul.f32 %v5973_v38, %v5973_v38  ;;  %v5979_v42 = vpop.f32.mrb[13].mxu0 }
 0x6ee   :  { %v2057_v43 = vrot.slane %v2056_v40, 4  ;;  %v2063_v44 = vsel %vm447_vm5, %v5979_v42, 0.0  ;;  %v2077_v45 = vmul.f32 %v5979_v42, %v5979_v42 }
 0x6ef   :  { %v2120_v46 = vsel %vm447_vm5, %v2076_v41, 0.0  ;;  %v2064_v47 = vrot.slane %v2063_v44, 4 }
 0x6f0   :  { %v2058_v49 = vadd.f32 %v2057_v43, %v2056_v40  ;;  %v2121_v50 = vrot.slane %v2120_v46, 4  ;;  %v2127_v51 = vsel %vm447_vm5, %v2077_v45, 0.0 }
 0x6f1   :  { %v2065_v53 = vadd.f32 %v2064_v47, %v2063_v44  ;;  %v2128_v54 = vrot.slane %v2127_v51, 4  ;;  %v5996_v47 = vld [vmem:[#allocation8] sm:$0x7f] }
 0x6f2   :  { %v2059_v55 = vrot.slane %v2058_v49, 2  ;;  %v2122_v56 = vadd.f32 %v2121_v50, %v2120_v46  ;;  %v3748_v59 = vpop.f32.mrb[10].mxu1 }
 0x6f3   :  { %v2066_v57 = vrot.slane %v2065_v53, 2  ;;  %v2129_v58 = vadd.f32 %v2128_v54, %v2127_v51  ;;  %v3749_v28 = vpop.f32.mrb[11].mxu1 }
 0x6f4   :  { %v2060_v60 = vadd.f32 %v2059_v55, %v2058_v49  ;;  %v2123_v61 = vrot.slane %v2122_v56, 2  ;;  %v3750_v39 = vadd.f32 %v3749_v28, %v3748_v59  ;;  %v2979_v55 = vld [vmem:[#allocation16 + $0x8] sm:$0xff]  ;;  %v2980_v59 = vld [vmem:[#allocation16 + $0x10] sm:$0xff] }
 0x6f5   :  { %v2067_v62 = vadd.f32 %v2066_v57, %v2065_v53  ;;  %v2130_v2 = vrot.slane %v2129_v58, 2  ;;  %v2983_v28 = vld [vmem:[#allocation16 + $0x28] sm:$0xff] }
 0x6f6   :  { %v2124_v3 = vadd.f32 %v2123_v61, %v2122_v56  ;;  %v2061_v23 = vrot.slane %v2060_v60, 1  ;;  %v2981_v56 = vld [vmem:[#allocation16 + $0x18] sm:$0xff] }
 0x6f7   :  { %v2068_v48 = vrot.slane %v2067_v62, 1  ;;  %v2131_v4 = vadd.f32 %v2130_v2, %v2129_v58  ;;  %v2978_v58 = vld [vmem:[#allocation16] sm:$0xff]  ;;  %v4527_v61 = vpack.c.bf16 %v2981_v56, %v2979_v55  ;;  %v3012_v56 = vld [vmem:[#allocation16 + $0x110] sm:$0xff] }
 0x6f8   :  { %v2125_v5 = vrot.slane %v2124_v3, 1  ;;  %v2062_v14 = vadd.f32 %v2061_v23, %v2060_v60  ;;  %v4529_v2 = vpack.c.bf16 %v2980_v59, %v2978_v58  ;;  %v2989_v23 = vld [vmem:[#allocation16 + $0x58] sm:$0xff]  ;;  %v3010_v55 = vld [vmem:[#allocation16 + $0x100] sm:$0xff] }
 0x6f9   :  { %v2132_v9 = vrot.slane %v2131_v4, 1  ;;  %v2069_v12 = vadd.f32 %v2068_v48, %v2067_v62  ;;  %v2985_v62 = vld [vmem:[#allocation16 + $0x38] sm:$0xff]  ;;  %v2984_v48 = vld [vmem:[#allocation16 + $0x30] sm:$0xff]  ;;  %v4561_v59 = vpack.c.bf16 %v3012_v56, %v3010_v55 }
 0x6fa   :  { %v2126_v10 = vadd.f32 %v2125_v5, %v2124_v3  ;;  %v2982_v3 = vld [vmem:[#allocation16 + $0x20] sm:$0xff]  ;;  %v3017_v58 = vld [vmem:[#allocation16 + $0x138] sm:$0xff] }
 0x6fb   :  { %v2133_v13 = vadd.f32 %v2132_v9, %v2131_v4  ;;  %v2987_v4 = vld [vmem:[#allocation16 + $0x48] sm:$0xff]  ;;  %v4533_v5 = vpack.c.bf16 %v2984_v48, %v2982_v3  ;;  %v3018_v48 = vld [vmem:[#allocation16 + $0x140] sm:$0xff] }
 0x6fc   :  { %v2140_v16 = vsel %vm508_vm6, %v2062_v14, %v2126_v10  ;;  %v4535_v9 = vpack.c.bf16 %v2989_v23, %v2987_v4  ;;  %v2986_v10 = vld [vmem:[#allocation16 + $0x40] sm:$0xff]  ;;  %v2993_v14 = vld [vmem:[#allocation16 + $0x78] sm:$0xff]  ;;  %v3020_v4 = vld [vmem:[#allocation16 + $0x150] sm:$0xff] }
 0x6fd   :  { %v2141_v15 = vsel %vm508_vm6, %v2069_v12, %v2133_v13  ;;  %v2988_v12 = vld [vmem:[#allocation16 + $0x50] sm:$0xff]  ;;  %v2991_v13 = vld [vmem:[#allocation16 + $0x68] sm:$0xff] }
 0x6fe   :  { %2544 = vmatprep.mubr.f32.mxu0 %v2141_v15  ;;  %v4539_v15 = vpack.c.bf16 %v2993_v14, %v2991_v13  ;;  %v3023_v23 = vld [vmem:[#allocation16 + $0x168] sm:$0xff]  ;;  %v3024_v13 = vld [vmem:[#allocation16 + $0x170] sm:$0xff] }
 0x6ff   :  { %2545 = vmatmul.mubr.f32.vlgmr.msra.gmra.mrb[16].mxu0 %v2140_v16  ;;  %v2990_v16 = vld [vmem:[#allocation16 + $0x60] sm:$0xff]  ;;  %v3027_v14 = vld [vmem:[#allocation16 + $0x188] sm:$0xff] }
 0x700   :  { %2741 = vmatprep.mubr.f32.mxu0 %v5082_v0  ;;  %3565 = vmatpush1.msk.msra.mxu0 %vm2589_vm7, %v2575_v63  ;;  %v2996_v63 = vld [vmem:[#allocation16 + $0x90] sm:$0xff] }
 0x701   :  { %3570 = vmatprep.subr.msk.mxu0 %vm2589_vm7, %v2585_v34  ;;  %v3000_v34 = vld [vmem:[#allocation16 + $0xb0] sm:$0xff] }
 0x752   :  { %v3713_v17 = vpop.f32.mrb[14].mxu0 }
 0x753   :  { %v3714_v20 = vpop.f32.mrb[15].mxu0 }
 0x754   :  { %v3715_v21 = vadd.f32 %v3714_v20, %v3713_v17  ;;  %v2992_v17 = vld [vmem:[#allocation16 + $0x70] sm:$0xff]  ;;  %v2995_v20 = vld [vmem:[#allocation16 + $0x88] sm:$0xff] }
 0x756   :  { %v2407_v25 = vadd.f32 %v3715_v21, %v3680_v7  ;;  %v2997_v21 = vld [vmem:[#allocation16 + $0x98] sm:$0xff] }
 0x758   :  { %v2477_v26 = vadd.f32 %v3750_v39, %v2407_v25  ;;  %v4531_v39 = vpack.c.bf16 %v2985_v62, %v2983_v28  ;;  %v4541_v25 = vpack.c.bf16 %v2992_v17, %v2990_v16  ;;  %v3016_v28 = vld [vmem:[#allocation16 + $0x130] sm:$0xff]  ;;  %v3019_v62 = vld [vmem:[#allocation16 + $0x148] sm:$0xff]  ;;  %v3026_v17 = vld [vmem:[#allocation16 + $0x180] sm:$0xff] }
 0x7d2   :  { %v3783_v52 = vpop.f32.mrb[16].mxu0 }
 0x7d3   :  { %v3784_v35 = vpop.f32.mrb[17].mxu0 }
 0x7d4   :  { %v3785_v36 = vadd.f32 %v3784_v35, %v3783_v52  ;;  %v3003_v52 = vld [vmem:[#allocation16 + $0xc8] sm:$0xff]  ;;  %v3005_v35 = vld [vmem:[#allocation16 + $0xd8] sm:$0xff] }
 0x7d6   :  { %v2547_v37 = vadd.f32 %v3785_v36, %v2477_v26  ;;  %v4543_v26 = vpack.c.bf16 %v2997_v21, %v2995_v20  ;;  %v4549_v36 = vpack.c.bf16 %v3000_v34, %v2998_v33  ;;  %v3028_v20 = vld [vmem:[#allocation16 + $0x190] sm:$0xff]  ;;  %v3031_v21 = vld [vmem:[#allocation16 + $0x1a8] sm:$0xff]  ;;  %v3034_v34 = vld [vmem:[#allocation16 + $0x1c0] sm:$0xff] }
 0x7d8   :  { %v2550_v7 = vmul.f32 %v2547_v37, %v2547_v37 }
 0x7da   :  { %v2552_v40 = vrot.slane %v2550_v7, 7  ;;  %v3002_v7 = vld [vmem:[#allocation16 + $0xc0] sm:$0xff] }
 0x7dc   :  { %v2554_v41 = vsub.f32 %v2547_v37, %v2552_v40  ;;  %v3004_v40 = vld [vmem:[#allocation16 + $0xd0] sm:$0xff] }
 0x7de   :  { %v2555_v43 = vmax.f32 %v2554_v41, 0.0  ;;  %v3007_v41 = vld [vmem:[#allocation16 + $0xe8] sm:$0xff] }
 0x7e0   :  { %v2556_v44 = vadd.f32 1e-05, %v2555_v43  ;;  %v3009_v43 = vld [vmem:[#allocation16 + $0xf8] sm:$0xff] }
 0x7e2   :  { %4828 = vrsqrt.f32 %v2556_v44  ;;  %v4553_v44 = vpack.c.bf16 %v3004_v40, %v3002_v7  ;;  %v3038_v40 = vld [vmem:[#allocation16 + $0x1e0] sm:$0xff] }
 0x7ec   :  { %v4829_v45 = vpop.eup %4828 }
 0x7ed   :  { %v2559_v46 = vrot.slane %v4829_v45, 5  ;;  %v4555_v45 = vpack.c.bf16 %v3009_v43, %v3007_v41  ;;  %v3040_v41 = vld [vmem:[#allocation16 + $0x1f0] sm:$0xff] }
 0x7ee   :  { %v4589_v43 = vpack.c.bf16 %v3040_v41, %v3038_v40  ;;  %v3050_v40 = vld [vmem:[#allocation16 + $0x240] sm:$0xff]  ;;  %v3055_v41 = vld [vmem:[#allocation16 + $0x268] sm:$0xff] }
 0x7ef   :  { %v2561_v49 = vmul.f32 %v5996_v47, %v2559_v46  ;;  %v3006_v46 = vld [vmem:[#allocation16 + $0xe0] sm:$0xff] }
 0x7f1   :  { %v2563_v50 = vrot.slane %v2561_v49, 4  ;;  %v3008_v49 = vld [vmem:[#allocation16 + $0xf0] sm:$0xff] }
 0x7f3   :  { %v2565_v51 = vmul.f32 %v2563_v50, %v2547_v37  ;;  %v4551_v37 = vpack.c.bf16 %v3005_v35, %v3003_v52  ;;  %v3036_v52 = vld [vmem:[#allocation16 + $0x1d0] sm:$0xff] }
 0x7f4   :  { %v4585_v35 = vpack.c.bf16 %v3036_v52, %v3034_v34  ;;  %v3048_v34 = vld [vmem:[#allocation16 + $0x230] sm:$0xff] }
 0x7f5   :  { %v2567_v53 = vrot.slane %v2565_v51, 3  ;;  %v3013_v51 = vld [vmem:[#allocation16 + $0x118] sm:$0xff] }
 0x7f7   :  { %v2569_v54 = vsub.f32 %v5996_v47, %v2567_v53  ;;  %v4557_v53 = vpack.c.bf16 %v3008_v49, %v3006_v46 }
 0x7f9   :  { %v2571_v57 = vrot.slane %v2569_v54, 4 }
 0x7fb   :  { %v2573_v60 = vsel %vm508_vm6, %v2563_v50, %v2571_v57  ;;  %v3011_v50 = vld [vmem:[#allocation16 + $0x108] sm:$0xff] }
 0x7fc   :  { %3563 = vmatmul.mubr.msk.f32.vlgmr.msra.gmra.mrb[12].mxu1 %vm156_vm1, %v2573_v60  ;;  %3566 = vmatmul.mubr.msk.f32.vlgmr.msra.gmra.mrb[18].mxu0 %vm156_vm1, %v2573_v60  ;;  %v4559_v54 = vpack.c.bf16 %v3013_v51, %v3011_v50  ;;  %v3015_v57 = vld [vmem:[#allocation16 + $0x128] sm:$0xff] }
 0x7fd   :  { %3568 = vmatpush1.msk.msra.mxu1 %vm2589_vm7, %v2576_v32  ;;  %2812 = vmatprep.mubr.f32.mxu1 %v5082_v0  ;;  %v4545_v32 = vpack.c.bf16 %v2996_v63, %v2994_v6  ;;  %v3030_v63 = vld [vmem:[#allocation16 + $0x1a0] sm:$0xff] }
 0x7fe   :  { %3571 = vmatpush1.msk.msra.mxu0 %vm2589_vm7, %v2577_v1  ;;  %2883 = vmatprep.mubr.f32.mxu0 %v5082_v0  ;;  %v4537_v0 = vpack.c.bf16 %v2988_v12, %v2986_v10  ;;  %v4547_v1 = vpack.c.bf16 %v3001_v31, %v2999_v30  ;;  %v3022_v12 = vld [vmem:[#allocation16 + $0x160] sm:$0xff]  ;;  %v3032_v30 = vld [vmem:[#allocation16 + $0x1b0] sm:$0xff] }
 0x7ff   :  { %4528 = vmatprep.subr.bf16.mxu1 %v4527_v61  ;;  %v3014_v61 = vld [vmem:[#allocation16 + $0x120] sm:$0xff]  ;;  %v4581_v31 = vpack.c.bf16 %v3032_v30, %v3030_v63 }
 0x800   :  { %3569 = vmatmul.mubr.msk.f32.vlgmr.msra.gmra.mrb[14].mxu1 %vm156_vm1, %v2573_v60  ;;  %3572 = vmatmul.mubr.msk.f32.vlgmr.msra.gmra.mrb[20].mxu0 %vm156_vm1, %v2573_v60  ;;  %v4563_v60 = vpack.c.bf16 %v3017_v58, %v3015_v57 }
 0x801   :  { %4530 = vmatpush1.bf16.msra.mxu1 %v4529_v2  ;;  %v3021_v2 = vld [vmem:[#allocation16 + $0x158] sm:$0xff] }
 0x802   :  { %4532 = vmatprep.subr.bf16.mxu1 %v4531_v39  ;;  %v4565_v39 = vpack.c.bf16 %v3016_v28, %v3014_v61  ;;  %v4567_v3 = vpack.c.bf16 %v3021_v2, %v3019_v62 }
 0x805   :  { %4534 = vmatpush1.bf16.msra.mxu1 %v4533_v5  ;;  %v3025_v5 = vld [vmem:[#allocation16 + $0x178] sm:$0xff] }
 0x806   :  { %4536 = vmatprep.subr.bf16.mxu1 %v4535_v9  ;;  %v4569_v9 = vpack.c.bf16 %v3020_v4, %v3018_v48  ;;  %v4571_v10 = vpack.c.bf16 %v3025_v5, %v3023_v23  ;;  %v3042_v4 = vld [vmem:[#allocation16 + $0x200] sm:$0xff]  ;;  %v3044_v23 = vld [vmem:[#allocation16 + $0x210] sm:$0xff] }
 0x809   :  { %4538 = vmatpush1.bf16.msra.mxu1 %v4537_v0  ;;  %v3029_v0 = vld [vmem:[#allocation16 + $0x198] sm:$0xff] }
 0x80a   :  { %4540 = vmatprep.subr.bf16.mxu1 %v4539_v15  ;;  %v4573_v15 = vpack.c.bf16 %v3024_v13, %v3022_v12  ;;  %v4575_v16 = vpack.c.bf16 %v3029_v0, %v3027_v14  ;;  %v3047_v12 = vld [vmem:[#allocation16 + $0x228] sm:$0xff]  ;;  %v3049_v13 = vld [vmem:[#allocation16 + $0x238] sm:$0xff] }
 0x80d   :  { %4542 = vmatpush1.bf16.msra.mxu1 %v4541_v25  ;;  %v3033_v25 = vld [vmem:[#allocation16 + $0x1b8] sm:$0xff] }
 0x80e   :  { %4544 = vmatprep.subr.bf16.mxu1 %v4543_v26  ;;  %v4577_v26 = vpack.c.bf16 %v3028_v20, %v3026_v17  ;;  %v4579_v6 = vpack.c.bf16 %v3033_v25, %v3031_v21  ;;  %v4593_v17 = vpack.c.bf16 %v3044_v23, %v3042_v4  ;;  %v3071_v4 = vld [vmem:[#allocation16 + $0x2e8] sm:$0xff]  ;;  %v3073_v23 = vld [vmem:[#allocation16 + $0x2f8] sm:$0xff] }
 0x811   :  { %4546 = vmatpush1.bf16.msra.mxu1 %v4545_v32  ;;  %v3035_v32 = vld [vmem:[#allocation16 + $0x1c8] sm:$0xff] }
 0x812   :  { %4548 = vmatprep.subr.bf16.mxu1 %v4547_v1  ;;  %v3037_v1 = vld [vmem:[#allocation16 + $0x1d8] sm:$0xff] }
 0x813   :  { %v4583_v33 = vpack.c.bf16 %v3037_v1, %v3035_v32 }
 0x815   :  { %4550 = vmatpush1.bf16.msra.mxu1 %v4549_v36  ;;  %v3039_v36 = vld [vmem:[#allocation16 + $0x1e8] sm:$0xff] }
 0x816   :  { %4552 = vmatprep.subr.bf16.mxu1 %v4551_v37  ;;  %v3041_v37 = vld [vmem:[#allocation16 + $0x1f8] sm:$0xff] }
 0x817   :  { %v4587_v7 = vpack.c.bf16 %v3041_v37, %v3039_v36  ;;  %v3053_v36 = vld [vmem:[#allocation16 + $0x258] sm:$0xff] }
 0x819   :  { %4554 = vmatpush1.bf16.msra.mxu1 %v4553_v44  ;;  %v3043_v44 = vld [vmem:[#allocation16 + $0x208] sm:$0xff] }
 0x81a   :  { %4556 = vmatprep.subr.bf16.mxu1 %v4555_v45  ;;  %v3045_v45 = vld [vmem:[#allocation16 + $0x218] sm:$0xff] }
 0x81b   :  { %v4591_v46 = vpack.c.bf16 %v3045_v45, %v3043_v44  ;;  %v3054_v45 = vld [vmem:[#allocation16 + $0x260] sm:$0xff] }
 0x81d   :  { %4558 = vmatpush1.bf16.msra.mxu1 %v4557_v53 }
 0x81e   :  { %4560 = vmatprep.subr.bf16.mxu1 %v4559_v54 }
 0x821   :  { %4562 = vmatpush1.bf16.msra.mxu1 %v4561_v59 }
 0x822   :  { %4564 = vmatprep.subr.bf16.mxu1 %v4563_v60 }
 0x825   :  { %4566 = vmatpush1.bf16.msra.mxu1 %v4565_v39 }
 0x826   :  { %4568 = vmatprep.subr.bf16.mxu1 %v4567_v3 }
 0x829   :  { %4570 = vmatpush1.bf16.msra.mxu1 %v4569_v9 }
 0x82a   :  { %4572 = vmatprep.subr.bf16.mxu1 %v4571_v10 }
 0x82d   :  { %4574 = vmatpush1.bf16.msra.mxu1 %v4573_v15 }
 0x82e   :  { %4576 = vmatprep.subr.bf16.mxu1 %v4575_v16 }
 0x831   :  { %4578 = vmatpush1.bf16.msra.mxu1 %v4577_v26  ;;  %v4595_v26 = vpack.c.bf16 %v3049_v13, %v3047_v12  ;;  %v3075_v12 = vld [vmem:[#allocation16 + $0x308] sm:$0xff]  ;;  %v3077_v13 = vld [vmem:[#allocation16 + $0x318] sm:$0xff] }
 0x832   :  { %4580 = vmatprep.subr.bf16.mxu1 %v4579_v6 }
 0x835   :  { %4582 = vmatpush1.bf16.msra.mxu1 %v4581_v31 }
 0x836   :  { %4584 = vmatprep.subr.bf16.mxu1 %v4583_v33 }
 0x839   :  { %4586 = vmatpush1.bf16.msra.mxu1 %v4585_v35  ;;  %v3051_v35 = vld [vmem:[#allocation16 + $0x248] sm:$0xff] }
 0x83a   :  { %4588 = vmatprep.subr.bf16.mxu1 %v4587_v7  ;;  %v4599_v7 = vpack.c.bf16 %v3053_v36, %v3051_v35  ;;  %v3086_v35 = vld [vmem:[#allocation16 + $0x360] sm:$0xff]  ;;  %v3088_v36 = vld [vmem:[#allocation16 + $0x370] sm:$0xff] }
 0x83d   :  { %4590 = vmatpush1.bf16.msra.mxu1 %v4589_v43 }
 0x83e   :  { %4592 = vmatprep.subr.bf16.mxu1 %v4591_v46  ;;  %v3056_v46 = vld [vmem:[#allocation16 + $0x270] sm:$0xff] }
 0x8cf   :  { %v2672_v49 = vpop.f32.mrb[12].mxu1  ;;  %v2743_v50 = vpop.f32.mrb[18].mxu0 }
 0x8d0   :  { %v2893_v51 = vrot.slane %v2672_v49, %v5272_v22  ;;  %v2901_v53 = vrot.slane %v2743_v50, %v5272_v22  ;;  %v2674_v54 = vpop.f32.mrb[13].mxu1  ;;  %v2745_v55 = vpop.f32.mrb[19].mxu0  ;;  %v2933_v59 = vrot.slane %v2672_v49, %v5276_v24  ;;  %v2941_v61 = vrot.slane %v2743_v50, %v5276_v24  ;;  %v3059_v49 = vld [vmem:[#allocation16 + $0x288] sm:$0xff]  ;;  %v3061_v50 = vld [vmem:[#allocation16 + $0x298] sm:$0xff] }
 0x8d1   :  { %v2897_v56 = vrot.slane %v2674_v54, %v5272_v22  ;;  %v2905_v57 = vrot.slane %v2745_v55, %v5272_v22  ;;  %v2937_v62 = vrot.slane %v2674_v54, %v5276_v24  ;;  %v2945_v39 = vrot.slane %v2745_v55, %v5276_v24  ;;  %v3058_v54 = vld [vmem:[#allocation16 + $0x280] sm:$0xff]  ;;  %v3060_v55 = vld [vmem:[#allocation16 + $0x290] sm:$0xff] }
 0x8d2   :  { %v2922_v58 = vmul.f32 %v2893_v51, %v5641_v18  ;;  %v2924_v60 = vmul.f32 %v2901_v53, %v5867_v8  ;;  %v4605_v51 = vpack.c.bf16 %v3056_v46, %v3054_v45  ;;  %v4607_v53 = vpack.c.bf16 %v3061_v50, %v3059_v49  ;;  %v3094_v49 = vld [vmem:[#allocation16 + $0x3a0] sm:$0xff]  ;;  %v3096_v50 = vld [vmem:[#allocation16 + $0x3b0] sm:$0xff] }
 0x8d3   :  { %v2923_v28 = vmul.f32 %v2897_v56, %v5649_v27  ;;  %v2925_v2 = vmul.f32 %v2905_v57, %v5873_v11  ;;  %v2814_v3 = vpop.f32.mrb[14].mxu1  ;;  %v2885_v48 = vpop.f32.mrb[20].mxu0  ;;  %v3063_v56 = vld [vmem:[#allocation16 + $0x2a8] sm:$0xff]  ;;  %v3065_v57 = vld [vmem:[#allocation16 + $0x2b8] sm:$0xff] }
 0x8d4   :  { %v2962_v5 = vadd.f32 %v2933_v59, %v2922_v58  ;;  %v6021_v18 = vadd.f32 %v2941_v61, %v2924_v60  ;;  %v2909_v9 = vrot.slane %v2814_v3, %v5272_v22  ;;  %v2816_v8 = vpop.f32.mrb[15].mxu1  ;;  %v2887_v10 = vpop.f32.mrb[21].mxu0  ;;  %v2917_v0 = vrot.slane %v2885_v48, %v5272_v22  ;;  %v3062_v60 = vld [vmem:[#allocation16 + $0x2a0] sm:$0xff]  ;;  %v3064_v61 = vld [vmem:[#allocation16 + $0x2b0] sm:$0xff] }
 0x8d5   :  { %v2963_v27 = vadd.f32 %v2937_v62, %v2923_v28  ;;  %v2965_v14 = vadd.f32 %v2945_v39, %v2925_v2  ;;  %v2949_v15 = vrot.slane %v2814_v3, %v5276_v24  ;;  %v2913_v16 = vrot.slane %v2816_v8, %v5272_v22  ;;  %v3067_v28 = vld [vmem:[#allocation16 + $0x2c8] sm:$0xff]  ;;  %v3069_v62 = vld [vmem:[#allocation16 + $0x2d8] sm:$0xff]  ;;  %v3066_v3 = vld [vmem:[#allocation16 + $0x2c0] sm:$0xff] }
 0x8d6   :  { %v2926_v11 = vmul.f32 %v2909_v9, %v5643_v19  ;;  %v2928_v20 = vmul.f32 %v2917_v0, %v5973_v38  ;;  %v2957_v21 = vrot.slane %v2885_v48, %v5276_v24  ;;  %v2921_v25 = vrot.slane %v2887_v10, %v5272_v22  ;;  %v3046_v38 = vld [vmem:[#allocation16 + $0x220] sm:$0xff]  ;;  %v3068_v48 = vld [vmem:[#allocation16 + $0x2d0] sm:$0xff] }
 0x8d7   :  { %v2927_v63 = vmul.f32 %v2913_v16, %v5651_v29  ;;  %v2953_v30 = vrot.slane %v2816_v8, %v5276_v24  ;;  %v2971_v31 = vmax.f32 %v2963_v27, 0.0  ;;  %v2970_v19 = vmax.f32 %v2962_v5, 0.0  ;;  %v3070_v8 = vld [vmem:[#allocation16 + $0x2e0] sm:$0xff]  ;;  %v3081_v16 = vld [vmem:[#allocation16 + $0x338] sm:$0xff] }
 0x8d8   :  { %v6031_v6 = vadd.f32 %v2949_v15, %v2926_v11  ;;  %v6035_v32 = vadd.f32 %v2957_v21, %v2928_v20  ;;  %v2929_v1 = vmul.f32 %v2921_v25, %v5979_v42  ;;  %v2961_v33 = vrot.slane %v2887_v10, %v5276_v24  ;;  %v3052_v42 = vld [vmem:[#allocation16 + $0x250] sm:$0xff]  ;;  %v3057_v24 = vld [vmem:[#allocation16 + $0x278] sm:$0xff]  ;;  %v3074_v0 = vld [vmem:[#allocation16 + $0x300] sm:$0xff] }
 0x8d9   :  { %v6039_v52 = vadd.f32 %v2953_v30, %v2927_v63  ;;  %3303 = vmatprep.mubr.f32.mxu1 %v2971_v31  ;;  %v2973_v22 = vmax.f32 %v2965_v14, 0.0  ;;  %v4597_v29 = vpack.c.bf16 %v3048_v34, %v3046_v38  ;;  %v4601_v43 = vpack.c.bf16 %v3052_v42, %v3050_v40  ;;  %v3072_v10 = vld [vmem:[#allocation16 + $0x2f0] sm:$0xff]  ;;  %v3079_v15 = vld [vmem:[#allocation16 + $0x328] sm:$0xff]  ;;  %v3078_v21 = vld [vmem:[#allocation16 + $0x320] sm:$0xff] }
 0x8da   :  { %v6041_v37 = vadd.f32 %v2961_v33, %v2929_v1  ;;  %3304 = vmatmul.mubr.f32.vlgmr.msra.gmra.mrb[16].mxu1 %v2970_v19  ;;  %v4603_v44 = vpack.c.bf16 %v3057_v24, %v3055_v41  ;;  %v4609_v58 = vpack.c.bf16 %v3060_v55, %v3058_v54  ;;  %v4611_v59 = vpack.c.bf16 %v3065_v57, %v3063_v56  ;;  %v3076_v11 = vld [vmem:[#allocation16 + $0x310] sm:$0xff]  ;;  %v3085_v63 = vld [vmem:[#allocation16 + $0x358] sm:$0xff]  ;;  %v3082_v19 = vld [vmem:[#allocation16 + $0x340] sm:$0xff] }
 0x8db   :  { %4594 = vmatpush1.bf16.msra.mxu1 %v4593_v17  ;;  %3374 = vmatprep.mubr.f32.mxu1 %v2973_v22  ;;  %v4613_v2 = vpack.c.bf16 %v3064_v61, %v3062_v60  ;;  %v4615_v39 = vpack.c.bf16 %v3069_v62, %v3067_v28  ;;  %v4617_v5 = vpack.c.bf16 %v3068_v48, %v3066_v3  ;;  %v3080_v25 = vld [vmem:[#allocation16 + $0x330] sm:$0xff]  ;;  %v3087_v33 = vld [vmem:[#allocation16 + $0x368] sm:$0xff]  ;;  %v3089_v38 = vld [vmem:[#allocation16 + $0x378] sm:$0xff] }
 0x8dc   :  { %4596 = vmatprep.subr.bf16.mxu1 %v4595_v26  ;;  %v4619_v9 = vpack.c.bf16 %v3073_v23, %v3071_v4  ;;  %v4621_v27 = vpack.c.bf16 %v3072_v10, %v3070_v8  ;;  %v4623_v14 = vpack.c.bf16 %v3077_v13, %v3075_v12  ;;  %v4625_v17 = vpack.c.bf16 %v3076_v11, %v3074_v0  ;;  %v3083_v26 = vld [vmem:[#allocation16 + $0x348] sm:$0xff]  ;;  %v3084_v1 = vld [vmem:[#allocation16 + $0x350] sm:$0xff]  ;;  %v3090_v41 = vld [vmem:[#allocation16 + $0x380] sm:$0xff] }
 0x8dd   :  { %v4627_v20 = vpack.c.bf16 %v3081_v16, %v3079_v15  ;;  %v4629_v30 = vpack.c.bf16 %v3080_v25, %v3078_v21  ;;  %v4631_v31 = vpack.c.bf16 %v3085_v63, %v3083_v26  ;;  %v4633_v34 = vpack.c.bf16 %v3084_v1, %v3082_v19  ;;  %v3092_v24 = vld [vmem:[#allocation16 + $0x390] sm:$0xff]  ;;  %v3098_v56 = vld [vmem:[#allocation16 + $0x3c0] sm:$0xff]  ;;  %v3115_v0 = vld [vmem:[#allocation16 + $0x448] sm:$0xff] }
 0x8de   :  { %v4635_v22 = vpack.c.bf16 %v3089_v38, %v3087_v33  ;;  %v4637_v40 = vpack.c.bf16 %v3088_v36, %v3086_v35  ;;  %v4641_v45 = vpack.c.bf16 %v3092_v24, %v3090_v41  ;;  %v4645_v54 = vpack.c.bf16 %v3096_v50, %v3094_v49  ;;  %v3100_v57 = vld [vmem:[#allocation16 + $0x3d0] sm:$0xff]  ;;  %v3102_v28 = vld [vmem:[#allocation16 + $0x3e0] sm:$0xff]  ;;  %v3117_v11 = vld [vmem:[#allocation16 + $0x458] sm:$0xff] }
 0x8df   :  { %4598 = vmatpush1.bf16.msra.mxu1 %v4597_v29  ;;  %v3091_v29 = vld [vmem:[#allocation16 + $0x388] sm:$0xff]  ;;  %v4649_v60 = vpack.c.bf16 %v3100_v57, %v3098_v56  ;;  %v3104_v62 = vld [vmem:[#allocation16 + $0x3f0] sm:$0xff]  ;;  %v3106_v4 = vld [vmem:[#allocation16 + $0x400] sm:$0xff]  ;;  %v2972_v10 = vmax.f32 %v6021_v18, 0.0  ;;  %v3235_v15 = vrot.slane %v5996_v47, 6 }
 0x8e0   :  { %4600 = vmatprep.subr.bf16.mxu1 %v4599_v7  ;;  %v3093_v7 = vld [vmem:[#allocation16 + $0x398] sm:$0xff]  ;;  %v4653_v3 = vpack.c.bf16 %v3104_v62, %v3102_v28  ;;  %v3108_v23 = vld [vmem:[#allocation16 + $0x410] sm:$0xff]  ;;  %v3110_v13 = vld [vmem:[#allocation16 + $0x420] sm:$0xff] }
 0x8e1   :  { %v4639_v42 = vpack.c.bf16 %v3093_v7, %v3091_v29  ;;  %v4657_v8 = vpack.c.bf16 %v3108_v23, %v3106_v4  ;;  %v3116_v21 = vld [vmem:[#allocation16 + $0x450] sm:$0xff]  ;;  %4799 = vpush %v3235_v15  ;;  %v3119_v18 = vld [vmem:[#allocation16 + $0x468] sm:$0xff]  ;;  %v3121_v25 = vld [vmem:[#allocation16 + $0x478] sm:$0xff] }
 0x8e2   :  { %v4667_v63 = vpack.c.bf16 %v3121_v25, %v3119_v18  ;;  %v3125_v19 = vld [vmem:[#allocation16 + $0x498] sm:$0xff]  ;;  %v3122_v33 = vld [vmem:[#allocation16 + $0x480] sm:$0xff]  ;;  %v3124_v38 = vld [vmem:[#allocation16 + $0x490] sm:$0xff] }
 0x8e3   :  { %4602 = vmatpush1.bf16.msra.mxu1 %v4601_v43  ;;  %v3095_v43 = vld [vmem:[#allocation16 + $0x3a8] sm:$0xff]  ;;  %v4673_v35 = vpack.c.bf16 %v3124_v38, %v3122_v33  ;;  %v3126_v29 = vld [vmem:[#allocation16 + $0x4a0] sm:$0xff]  ;;  %v3128_v7 = vld [vmem:[#allocation16 + $0x4b0] sm:$0xff] }
 0x8e4   :  { %4604 = vmatprep.subr.bf16.mxu1 %v4603_v44  ;;  %v3097_v44 = vld [vmem:[#allocation16 + $0x3b8] sm:$0xff]  ;;  %v4677_v41 = vpack.c.bf16 %v3128_v7, %v3126_v29  ;;  %v3164_v33 = vld [vmem:[#allocation16 + $0x5d0] sm:$0xff]  ;;  %v3167_v38 = vld [vmem:[#allocation16 + $0x5e8] sm:$0xff] }
 0x8e5   :  { %v4643_v46 = vpack.c.bf16 %v3097_v44, %v3095_v43  ;;  %v3130_v43 = vld [vmem:[#allocation16 + $0x4c0] sm:$0xff]  ;;  %v3132_v44 = vld [vmem:[#allocation16 + $0x4d0] sm:$0xff]  ;;  %v3161_v18 = vld [vmem:[#allocation16 + $0x5b8] sm:$0xff] }
 0x8e6   :  { %v4681_v49 = vpack.c.bf16 %v3132_v44, %v3130_v43  ;;  %v3168_v29 = vld [vmem:[#allocation16 + $0x5f0] sm:$0xff]  ;;  %v3171_v7 = vld [vmem:[#allocation16 + $0x608] sm:$0xff] }
 0x8e7   :  { %4606 = vmatpush1.bf16.msra.mxu1 %v4605_v51  ;;  %v3099_v51 = vld [vmem:[#allocation16 + $0x3c8] sm:$0xff]  ;;  %v3172_v43 = vld [vmem:[#allocation16 + $0x610] sm:$0xff] }
 0x8e8   :  { %4608 = vmatprep.subr.bf16.mxu1 %v4607_v53  ;;  %v3101_v53 = vld [vmem:[#allocation16 + $0x3d8] sm:$0xff]  ;;  %v3175_v44 = vld [vmem:[#allocation16 + $0x628] sm:$0xff] }
 0x8e9   :  { %v4647_v55 = vpack.c.bf16 %v3101_v53, %v3099_v51  ;;  %v3134_v51 = vld [vmem:[#allocation16 + $0x4e0] sm:$0xff]  ;;  %v3136_v53 = vld [vmem:[#allocation16 + $0x4f0] sm:$0xff] }
 0x8ea   :  { %v4685_v56 = vpack.c.bf16 %v3136_v53, %v3134_v51  ;;  %v3174_v51 = vld [vmem:[#allocation16 + $0x620] sm:$0xff]  ;;  %v3176_v53 = vld [vmem:[#allocation16 + $0x630] sm:$0xff] }
 0x8eb   :  { %4610 = vmatpush1.bf16.msra.mxu1 %v4609_v58  ;;  %v3103_v58 = vld [vmem:[#allocation16 + $0x3e8] sm:$0xff] }
 0x8ec   :  { %4612 = vmatprep.subr.bf16.mxu1 %v4611_v59  ;;  %v3105_v59 = vld [vmem:[#allocation16 + $0x3f8] sm:$0xff] }
 0x8ed   :  { %v4651_v61 = vpack.c.bf16 %v3105_v59, %v3103_v58  ;;  %v3138_v58 = vld [vmem:[#allocation16 + $0x500] sm:$0xff]  ;;  %v3140_v59 = vld [vmem:[#allocation16 + $0x510] sm:$0xff] }
 0x8ee   :  { %v4689_v28 = vpack.c.bf16 %v3140_v59, %v3138_v58  ;;  %v3178_v59 = vld [vmem:[#allocation16 + $0x640] sm:$0xff] }
 0x8ef   :  { %4614 = vmatpush1.bf16.msra.mxu1 %v4613_v2  ;;  %v3107_v2 = vld [vmem:[#allocation16 + $0x408] sm:$0xff] }
 0x8f0   :  { %4616 = vmatprep.subr.bf16.mxu1 %v4615_v39  ;;  %v3109_v39 = vld [vmem:[#allocation16 + $0x418] sm:$0xff] }
 0x8f1   :  { %v4655_v48 = vpack.c.bf16 %v3109_v39, %v3107_v2  ;;  %v3142_v2 = vld [vmem:[#allocation16 + $0x520] sm:$0xff]  ;;  %v3144_v39 = vld [vmem:[#allocation16 + $0x530] sm:$0xff] }
 0x8f2   :  { %v4693_v4 = vpack.c.bf16 %v3144_v39, %v3142_v2  ;;  %v3182_v2 = vld [vmem:[#allocation16 + $0x660] sm:$0xff]  ;;  %v3184_v39 = vld [vmem:[#allocation16 + $0x670] sm:$0xff] }
 0x8f3   :  { %4618 = vmatpush1.bf16.msra.mxu1 %v4617_v5  ;;  %v3111_v5 = vld [vmem:[#allocation16 + $0x428] sm:$0xff] }
 0x8f4   :  { %4620 = vmatprep.subr.bf16.mxu1 %v4619_v9  ;;  %v3113_v9 = vld [vmem:[#allocation16 + $0x438] sm:$0xff] }
 0x8f5   :  { %v4659_v12 = vpack.c.bf16 %v3113_v9, %v3111_v5  ;;  %v3146_v5 = vld [vmem:[#allocation16 + $0x540] sm:$0xff]  ;;  %v3148_v9 = vld [vmem:[#allocation16 + $0x550] sm:$0xff] }
 0x8f7   :  { %4622 = vmatpush1.bf16.msra.mxu1 %v4621_v27  ;;  %v3112_v27 = vld [vmem:[#allocation16 + $0x430] sm:$0xff] }
 0x8f8   :  { %4624 = vmatprep.subr.bf16.mxu1 %v4623_v14  ;;  %v2975_v14 = vmax.f32 %v6039_v52, 0.0  ;;  %v4661_v16 = vpack.c.bf16 %v3112_v27, %v3110_v13  ;;  %v3118_v52 = vld [vmem:[#allocation16 + $0x460] sm:$0xff] }
 0x8f9   :  { %v3150_v27 = vld [vmem:[#allocation16 + $0x560] sm:$0xff] }
 0x8fb   :  { %4626 = vmatpush1.bf16.msra.mxu1 %v4625_v17  ;;  %v4663_v17 = vpack.c.bf16 %v3117_v11, %v3115_v0  ;;  %v3155_v0 = vld [vmem:[#allocation16 + $0x588] sm:$0xff]  ;;  %v3157_v11 = vld [vmem:[#allocation16 + $0x598] sm:$0xff] }
 0x8fc   :  { %4628 = vmatprep.subr.bf16.mxu1 %v4627_v20  ;;  %v3114_v20 = vld [vmem:[#allocation16 + $0x440] sm:$0xff] }
 0x8fd   :  { %v4665_v26 = vpack.c.bf16 %v3116_v21, %v3114_v20  ;;  %v3156_v20 = vld [vmem:[#allocation16 + $0x590] sm:$0xff]  ;;  %v3159_v21 = vld [vmem:[#allocation16 + $0x5a8] sm:$0xff] }
 0x8ff   :  { %4630 = vmatpush1.bf16.msra.mxu1 %v4629_v30  ;;  %v3120_v30 = vld [vmem:[#allocation16 + $0x470] sm:$0xff] }
 0x900   :  { %4632 = vmatprep.subr.bf16.mxu1 %v4631_v31  ;;  %v3123_v31 = vld [vmem:[#allocation16 + $0x488] sm:$0xff]  ;;  %v4669_v47 = vpack.c.bf16 %v3120_v30, %v3118_v52  ;;  %v3160_v52 = vld [vmem:[#allocation16 + $0x5b0] sm:$0xff] }
 0x901   :  { %v4671_v1 = vpack.c.bf16 %v3125_v19, %v3123_v31  ;;  %v3163_v30 = vld [vmem:[#allocation16 + $0x5c8] sm:$0xff]  ;;  %v3165_v31 = vld [vmem:[#allocation16 + $0x5d8] sm:$0xff] }
 0x903   :  { %4634 = vmatpush1.bf16.msra.mxu1 %v4633_v34  ;;  %v3127_v34 = vld [vmem:[#allocation16 + $0x4a8] sm:$0xff] }
 0x904   :  { %4636 = vmatprep.subr.bf16.mxu1 %v4635_v22  ;;  %v3129_v22 = vld [vmem:[#allocation16 + $0x4b8] sm:$0xff] }
 0x905   :  { %v4675_v36 = vpack.c.bf16 %v3129_v22, %v3127_v34  ;;  %v3169_v34 = vld [vmem:[#allocation16 + $0x5f8] sm:$0xff] }
 0x907   :  { %4638 = vmatpush1.bf16.msra.mxu1 %v4637_v40  ;;  %v3131_v40 = vld [vmem:[#allocation16 + $0x4c8] sm:$0xff] }
 0x908   :  { %4640 = vmatprep.subr.bf16.mxu1 %v4639_v42  ;;  %v3133_v42 = vld [vmem:[#allocation16 + $0x4d8] sm:$0xff] }
 0x909   :  { %v4679_v24 = vpack.c.bf16 %v3133_v42, %v3131_v40  ;;  %v3173_v40 = vld [vmem:[#allocation16 + $0x618] sm:$0xff] }
 0x90b   :  { %4642 = vmatpush1.bf16.msra.mxu1 %v4641_v45  ;;  %v3135_v45 = vld [vmem:[#allocation16 + $0x4e8] sm:$0xff] }
 0x90c   :  { %4644 = vmatprep.subr.bf16.mxu1 %v4643_v46  ;;  %v3137_v46 = vld [vmem:[#allocation16 + $0x4f8] sm:$0xff] }
 0x90d   :  { %v4683_v50 = vpack.c.bf16 %v3137_v46, %v3135_v45  ;;  %v3177_v45 = vld [vmem:[#allocation16 + $0x638] sm:$0xff] }
 0x90f   :  { %4646 = vmatpush1.bf16.msra.mxu1 %v4645_v54  ;;  %v3139_v54 = vld [vmem:[#allocation16 + $0x508] sm:$0xff] }
 0x910   :  { %4648 = vmatprep.subr.bf16.mxu1 %v4647_v55  ;;  %v3141_v55 = vld [vmem:[#allocation16 + $0x518] sm:$0xff] }
 0x911   :  { %v4687_v57 = vpack.c.bf16 %v3141_v55, %v3139_v54  ;;  %v2977_v54 = vmax.f32 %v6041_v37, 0.0  ;;  %v3179_v55 = vld [vmem:[#allocation16 + $0x648] sm:$0xff]  ;;  %v3189_v37 = vld [vmem:[#allocation16 + $0x698] sm:$0xff] }
 0x912   :  { %s4800_s8 = spop %4799 }
 0x913   :  { %4650 = vmatpush1.bf16.msra.mxu1 %v4649_v60  ;;  %v3143_v60 = vld [vmem:[#allocation16 + $0x528] sm:$0xff] }
 0x914   :  { %4652 = vmatprep.subr.bf16.mxu1 %v4651_v61  ;;  %v3145_v61 = vld [vmem:[#allocation16 + $0x538] sm:$0xff] }
 0x915   :  { %v4691_v62 = vpack.c.bf16 %v3145_v61, %v3143_v60  ;;  %v3180_v60 = vld [vmem:[#allocation16 + $0x650] sm:$0xff]  ;;  %v3183_v61 = vld [vmem:[#allocation16 + $0x668] sm:$0xff] }
 0x917   :  { %4654 = vmatpush1.bf16.msra.mxu1 %v4653_v3  ;;  %v3147_v3 = vld [vmem:[#allocation16 + $0x548] sm:$0xff] }
 0x918   :  { %4656 = vmatprep.subr.bf16.mxu1 %v4655_v48  ;;  %v3149_v48 = vld [vmem:[#allocation16 + $0x558] sm:$0xff] }
 0x919   :  { %v4695_v23 = vpack.c.bf16 %v3149_v48, %v3147_v3  ;;  %v3187_v3 = vld [vmem:[#allocation16 + $0x688] sm:$0xff]  ;;  %v4733_v48 = vpack.c.bf16 %v3184_v39, %v3182_v2  ;;  %v3229_v2 = vld [vmem:[#allocation16 + $0x7d8] sm:$0xff] }
 0x91a   :  { %3375 = vmatmul.mubr.f32.vlgmr.msra.gmra.mrb[16].mxu1 %v2972_v10  ;;  %v3153_v10 = vld [vmem:[#allocation16 + $0x578] sm:$0xff] }
 0x91b   :  { %4658 = vmatpush1.bf16.msra.mxu1 %v4657_v8  ;;  %3445 = vmatprep.mubr.f32.mxu1 %v2975_v14  ;;  %v3151_v8 = vld [vmem:[#allocation16 + $0x568] sm:$0xff]  ;;  %v3152_v14 = vld [vmem:[#allocation16 + $0x570] sm:$0xff] }
 0x91c   :  { %4660 = vmatprep.subr.bf16.mxu1 %v4659_v12  ;;  %v4697_v12 = vpack.c.bf16 %v3148_v9, %v3146_v5  ;;  %v4699_v13 = vpack.c.bf16 %v3153_v10, %v3151_v8  ;;  %v4701_v15 = vpack.c.bf16 %v3152_v14, %v3150_v27  ;;  %v3188_v5 = vld [vmem:[#allocation16 + $0x690] sm:$0xff]  ;;  %v3191_v9 = vld [vmem:[#allocation16 + $0x6a8] sm:$0xff]  ;;  %v3193_v8 = vld [vmem:[#allocation16 + $0x6b8] sm:$0xff] }
 0x91d   :  { %v3192_v27 = vld [vmem:[#allocation16 + $0x6b0] sm:$0xff]  ;;  %v3195_v14 = vld [vmem:[#allocation16 + $0x6c8] sm:$0xff] }
 0x91f   :  { %4662 = vmatpush1.bf16.msra.mxu1 %v4661_v16  ;;  %v4703_v16 = vpack.c.bf16 %v3157_v11, %v3155_v0  ;;  %v3197_v0 = vld [vmem:[#allocation16 + $0x6d8] sm:$0xff] }
 0x920   :  { %4664 = vmatprep.subr.bf16.mxu1 %v4663_v17  ;;  %v3154_v17 = vld [vmem:[#allocation16 + $0x580] sm:$0xff] }
 0x921   :  { %v4705_v25 = vpack.c.bf16 %v3156_v20, %v3154_v17  ;;  %v3196_v17 = vld [vmem:[#allocation16 + $0x6d0] sm:$0xff]  ;;  %v3199_v20 = vld [vmem:[#allocation16 + $0x6e8] sm:$0xff] }
 0x923   :  { %4666 = vmatpush1.bf16.msra.mxu1 %v4665_v26  ;;  %v4707_v26 = vpack.c.bf16 %v3161_v18, %v3159_v21  ;;  %v3201_v21 = vld [vmem:[#allocation16 + $0x6f8] sm:$0xff] }
 0x924   :  { %4668 = vmatprep.subr.bf16.mxu1 %v4667_v63  ;;  %v3158_v63 = vld [vmem:[#allocation16 + $0x5a0] sm:$0xff] }
 0x925   :  { %v4709_v19 = vpack.c.bf16 %v3160_v52, %v3158_v63  ;;  %v3200_v63 = vld [vmem:[#allocation16 + $0x6f0] sm:$0xff]  ;;  %v3203_v52 = vld [vmem:[#allocation16 + $0x708] sm:$0xff] }
 0x927   :  { %4670 = vmatpush1.bf16.msra.mxu1 %v4669_v47  ;;  %v4711_v47 = vpack.c.bf16 %v3165_v31, %v3163_v30  ;;  %v3205_v30 = vld [vmem:[#allocation16 + $0x718] sm:$0xff] }
 0x928   :  { %4672 = vmatprep.subr.bf16.mxu1 %v4671_v1  ;;  %v3162_v1 = vld [vmem:[#allocation16 + $0x5c0] sm:$0xff] }
 0x929   :  { %v4713_v22 = vpack.c.bf16 %v3164_v33, %v3162_v1  ;;  %v3204_v1 = vld [vmem:[#allocation16 + $0x710] sm:$0xff]  ;;  %v3207_v33 = vld [vmem:[#allocation16 + $0x728] sm:$0xff] }
 0x92b   :  { %4674 = vmatpush1.bf16.msra.mxu1 %v4673_v35  ;;  %v4715_v35 = vpack.c.bf16 %v3169_v34, %v3167_v38  ;;  %v3209_v38 = vld [vmem:[#allocation16 + $0x738] sm:$0xff] }
 0x92c   :  { %4676 = vmatprep.subr.bf16.mxu1 %v4675_v36  ;;  %v3166_v36 = vld [vmem:[#allocation16 + $0x5e0] sm:$0xff] }
 0x92d   :  { %v4717_v42 = vpack.c.bf16 %v3168_v29, %v3166_v36  ;;  %v3208_v36 = vld [vmem:[#allocation16 + $0x730] sm:$0xff]  ;;  %v3211_v29 = vld [vmem:[#allocation16 + $0x748] sm:$0xff] }
 0x92f   :  { %4678 = vmatpush1.bf16.msra.mxu1 %v4677_v41  ;;  %v4719_v41 = vpack.c.bf16 %v3173_v40, %v3171_v7  ;;  %v3213_v7 = vld [vmem:[#allocation16 + $0x758] sm:$0xff] }
 0x930   :  { %4680 = vmatprep.subr.bf16.mxu1 %v4679_v24  ;;  %v3170_v24 = vld [vmem:[#allocation16 + $0x600] sm:$0xff] }
 0x931   :  { %v4721_v46 = vpack.c.bf16 %v3172_v43, %v3170_v24  ;;  %v3212_v24 = vld [vmem:[#allocation16 + $0x750] sm:$0xff]  ;;  %v3215_v43 = vld [vmem:[#allocation16 + $0x768] sm:$0xff] }
 0x933   :  { %4682 = vmatpush1.bf16.msra.mxu1 %v4681_v49  ;;  %v2974_v49 = vmax.f32 %v6031_v6, 0.0  ;;  %v4729_v6 = vpack.c.bf16 %v3180_v60, %v3178_v59  ;;  %v3225_v59 = vld [vmem:[#allocation16 + $0x7b8] sm:$0xff] }
 0x934   :  { %4684 = vmatprep.subr.bf16.mxu1 %v4683_v50  ;;  %v4723_v50 = vpack.c.bf16 %v3177_v45, %v3175_v44  ;;  %v3217_v44 = vld [vmem:[#allocation16 + $0x778] sm:$0xff] }
 0x937   :  { %4686 = vmatpush1.bf16.msra.mxu1 %v4685_v56  ;;  %v3181_v56 = vld [vmem:[#allocation16 + $0x658] sm:$0xff] }
 0x938   :  { %4688 = vmatprep.subr.bf16.mxu1 %v4687_v57  ;;  %v4725_v57 = vpack.c.bf16 %v3176_v53, %v3174_v51  ;;  %v4727_v58 = vpack.c.bf16 %v3181_v56, %v3179_v55  ;;  %v3219_v51 = vld [vmem:[#allocation16 + $0x788] sm:$0xff]  ;;  %v3221_v53 = vld [vmem:[#allocation16 + $0x798] sm:$0xff]  ;;  %v3218_v56 = vld [vmem:[#allocation16 + $0x780] sm:$0xff] }
 0x939   :  { %v4767_v55 = vpack.c.bf16 %v3221_v53, %v3219_v51 }
 0x93b   :  { %4690 = vmatpush1.bf16.msra.mxu1 %v4689_v28  ;;  %v3185_v28 = vld [vmem:[#allocation16 + $0x678] sm:$0xff] }
 0x93c   :  { %4692 = vmatprep.subr.bf16.mxu1 %v4691_v62  ;;  %v4731_v62 = vpack.c.bf16 %v3185_v28, %v3183_v61  ;;  %v3222_v28 = vld [vmem:[#allocation16 + $0x7a0] sm:$0xff] }
 0x93f   :  { %4694 = vmatpush1.bf16.msra.mxu1 %v4693_v4  ;;  %v4735_v4 = vpack.c.bf16 %v3189_v37, %v3187_v3  ;;  %v3226_v37 = vld [vmem:[#allocation16 + $0x7c0] sm:$0xff] }
 0x940   :  { %4696 = vmatprep.subr.bf16.mxu1 %v4695_v23  ;;  %v3186_v23 = vld [vmem:[#allocation16 + $0x680] sm:$0xff] }
 0x941   :  { %v4737_v10 = vpack.c.bf16 %v3188_v5, %v3186_v23  ;;  %v3233_v23 = vld [vmem:[#allocation16 + $0x7f8] sm:$0xff] }
 0x943   :  { %4698 = vmatpush1.bf16.msra.mxu1 %v4697_v12  ;;  %v4739_v12 = vpack.c.bf16 %v3193_v8, %v3191_v9  ;;  %v3230_v8 = vld [vmem:[#allocation16 + $0x7e0] sm:$0xff] }
 0x944   :  { %4700 = vmatprep.subr.bf16.mxu1 %v4699_v13  ;;  %v3190_v13 = vld [vmem:[#allocation16 + $0x6a0] sm:$0xff] }
 0x945   :  { %v4741_v11 = vpack.c.bf16 %v3192_v27, %v3190_v13  ;;  %v2976_v13 = vmax.f32 %v6035_v32, 0.0  ;;  %v3237_v27 = vstv %s4800_s8 }
 0x947   :  { %4702 = vmatpush1.bf16.msra.mxu1 %v4701_v15  ;;  %v4743_v15 = vpack.c.bf16 %v3197_v0, %v3195_v14 }
 0x948   :  { %4704 = vmatprep.subr.bf16.mxu1 %v4703_v16  ;;  %v3194_v16 = vld [vmem:[#allocation16 + $0x6c0] sm:$0xff] }
 0x949   :  { %v4745_v18 = vpack.c.bf16 %v3196_v17, %v3194_v16 }
 0x94b   :  { %4706 = vmatpush1.bf16.msra.mxu1 %v4705_v25  ;;  %v4747_v25 = vpack.c.bf16 %v3201_v21, %v3199_v20 }
 0x94c   :  { %4708 = vmatprep.subr.bf16.mxu1 %v4707_v26  ;;  %v3198_v26 = vld [vmem:[#allocation16 + $0x6e0] sm:$0xff] }
 0x94d   :  { %v4749_v31 = vpack.c.bf16 %v3200_v63, %v3198_v26 }
 0x94f   :  { %4710 = vmatpush1.bf16.msra.mxu1 %v4709_v19  ;;  %v4751_v19 = vpack.c.bf16 %v3205_v30, %v3203_v52 }
 0x950   :  { %4712 = vmatprep.subr.bf16.mxu1 %v4711_v47  ;;  %v3202_v47 = vld [vmem:[#allocation16 + $0x700] sm:$0xff] }
 0x951   :  { %v4753_v34 = vpack.c.bf16 %v3204_v1, %v3202_v47 }
 0x953   :  { %4714 = vmatpush1.bf16.msra.mxu1 %v4713_v22  ;;  %v4755_v22 = vpack.c.bf16 %v3209_v38, %v3207_v33 }
 0x954   :  { %4716 = vmatprep.subr.bf16.mxu1 %v4715_v35  ;;  %v3206_v35 = vld [vmem:[#allocation16 + $0x720] sm:$0xff] }
 0x955   :  { %v4757_v40 = vpack.c.bf16 %v3208_v36, %v3206_v35 }
 0x957   :  { %4718 = vmatpush1.bf16.msra.mxu1 %v4717_v42  ;;  %v4759_v42 = vpack.c.bf16 %v3213_v7, %v3211_v29 }
 0x958   :  { %4720 = vmatprep.subr.bf16.mxu1 %v4719_v41  ;;  %v3210_v41 = vld [vmem:[#allocation16 + $0x740] sm:$0xff] }
 0x959   :  { %v4761_v45 = vpack.c.bf16 %v3212_v24, %v3210_v41 }
 0x95a   :  { %3446 = vmatmul.mubr.f32.vlgmr.msra.gmra.mrb[16].mxu1 %v2974_v49  ;;  %v3214_v49 = vld [vmem:[#allocation16 + $0x760] sm:$0xff] }
 0x95b   :  { %4722 = vmatpush1.bf16.msra.mxu1 %v4721_v46  ;;  %3516 = vmatprep.mubr.f32.mxu1 %v2977_v54  ;;  %v4763_v46 = vpack.c.bf16 %v3217_v44, %v3215_v43 }
 0x95c   :  { %4724 = vmatprep.subr.bf16.mxu1 %v4723_v50  ;;  %v3216_v50 = vld [vmem:[#allocation16 + $0x770] sm:$0xff] }
 0x95d   :  { %v4765_v54 = vpack.c.bf16 %v3216_v50, %v3214_v49 }
 0x95f   :  { %4726 = vmatpush1.bf16.msra.mxu1 %v4725_v57  ;;  %v3220_v57 = vld [vmem:[#allocation16 + $0x790] sm:$0xff] }
 0x960   :  { %4728 = vmatprep.subr.bf16.mxu1 %v4727_v58  ;;  %v3223_v58 = vld [vmem:[#allocation16 + $0x7a8] sm:$0xff]  ;;  %v4769_v60 = vpack.c.bf16 %v3220_v57, %v3218_v56 }
 0x961   :  { %v4771_v61 = vpack.c.bf16 %v3225_v59, %v3223_v58 }
 0x963   :  { %4730 = vmatpush1.bf16.msra.mxu1 %v4729_v6  ;;  %v3224_v6 = vld [vmem:[#allocation16 + $0x7b0] sm:$0xff] }
 0x964   :  { %4732 = vmatprep.subr.bf16.mxu1 %v4731_v62  ;;  %v3227_v62 = vld [vmem:[#allocation16 + $0x7c8] sm:$0xff]  ;;  %v4773_v39 = vpack.c.bf16 %v3224_v6, %v3222_v28 }
 0x965   :  { %v4775_v3 = vpack.c.bf16 %v3229_v2, %v3227_v62 }
 0x967   :  { %4734 = vmatpush1.bf16.msra.mxu1 %v4733_v48  ;;  %v3228_v48 = vld [vmem:[#allocation16 + $0x7d0] sm:$0xff] }
 0x968   :  { %4736 = vmatprep.subr.bf16.mxu1 %v4735_v4  ;;  %v3231_v4 = vld [vmem:[#allocation16 + $0x7e8] sm:$0xff]  ;;  %v4777_v5 = vpack.c.bf16 %v3228_v48, %v3226_v37 }
 0x969   :  { %v4779_v9 = vpack.c.bf16 %v3233_v23, %v3231_v4 }
 0x96b   :  { %4738 = vmatpush1.bf16.msra.mxu1 %v4737_v10  ;;  %v3232_v10 = vld [vmem:[#allocation16 + $0x7f0] sm:$0xff] }
 0x96c   :  { %4740 = vmatprep.subr.bf16.mxu1 %v4739_v12  ;;  %v4781_v12 = vpack.c.bf16 %v3232_v10, %v3230_v8 }
 0x96f   :  { %4742 = vmatpush1.bf16.msra.mxu1 %v4741_v11 }
 0x970   :  { %4744 = vmatprep.subr.bf16.mxu1 %v4743_v15 }
 0x973   :  { %4746 = vmatpush1.bf16.msra.mxu1 %v4745_v18 }
 0x974   :  { %4748 = vmatprep.subr.bf16.mxu1 %v4747_v25 }
 0x977   :  { %4750 = vmatpush1.bf16.msra.mxu1 %v4749_v31 }
 0x978   :  { %4752 = vmatprep.subr.bf16.mxu1 %v4751_v19 }
 0x97b   :  { %4754 = vmatpush1.bf16.msra.mxu1 %v4753_v34 }
 0x97c   :  { %4756 = vmatprep.subr.bf16.mxu1 %v4755_v22 }
 0x97f   :  { %4758 = vmatpush1.bf16.msra.mxu1 %v4757_v40 }
 0x980   :  { %4760 = vmatprep.subr.bf16.mxu1 %v4759_v42 }
 0x983   :  { %4762 = vmatpush1.bf16.msra.mxu1 %v4761_v45 }
 0x984   :  { %4764 = vmatprep.subr.bf16.mxu1 %v4763_v46 }
 0x987   :  { %4766 = vmatpush1.bf16.msra.mxu1 %v4765_v54 }
 0x988   :  { %4768 = vmatprep.subr.bf16.mxu1 %v4767_v55 }
 0x98b   :  { %4770 = vmatpush1.bf16.msra.mxu1 %v4769_v60 }
 0x98c   :  { %4772 = vmatprep.subr.bf16.mxu1 %v4771_v61 }
 0x98f   :  { %4774 = vmatpush1.bf16.msra.mxu1 %v4773_v39 }
 0x990   :  { %4776 = vmatprep.subr.bf16.mxu1 %v4775_v3 }
 0x993   :  { %4778 = vmatpush1.bf16.msra.mxu1 %v4777_v5 }
 0x994   :  { %4780 = vmatprep.subr.bf16.mxu1 %v4779_v9 }
 0x997   :  { %4782 = vmatpush1.bf16.msra.mxu1 %v4781_v12 }
 0x99a   :  { %3517 = vmatmul.mubr.f32.vlgmr.msra.gmra.mrb[16].mxu1 %v2976_v13 }
 0xa6d   :  { %v3518_v14 = vpop.f32.mrb[16].mxu1 }
 0xa6e   :  { %v4783_v0 = vadd.f32 %v3518_v14, %v3237_v27  ;;  %v3520_v11 = vpop.f32.mrb[17].mxu1 }
 0xa6f   :  { %v4784_v15 = vadd.f32 %v3520_v11, %v3237_v27 }
 0xa70   :  { %4830 = vtanh.f32 %v4783_v0 }
 0xa71   :  { %4832 = vtanh.f32 %v4784_v15 }
 0xa7a   :  { %v4831_v16 = vpop.eup %4830 }
 0xa7b   :  { %v4833_v17 = vpop.eup %4832 }
 0xa7c   :  { %v3527_v20 = vcombine.low %v4831_v16, %v4833_v17 }
 0xa7e   :  { %3573 = vst.sshfl [vmem:[#allocation17] sm:$0x33 pattern:$0x76325410] %v3527_v20 }
 0xa7f   :  { %5044 = shalt.err (!%p5041_p6)
}
 0xa80   :  { %s5045_s5 = scalar_lea.hbm %s6072_s11, 64 }
 0xa81   :  { %p5046_p7 = scmp.ne.s32.totalorder %s6072_s11, %s5045_s5  ;;  %p5049_p8 = scmp.lt.u32.totalorder %s5045_s5, %s6072_s11 }
 0xa83   :  { %p5051_p9 = pnand %p5049_p8, %p5046_p7 }
 0xa85   :  { %5054 = shalt.err (!%p5051_p9)
}
 0xa86   :  { %3546 = dma.vmem_to_hbm [thread:$0]  %s3544_s26, 64, %s6072_s11, [#allocation4]  }
 0xa87   :  { %5065 = dma.done.wait [#allocation4], 64  }
 0xa88   :  { %5066 = vsyncadd [#allocation4], 4294967232 }
 0xa89   :  { %3550 = vsyncpa [#allocation3], 1 }
 0xa8a   :  { %3551 = vsyncpa [#allocation6], 1 }
 0xa8b   :  { %3552 = vsyncpa [#allocation9], 1 }
 0xa8c   :  { %3553 = vsyncpa [#allocation12], 1 }
 0xa8d   :  { %3554 = vsyncpa [#allocation15], 1 }
 0xa8e   :  { %3555 = vsyncpa [#allocation4], 1 }

</bundles_post_ra>
